<compile_context>
chip_gen: v7x
topology: tpu7x:2x2x1
jax: 0.10.0
libtpu: 0.0.40
codegen_flags: <defaults>
</compile_context>

<pallas_src>
import jax
import jax.numpy as jnp
from jax.experimental import pallas as pl
from jax.experimental.pallas import tpu as pltpu


def _round_up(x, m):
    return ((x + m - 1) // m) * m


def _has_big_mxu():
    try:
        kind = jax.devices()[0].device_kind.lower()
    except Exception:
        return True
    return ("v6" in kind) or ("v7" in kind)


_BIG_MXU = _has_big_mxu()


# ----------------------- Pallas tiled matmul (MXU hot path) -----------------------
def _make_matmul_kernel(activation):
    def kernel(a_ref, b_ref, o_ref, acc_ref):
        @pl.when(pl.program_id(2) == 0)
        def _():
            acc_ref[...] = jnp.zeros_like(acc_ref)

        acc_ref[...] += jnp.dot(a_ref[...], b_ref[...],
                                preferred_element_type=jnp.float32)

        @pl.when(pl.program_id(2) == pl.num_programs(2) - 1)
        def _():
            acc = acc_ref[...]
            if activation == "tanh":          # static; rides the EUP slot, ~free
                acc = jnp.tanh(acc)
            o_ref[...] = acc.astype(o_ref.dtype)

    return kernel


def pallas_matmul(a, b, activation=None):
    """a: (M, K) f32, b: (K, N) f32 -> (M, N) f32. bf16 operands / f32 accumulation."""
    M, K = a.shape
    K2, N = b.shape
    assert K == K2
    if M < 128:
        # tiny-M GEMMs (layers 1-2 at small batch): wide, lane-dense output tiles
        tm = _round_up(M, 8)
        tn = min(_round_up(N, 128), 512)
    else:
        tm = 256 if (_BIG_MXU and M >= 512) else 128
        tn = min(_round_up(N, 128), 256 if _BIG_MXU else 128)
    tk = min(512, _round_up(K, 128))          # clamp K tile to the real K
    Mp, Kp, Np = _round_up(M, tm), _round_up(K, tk), _round_up(N, tn)
    a_p = jnp.pad(a, ((0, Mp - M), (0, Kp - K))).astype(jnp.bfloat16)
    b_p = jnp.pad(b, ((0, Kp - K), (0, Np - N))).astype(jnp.bfloat16)
    out = pl.pallas_call(
        _make_matmul_kernel(activation),
        out_shape=jax.ShapeDtypeStruct((Mp, Np), jnp.float32),
        grid_spec=pltpu.PrefetchScalarGridSpec(
            num_scalar_prefetch=0,
            grid=(Mp // tm, Np // tn, Kp // tk),
            in_specs=[pl.BlockSpec((tm, tk), lambda i, j, k: (i, k)),
                      pl.BlockSpec((tk, tn), lambda i, j, k: (k, j))],
            out_specs=pl.BlockSpec((tm, tn), lambda i, j, k: (i, j)),
            scratch_shapes=[pltpu.VMEM((tm, tn), jnp.float32)]),
        compiler_params=pltpu.CompilerParams(
            dimension_semantics=("parallel", "parallel", "arbitrary")),
    )(a_p, b_p)
    return out[:M, :N]


# ------------------ Fused BatchNorm(train-mode) + ReLU Pallas kernel ------------------
def _bn_relu_kernel(x_ref, g_ref, b_ref, o_ref):
    x = x_ref[...]
    mean = jnp.mean(x, axis=0, keepdims=True)
    # biased variance, as PyTorch BatchNorm normalizes with in train mode
    var = jnp.mean(jnp.square(x - mean), axis=0, keepdims=True)
    inv = jax.lax.rsqrt(var + 1e-5)
    o_ref[...] = jnp.maximum((x - mean) * inv * g_ref[...] + b_ref[...], 0.0)


def batchnorm_relu(x_nhwc, gamma, beta):
    """Train-mode BatchNorm2d (batch statistics) + ReLU, channels-last.
    Grid tiles the CHANNEL dim only (full row extent per block) so per-channel
    batch stats remain exact while VMEM stays bounded and the channel axis is
    megacore-parallel."""
    N, H, W, C = x_nhwc.shape
    M = N * H * W
    x2 = x_nhwc.reshape(M, C)
    ct = 128 if C >= 128 else C
    out = pl.pallas_call(
        _bn_relu_kernel,
        out_shape=jax.ShapeDtypeStruct((M, C), x2.dtype),
        grid_spec=pltpu.PrefetchScalarGridSpec(
            num_scalar_prefetch=0,
            grid=(C // ct,),
            in_specs=[pl.BlockSpec((M, ct), lambda j: (0, j)),
                      pl.BlockSpec((1, ct), lambda j: (0, j)),
                      pl.BlockSpec((1, ct), lambda j: (0, j))],
            out_specs=pl.BlockSpec((M, ct), lambda j: (0, j))),
        compiler_params=pltpu.CompilerParams(
            dimension_semantics=("parallel",)),
    )(x2, gamma.reshape(1, C), beta.reshape(1, C))
    return out.reshape(N, H, W, C)


# ------------------------------- Transposed convs -------------------------------
def deconv_1x1_to_4x4(x_nc, w_pt):
    """ConvTranspose2d(Cin, Cout, 4, stride=1, padding=0, bias=False) on a 1x1 input.
    Pure GEMM; weight columns ordered (kh, kw, cout) so the output is directly NHWC."""
    Cin, Cout = w_pt.shape[0], w_pt.shape[1]
    wm = jnp.transpose(w_pt, (0, 2, 3, 1)).reshape(Cin, 16 * Cout)
    out = pallas_matmul(x_nc, wm)                           # (N, 4*4*Cout)
    return out.reshape(-1, 4, 4, Cout)                      # NHWC


def _phase_packed_weight(w_pt):
    """PyTorch ConvTranspose2d weight (Cin, Cout, 4, 4) -> (4*Cin, 4*Cout).
    Row order (dh, dw, cin) matches the 2x2 im2col; column blocks are the four
    output parities (oh%2, ow%2). Phase (ph, pw) with window offset (dh, dw)
    uses tap (kh, kw) = (3 - ph - 2*dh, 3 - pw - 2*dw)."""
    cols = []
    for ph in range(2):
        for pw in range(2):
            rows = []
            for dh in range(2):
                for dw in range(2):
                    rows.append(w_pt[:, :, 3 - ph - 2 * dh, 3 - pw - 2 * dw])
            cols.append(jnp.concatenate(rows, axis=0))      # (4*Cin, Cout)
    return jnp.concatenate(cols, axis=1)                    # (4*Cin, 4*Cout)


def deconv_s2_k4_p1(x_nhwc, w_pt, activation=None):
    """ConvTranspose2d(Cin, Cout, 4, stride=2, padding=1, bias=False) via the
    4-phase (output-parity) decomposition: ONE Pallas GEMM with K = 4*Cin over
    2x2 windows of the original (pad-1) input — no zero insertion, 4x fewer MACs.
    x_nhwc: (N, H, W, Cin) -> (N, 2H, 2W, Cout). `activation` is fused into the
    GEMM epilogue (used for the final tanh)."""
    N, H, W, Cin = x_nhwc.shape
    Cout = w_pt.shape[1]
    xp = jnp.pad(x_nhwc, ((0, 0), (1, 1), (1, 1), (0, 0)))  # (N, H+2, W+2, Cin)
    # TODO(synk): gather these 2x2 shifted windows inside the GEMM (index_map /
    # manual async copies) instead of materializing the 4*Cin-wide im2col in HBM.
    patches = [xp[:, dh:dh + H + 1, dw:dw + W + 1, :]
               for dh in range(2) for dw in range(2)]
    a = jnp.concatenate(patches, axis=-1).reshape(N * (H + 1) * (W + 1), 4 * Cin)
    y = pallas_matmul(a, _phase_packed_weight(w_pt), activation=activation)
    y = y.reshape(N, H + 1, W + 1, 4, Cout)
    # out[n, 2m+ph, 2l+pw, :] = y[n, m+ph, l+pw, phase(ph,pw), :]
    e00 = y[:, 0:H,     0:W,     0, :]
    e01 = y[:, 0:H,     1:W + 1, 1, :]
    e10 = y[:, 1:H + 1, 0:W,     2, :]
    e11 = y[:, 1:H + 1, 1:W + 1, 3, :]
    even = jnp.stack([e00, e01], axis=3).reshape(N, H, 2 * W, Cout)
    odd = jnp.stack([e10, e11], axis=3).reshape(N, H, 2 * W, Cout)
    return jnp.stack([even, odd], axis=2).reshape(N, 2 * H, 2 * W, Cout)


# ------------------------------- Parameters -------------------------------
def init_params(key):
    cn = 64
    ks = jax.random.split(key, 4)

    def w(k, cin, cout):
        # deterministic DCGAN-style init; ConvTranspose2d weight is (Cin, Cout, kH, kW)
        return 0.02 * jax.random.normal(k, (cin, cout, 4, 4), jnp.float32)

    return {
        "w1": w(ks[0], cn * 4, cn * 4),
        "g1": jnp.ones((cn * 4,), jnp.float32), "b1": jnp.zeros((cn * 4,), jnp.float32),
        "w2": w(ks[1], cn * 4, cn * 2),
        "g2": jnp.ones((cn * 2,), jnp.float32), "b2": jnp.zeros((cn * 2,), jnp.float32),
        "w3": w(ks[2], cn * 2, cn),
        "g3": jnp.ones((cn,), jnp.float32), "b3": jnp.zeros((cn,), jnp.float32),
        "w4": w(ks[3], cn, 3),
    }


# ------------------------------- Forward -------------------------------
@jax.jit
def dcgan_generator_forward(z, params):
    # matches DCGAN_Generator.forward: input = z.view(-1, 256, 1, 1)
    x = z.reshape(-1, 256)                                   # (N, 256)
    x = deconv_1x1_to_4x4(x, params["w1"])                   # (N, 4, 4, 256)
    x = batchnorm_relu(x, params["g1"], params["b1"])
    x = deconv_s2_k4_p1(x, params["w2"])                     # (N, 8, 8, 128)
    x = batchnorm_relu(x, params["g2"], params["b2"])
    x = deconv_s2_k4_p1(x, params["w3"])                     # (N, 16, 16, 64)
    x = batchnorm_relu(x, params["g3"], params["b3"])
    x = deconv_s2_k4_p1(x, params["w4"], activation="tanh")  # (N, 32, 32, 3), tanh fused
    return jnp.transpose(x, (0, 3, 1, 2))                    # NCHW (N, 3, 32, 32)


if __name__ == "__main__":
    key = jax.random.PRNGKey(0)
    k_z, k_w = jax.random.split(key)
    z = jax.random.normal(k_z, (2, 256, 1, 1), jnp.float32)
    params = init_params(k_w)
    out = jax.block_until_ready(dcgan_generator_forward(z, params))
    assert out.shape == (2, 3, 32, 32), out.shape
    assert bool(jnp.all(jnp.isfinite(out)))
    assert bool(jnp.all(jnp.abs(out) <= 1.0))   # tanh-bounded output
    print("KERNEL_OK")
</pallas_src>

<mosaic_0001>
module attributes {stable_mosaic.version = 11 : i64} {
  func.func @kernel(%arg0: i32, %arg1: i32, %arg2: i32, %arg3: memref<8x256xbf16, #tpu.memory_space<vmem>>, %arg4: memref<256x512xbf16, #tpu.memory_space<vmem>>, %arg5: memref<8x512xf32, #tpu.memory_space<vmem>>, %arg6: memref<8x512xf32, #tpu.memory_space<vmem>>) attributes {dimension_semantics = [#tpu.dimension_semantics<parallel>, #tpu.dimension_semantics<parallel>, #tpu.dimension_semantics<arbitrary>], iteration_bounds = array<i64: 1, 8, 1>, scalar_prefetch = 0 : i64, scratch_operands = 1 : i64, tpu.core_type = #tpu.core_type<tc>, window_params = [{transform_indices = @transform_0, window_bounds = array<i64: 8, 256>}, {transform_indices = @transform_1, window_bounds = array<i64: 256, 512>}, {transform_indices = @transform_2, window_bounds = array<i64: 8, 512>}]} {
    %c0_i32 = arith.constant 0 : i32
    %0 = arith.cmpi eq, %arg2, %c0_i32 : i32
    %1 = arith.extui %0 : i1 to i32
    %c0_i32_0 = arith.constant 0 : i32
    %2 = arith.cmpi ne, %1, %c0_i32_0 : i32
    scf.if %2 {
      %cst_10 = arith.constant 0.000000e+00 : f32
      %12 = vector.broadcast %cst_10 : f32 to vector<8x512xf32>
      %c0_11 = arith.constant 0 : index
      %c0_12 = arith.constant 0 : index
      %13 = vector.load %arg6[%c0_11, %c0_12] : memref<8x512xf32, #tpu.memory_space<vmem>>, vector<8x512xf32>
      tpu.vector_store %arg6[%c0_11, %c0_12], %12 {strides = array<i32>} : memref<8x512xf32, #tpu.memory_space<vmem>>, vector<8x512xf32>,
    } else {
    }
    %c0 = arith.constant 0 : index
    %c0_1 = arith.constant 0 : index
    %3 = vector.load %arg6[%c0, %c0_1] : memref<8x512xf32, #tpu.memory_space<vmem>>, vector<8x512xf32>
    %c0_2 = arith.constant 0 : index
    %c0_3 = arith.constant 0 : index
    %4 = vector.load %arg3[%c0_2, %c0_3] : memref<8x256xbf16, #tpu.memory_space<vmem>>, vector<8x256xbf16>
    %c0_4 = arith.constant 0 : index
    %c0_5 = arith.constant 0 : index
    %5 = vector.load %arg4[%c0_4, %c0_5] : memref<256x512xbf16, #tpu.memory_space<vmem>>, vector<256x512xbf16>
    %cst = arith.constant dense<0.000000e+00> : vector<8x512xf32>
    %6 = tpu.matmul %4, %5, %cst {dimension_numbers = #tpu.dot_dimension_numbers<[1], [0], [0], [1], [0, 0, 1, 1], [], []>} : vector<8x256xbf16>, vector<256x512xbf16>, vector<8x512xf32> -> vector<8x512xf32>
    %7 = arith.addf %3, %6 : vector<8x512xf32>
    %c0_6 = arith.constant 0 : index
    %c0_7 = arith.constant 0 : index
    %8 = vector.load %arg6[%c0_6, %c0_7] : memref<8x512xf32, #tpu.memory_space<vmem>>, vector<8x512xf32>
    tpu.vector_store %arg6[%c0_6, %c0_7], %7 {strides = array<i32>} : memref<8x512xf32, #tpu.memory_space<vmem>>, vector<8x512xf32>,
    %c0_i32_8 = arith.constant 0 : i32
    %9 = arith.cmpi eq, %arg2, %c0_i32_8 : i32
    %10 = arith.extui %9 : i1 to i32
    %c0_i32_9 = arith.constant 0 : i32
    %11 = arith.cmpi ne, %10, %c0_i32_9 : i32
    scf.if %11 {
      %c0_10 = arith.constant 0 : index
      %c0_11 = arith.constant 0 : index
      %12 = vector.load %arg6[%c0_10, %c0_11] : memref<8x512xf32, #tpu.memory_space<vmem>>, vector<8x512xf32>
      %c0_12 = arith.constant 0 : index
      %c0_13 = arith.constant 0 : index
      %13 = vector.load %arg5[%c0_12, %c0_13] : memref<8x512xf32, #tpu.memory_space<vmem>>, vector<8x512xf32>
      tpu.vector_store %arg5[%c0_12, %c0_13], %12 {strides = array<i32>} : memref<8x512xf32, #tpu.memory_space<vmem>>, vector<8x512xf32>,
    } else {
    }
    return
  }
  func.func @transform_0(%arg0: i32, %arg1: i32, %arg2: i32) -> (i32, i32) {
    %c0_i32 = arith.constant 0 : i32
    return %arg0, %arg2 : i32, i32
  }
  func.func @transform_1(%arg0: i32, %arg1: i32, %arg2: i32) -> (i32, i32) {
    %c0_i32 = arith.constant 0 : i32
    return %arg2, %arg1 : i32, i32
  }
  func.func @transform_2(%arg0: i32, %arg1: i32, %arg2: i32) -> (i32, i32) {
    %c0_i32 = arith.constant 0 : i32
    return %arg0, %arg1 : i32, i32
  }
}

module attributes {stable_mosaic.version = 11 : i64} {
  func.func @_bn_relu_kernel(%arg0: i32, %arg1: memref<32x128xf32, #tpu.memory_space<vmem>>, %arg2: memref<1x128xf32, #tpu.memory_space<vmem>>, %arg3: memref<1x128xf32, #tpu.memory_space<vmem>>, %arg4: memref<32x128xf32, #tpu.memory_space<vmem>>) attributes {dimension_semantics = [#tpu.dimension_semantics<parallel>], iteration_bounds = array<i64: 2>, scalar_prefetch = 0 : i64, scratch_operands = 0 : i64, tpu.core_type = #tpu.core_type<tc>, window_params = [{transform_indices = @transform_0, window_bounds = array<i64: 32, 128>}, {transform_indices = @transform_1, window_bounds = array<i64: 1, 128>}, {transform_indices = @transform_2, window_bounds = array<i64: 1, 128>}, {transform_indices = @transform_3, window_bounds = array<i64: 32, 128>}]} {
    %c0 = arith.constant 0 : index
    %c0_0 = arith.constant 0 : index
    %0 = vector.load %arg1[%c0, %c0_0] : memref<32x128xf32, #tpu.memory_space<vmem>>, vector<32x128xf32>
    %cst = arith.constant dense<0.000000e+00> : vector<128xf32>
    %1 = vector.multi_reduction <add>, %0, %cst [0] : vector<32x128xf32> to vector<128xf32>
    %2 = vector.shape_cast %1 : vector<128xf32> to vector<1x128xf32>
    %cst_1 = arith.constant 3.200000e+01 : f32
    %3 = vector.broadcast %cst_1 : f32 to vector<1x128xf32>
    %4 = arith.divf %2, %3 : vector<1x128xf32>
    %5 = vector.broadcast %4 : vector<1x128xf32> to vector<32x128xf32>
    %6 = arith.subf %0, %5 : vector<32x128xf32>
    %7 = arith.mulf %6, %6 : vector<32x128xf32>
    %cst_2 = arith.constant dense<0.000000e+00> : vector<128xf32>
    %8 = vector.multi_reduction <add>, %7, %cst_2 [0] : vector<32x128xf32> to vector<128xf32>
    %9 = vector.shape_cast %8 : vector<128xf32> to vector<1x128xf32>
    %cst_3 = arith.constant 3.200000e+01 : f32
    %10 = vector.broadcast %cst_3 : f32 to vector<1x128xf32>
    %11 = arith.divf %9, %10 : vector<1x128xf32>
    %cst_4 = arith.constant 9.99999974E-6 : f32
    %12 = vector.broadcast %cst_4 : f32 to vector<1x128xf32>
    %13 = arith.addf %11, %12 : vector<1x128xf32>
    %14 = math.rsqrt %13 : vector<1x128xf32>
    %15 = vector.broadcast %4 : vector<1x128xf32> to vector<32x128xf32>
    %16 = arith.subf %0, %15 : vector<32x128xf32>
    %17 = vector.broadcast %14 : vector<1x128xf32> to vector<32x128xf32>
    %18 = arith.mulf %16, %17 : vector<32x128xf32>
    %c0_5 = arith.constant 0 : index
    %c0_6 = arith.constant 0 : index
    %19 = vector.load %arg2[%c0_5, %c0_6] : memref<1x128xf32, #tpu.memory_space<vmem>>, vector<1x128xf32>
    %20 = vector.broadcast %19 : vector<1x128xf32> to vector<32x128xf32>
    %21 = arith.mulf %18, %20 : vector<32x128xf32>
    %c0_7 = arith.constant 0 : index
    %c0_8 = arith.constant 0 : index
    %22 = vector.load %arg3[%c0_7, %c0_8] : memref<1x128xf32, #tpu.memory_space<vmem>>, vector<1x128xf32>
    %23 = vector.broadcast %22 : vector<1x128xf32> to vector<32x128xf32>
    %24 = arith.addf %21, %23 : vector<32x128xf32>
    %cst_9 = arith.constant 0.000000e+00 : f32
    %25 = vector.broadcast %cst_9 : f32 to vector<32x128xf32>
    %26 = arith.maximumf %24, %25 : vector<32x128xf32>
    %c0_10 = arith.constant 0 : index
    %c0_11 = arith.constant 0 : index
    %27 = vector.load %arg4[%c0_10, %c0_11] : memref<32x128xf32, #tpu.memory_space<vmem>>, vector<32x128xf32>
    tpu.vector_store %arg4[%c0_10, %c0_11], %26 {strides = array<i32>} : memref<32x128xf32, #tpu.memory_space<vmem>>, vector<32x128xf32>,
    return
  }
  func.func @transform_0(%arg0: i32) -> (i32, i32) {
    %c0_i32 = arith.constant 0 : i32
    %c0_i32_0 = arith.constant 0 : i32
    return %c0_i32, %arg0 : i32, i32
  }
  func.func @transform_1(%arg0: i32) -> (i32, i32) {
    %c0_i32 = arith.constant 0 : i32
    %c0_i32_0 = arith.constant 0 : i32
    return %c0_i32, %arg0 : i32, i32
  }
  func.func @transform_2(%arg0: i32) -> (i32, i32) {
    %c0_i32 = arith.constant 0 : i32
    %c0_i32_0 = arith.constant 0 : i32
    return %c0_i32, %arg0 : i32, i32
  }
  func.func @transform_3(%arg0: i32) -> (i32, i32) {
    %c0_i32 = arith.constant 0 : i32
    %c0_i32_0 = arith.constant 0 : i32
    return %c0_i32, %arg0 : i32, i32
  }
}

module attributes {stable_mosaic.version = 11 : i64} {
  func.func @kernel(%arg0: i32, %arg1: i32, %arg2: i32, %arg3: memref<56x512xbf16, #tpu.memory_space<vmem>>, %arg4: memref<512x512xbf16, #tpu.memory_space<vmem>>, %arg5: memref<56x512xf32, #tpu.memory_space<vmem>>, %arg6: memref<56x512xf32, #tpu.memory_space<vmem>>) attributes {dimension_semantics = [#tpu.dimension_semantics<parallel>, #tpu.dimension_semantics<parallel>, #tpu.dimension_semantics<arbitrary>], iteration_bounds = array<i64: 1, 1, 2>, scalar_prefetch = 0 : i64, scratch_operands = 1 : i64, tpu.core_type = #tpu.core_type<tc>, window_params = [{transform_indices = @transform_0, window_bounds = array<i64: 56, 512>}, {transform_indices = @transform_1, window_bounds = array<i64: 512, 512>}, {transform_indices = @transform_2, window_bounds = array<i64: 56, 512>}]} {
    %c0_i32 = arith.constant 0 : i32
    %0 = arith.cmpi eq, %arg2, %c0_i32 : i32
    %1 = arith.extui %0 : i1 to i32
    %c0_i32_0 = arith.constant 0 : i32
    %2 = arith.cmpi ne, %1, %c0_i32_0 : i32
    scf.if %2 {
      %cst_9 = arith.constant 0.000000e+00 : f32
      %12 = vector.broadcast %cst_9 : f32 to vector<56x512xf32>
      %c0_10 = arith.constant 0 : index
      %c0_11 = arith.constant 0 : index
      %13 = vector.load %arg6[%c0_10, %c0_11] : memref<56x512xf32, #tpu.memory_space<vmem>>, vector<56x512xf32>
      tpu.vector_store %arg6[%c0_10, %c0_11], %12 {strides = array<i32>} : memref<56x512xf32, #tpu.memory_space<vmem>>, vector<56x512xf32>,
    } else {
    }
    %c0 = arith.constant 0 : index
    %c0_1 = arith.constant 0 : index
    %3 = vector.load %arg6[%c0, %c0_1] : memref<56x512xf32, #tpu.memory_space<vmem>>, vector<56x512xf32>
    %c0_2 = arith.constant 0 : index
    %c0_3 = arith.constant 0 : index
    %4 = vector.load %arg3[%c0_2, %c0_3] : memref<56x512xbf16, #tpu.memory_space<vmem>>, vector<56x512xbf16>
    %c0_4 = arith.constant 0 : index
    %c0_5 = arith.constant 0 : index
    %5 = vector.load %arg4[%c0_4, %c0_5] : memref<512x512xbf16, #tpu.memory_space<vmem>>, vector<512x512xbf16>
    %cst = arith.constant dense<0.000000e+00> : vector<56x512xf32>
    %6 = tpu.matmul %4, %5, %cst {dimension_numbers = #tpu.dot_dimension_numbers<[1], [0], [0], [1], [0, 0, 1, 1], [], []>} : vector<56x512xbf16>, vector<512x512xbf16>, vector<56x512xf32> -> vector<56x512xf32>
    %7 = arith.addf %3, %6 : vector<56x512xf32>
    %c0_6 = arith.constant 0 : index
    %c0_7 = arith.constant 0 : index
    %8 = vector.load %arg6[%c0_6, %c0_7] : memref<56x512xf32, #tpu.memory_space<vmem>>, vector<56x512xf32>
    tpu.vector_store %arg6[%c0_6, %c0_7], %7 {strides = array<i32>} : memref<56x512xf32, #tpu.memory_space<vmem>>, vector<56x512xf32>,
    %c1_i32 = arith.constant 1 : i32
    %9 = arith.cmpi eq, %arg2, %c1_i32 : i32
    %10 = arith.extui %9 : i1 to i32
    %c0_i32_8 = arith.constant 0 : i32
    %11 = arith.cmpi ne, %10, %c0_i32_8 : i32
    scf.if %11 {
      %c0_9 = arith.constant 0 : index
      %c0_10 = arith.constant 0 : index
      %12 = vector.load %arg6[%c0_9, %c0_10] : memref<56x512xf32, #tpu.memory_space<vmem>>, vector<56x512xf32>
      %c0_11 = arith.constant 0 : index
      %c0_12 = arith.constant 0 : index
      %13 = vector.load %arg5[%c0_11, %c0_12] : memref<56x512xf32, #tpu.memory_space<vmem>>, vector<56x512xf32>
      tpu.vector_store %arg5[%c0_11, %c0_12], %12 {strides = array<i32>} : memref<56x512xf32, #tpu.memory_space<vmem>>, vector<56x512xf32>,
    } else {
    }
    return
  }
  func.func @transform_0(%arg0: i32, %arg1: i32, %arg2: i32) -> (i32, i32) {
    %c0_i32 = arith.constant 0 : i32
    return %arg0, %arg2 : i32, i32
  }
  func.func @transform_1(%arg0: i32, %arg1: i32, %arg2: i32) -> (i32, i32) {
    %c0_i32 = arith.constant 0 : i32
    return %arg2, %arg1 : i32, i32
  }
  func.func @transform_2(%arg0: i32, %arg1: i32, %arg2: i32) -> (i32, i32) {
    %c0_i32 = arith.constant 0 : i32
    return %arg0, %arg1 : i32, i32
  }
}

module attributes {stable_mosaic.version = 11 : i64} {
  func.func @_bn_relu_kernel(%arg0: i32, %arg1: memref<128x128xf32, #tpu.memory_space<vmem>>, %arg2: memref<1x128xf32, #tpu.memory_space<vmem>>, %arg3: memref<1x128xf32, #tpu.memory_space<vmem>>, %arg4: memref<128x128xf32, #tpu.memory_space<vmem>>) attributes {dimension_semantics = [#tpu.dimension_semantics<parallel>], iteration_bounds = array<i64: 1>, scalar_prefetch = 0 : i64, scratch_operands = 0 : i64, tpu.core_type = #tpu.core_type<tc>, window_params = [{transform_indices = @transform_0, window_bounds = array<i64: 128, 128>}, {transform_indices = @transform_1, window_bounds = array<i64: 1, 128>}, {transform_indices = @transform_2, window_bounds = array<i64: 1, 128>}, {transform_indices = @transform_3, window_bounds = array<i64: 128, 128>}]} {
    %c0 = arith.constant 0 : index
    %c0_0 = arith.constant 0 : index
    %0 = vector.load %arg1[%c0, %c0_0] : memref<128x128xf32, #tpu.memory_space<vmem>>, vector<128x128xf32>
    %cst = arith.constant dense<0.000000e+00> : vector<128xf32>
    %1 = vector.multi_reduction <add>, %0, %cst [0] : vector<128x128xf32> to vector<128xf32>
    %2 = vector.shape_cast %1 : vector<128xf32> to vector<1x128xf32>
    %cst_1 = arith.constant 1.280000e+02 : f32
    %3 = vector.broadcast %cst_1 : f32 to vector<1x128xf32>
    %4 = arith.divf %2, %3 : vector<1x128xf32>
    %5 = vector.broadcast %4 : vector<1x128xf32> to vector<128x128xf32>
    %6 = arith.subf %0, %5 : vector<128x128xf32>
    %7 = arith.mulf %6, %6 : vector<128x128xf32>
    %cst_2 = arith.constant dense<0.000000e+00> : vector<128xf32>
    %8 = vector.multi_reduction <add>, %7, %cst_2 [0] : vector<128x128xf32> to vector<128xf32>
    %9 = vector.shape_cast %8 : vector<128xf32> to vector<1x128xf32>
    %cst_3 = arith.constant 1.280000e+02 : f32
    %10 = vector.broadcast %cst_3 : f32 to vector<1x128xf32>
    %11 = arith.divf %9, %10 : vector<1x128xf32>
    %cst_4 = arith.constant 9.99999974E-6 : f32
    %12 = vector.broadcast %cst_4 : f32 to vector<1x128xf32>
    %13 = arith.addf %11, %12 : vector<1x128xf32>
    %14 = math.rsqrt %13 : vector<1x128xf32>
    %15 = vector.broadcast %4 : vector<1x128xf32> to vector<128x128xf32>
    %16 = arith.subf %0, %15 : vector<128x128xf32>
    %17 = vector.broadcast %14 : vector<1x128xf32> to vector<128x128xf32>
    %18 = arith.mulf %16, %17 : vector<128x128xf32>
    %c0_5 = arith.constant 0 : index
    %c0_6 = arith.constant 0 : index
    %19 = vector.load %arg2[%c0_5, %c0_6] : memref<1x128xf32, #tpu.memory_space<vmem>>, vector<1x128xf32>
    %20 = vector.broadcast %19 : vector<1x128xf32> to vector<128x128xf32>
    %21 = arith.mulf %18, %20 : vector<128x128xf32>
    %c0_7 = arith.constant 0 : index
    %c0_8 = arith.constant 0 : index
    %22 = vector.load %arg3[%c0_7, %c0_8] : memref<1x128xf32, #tpu.memory_space<vmem>>, vector<1x128xf32>
    %23 = vector.broadcast %22 : vector<1x128xf32> to vector<128x128xf32>
    %24 = arith.addf %21, %23 : vector<128x128xf32>
    %cst_9 = arith.constant 0.000000e+00 : f32
    %25 = vector.broadcast %cst_9 : f32 to vector<128x128xf32>
    %26 = arith.maximumf %24, %25 : vector<128x128xf32>
    %c0_10 = arith.constant 0 : index
    %c0_11 = arith.constant 0 : index
    %27 = vector.load %arg4[%c0_10, %c0_11] : memref<128x128xf32, #tpu.memory_space<vmem>>, vector<128x128xf32>
    tpu.vector_store %arg4[%c0_10, %c0_11], %26 {strides = array<i32>} : memref<128x128xf32, #tpu.memory_space<vmem>>, vector<128x128xf32>,
    return
  }
  func.func @transform_0(%arg0: i32) -> (i32, i32) {
    %c0_i32 = arith.constant 0 : i32
    %c0_i32_0 = arith.constant 0 : i32
    return %c0_i32, %arg0 : i32, i32
  }
  func.func @transform_1(%arg0: i32) -> (i32, i32) {
    %c0_i32 = arith.constant 0 : i32
    %c0_i32_0 = arith.constant 0 : i32
    return %c0_i32, %arg0 : i32, i32
  }
  func.func @transform_2(%arg0: i32) -> (i32, i32) {
    %c0_i32 = arith.constant 0 : i32
    %c0_i32_0 = arith.constant 0 : i32
    return %c0_i32, %arg0 : i32, i32
  }
  func.func @transform_3(%arg0: i32) -> (i32, i32) {
    %c0_i32 = arith.constant 0 : i32
    %c0_i32_0 = arith.constant 0 : i32
    return %c0_i32, %arg0 : i32, i32
  }
}

module attributes {stable_mosaic.version = 11 : i64} {
  func.func @kernel(%arg0: i32, %arg1: i32, %arg2: i32, %arg3: memref<128x512xbf16, #tpu.memory_space<vmem>>, %arg4: memref<512x128xbf16, #tpu.memory_space<vmem>>, %arg5: memref<128x128xf32, #tpu.memory_space<vmem>>, %arg6: memref<128x128xf32, #tpu.memory_space<vmem>>) attributes {dimension_semantics = [#tpu.dimension_semantics<parallel>, #tpu.dimension_semantics<parallel>, #tpu.dimension_semantics<arbitrary>], iteration_bounds = array<i64: 2, 2, 1>, scalar_prefetch = 0 : i64, scratch_operands = 1 : i64, tpu.core_type = #tpu.core_type<tc>, window_params = [{transform_indices = @transform_0, window_bounds = array<i64: 128, 512>}, {transform_indices = @transform_1, window_bounds = array<i64: 512, 128>}, {transform_indices = @transform_2, window_bounds = array<i64: 128, 128>}]} {
    %c0_i32 = arith.constant 0 : i32
    %0 = arith.cmpi eq, %arg2, %c0_i32 : i32
    %1 = arith.extui %0 : i1 to i32
    %c0_i32_0 = arith.constant 0 : i32
    %2 = arith.cmpi ne, %1, %c0_i32_0 : i32
    scf.if %2 {
      %cst_10 = arith.constant 0.000000e+00 : f32
      %12 = vector.broadcast %cst_10 : f32 to vector<128x128xf32>
      %c0_11 = arith.constant 0 : index
      %c0_12 = arith.constant 0 : index
      %13 = vector.load %arg6[%c0_11, %c0_12] : memref<128x128xf32, #tpu.memory_space<vmem>>, vector<128x128xf32>
      tpu.vector_store %arg6[%c0_11, %c0_12], %12 {strides = array<i32>} : memref<128x128xf32, #tpu.memory_space<vmem>>, vector<128x128xf32>,
    } else {
    }
    %c0 = arith.constant 0 : index
    %c0_1 = arith.constant 0 : index
    %3 = vector.load %arg6[%c0, %c0_1] : memref<128x128xf32, #tpu.memory_space<vmem>>, vector<128x128xf32>
    %c0_2 = arith.constant 0 : index
    %c0_3 = arith.constant 0 : index
    %4 = vector.load %arg3[%c0_2, %c0_3] : memref<128x512xbf16, #tpu.memory_space<vmem>>, vector<128x512xbf16>
    %c0_4 = arith.constant 0 : index
    %c0_5 = arith.constant 0 : index
    %5 = vector.load %arg4[%c0_4, %c0_5] : memref<512x128xbf16, #tpu.memory_space<vmem>>, vector<512x128xbf16>
    %cst = arith.constant dense<0.000000e+00> : vector<128x128xf32>
    %6 = tpu.matmul %4, %5, %cst {dimension_numbers = #tpu.dot_dimension_numbers<[1], [0], [0], [1], [0, 0, 1, 1], [], []>} : vector<128x512xbf16>, vector<512x128xbf16>, vector<128x128xf32> -> vector<128x128xf32>
    %7 = arith.addf %3, %6 : vector<128x128xf32>
    %c0_6 = arith.constant 0 : index
    %c0_7 = arith.constant 0 : index
    %8 = vector.load %arg6[%c0_6, %c0_7] : memref<128x128xf32, #tpu.memory_space<vmem>>, vector<128x128xf32>
    tpu.vector_store %arg6[%c0_6, %c0_7], %7 {strides = array<i32>} : memref<128x128xf32, #tpu.memory_space<vmem>>, vector<128x128xf32>,
    %c0_i32_8 = arith.constant 0 : i32
    %9 = arith.cmpi eq, %arg2, %c0_i32_8 : i32
    %10 = arith.extui %9 : i1 to i32
    %c0_i32_9 = arith.constant 0 : i32
    %11 = arith.cmpi ne, %10, %c0_i32_9 : i32
    scf.if %11 {
      %c0_10 = arith.constant 0 : index
      %c0_11 = arith.constant 0 : index
      %12 = vector.load %arg6[%c0_10, %c0_11] : memref<128x128xf32, #tpu.memory_space<vmem>>, vector<128x128xf32>
      %c0_12 = arith.constant 0 : index
      %c0_13 = arith.constant 0 : index
      %13 = vector.load %arg5[%c0_12, %c0_13] : memref<128x128xf32, #tpu.memory_space<vmem>>, vector<128x128xf32>
      tpu.vector_store %arg5[%c0_12, %c0_13], %12 {strides = array<i32>} : memref<128x128xf32, #tpu.memory_space<vmem>>, vector<128x128xf32>,
    } else {
    }
    return
  }
  func.func @transform_0(%arg0: i32, %arg1: i32, %arg2: i32) -> (i32, i32) {
    %c0_i32 = arith.constant 0 : i32
    return %arg0, %arg2 : i32, i32
  }
  func.func @transform_1(%arg0: i32, %arg1: i32, %arg2: i32) -> (i32, i32) {
    %c0_i32 = arith.constant 0 : i32
    return %arg2, %arg1 : i32, i32
  }
  func.func @transform_2(%arg0: i32, %arg1: i32, %arg2: i32) -> (i32, i32) {
    %c0_i32 = arith.constant 0 : i32
    return %arg0, %arg1 : i32, i32
  }
}

module attributes {stable_mosaic.version = 11 : i64} {
  func.func @_bn_relu_kernel(%arg0: i32, %arg1: memref<512x64xf32, #tpu.memory_space<vmem>>, %arg2: memref<1x64xf32, #tpu.memory_space<vmem>>, %arg3: memref<1x64xf32, #tpu.memory_space<vmem>>, %arg4: memref<512x64xf32, #tpu.memory_space<vmem>>) attributes {dimension_semantics = [#tpu.dimension_semantics<parallel>], iteration_bounds = array<i64: 1>, scalar_prefetch = 0 : i64, scratch_operands = 0 : i64, tpu.core_type = #tpu.core_type<tc>, window_params = [{transform_indices = @transform_0, window_bounds = array<i64: 512, 64>}, {transform_indices = @transform_1, window_bounds = array<i64: 1, 64>}, {transform_indices = @transform_2, window_bounds = array<i64: 1, 64>}, {transform_indices = @transform_3, window_bounds = array<i64: 512, 64>}]} {
    %c0 = arith.constant 0 : index
    %c0_0 = arith.constant 0 : index
    %0 = vector.load %arg1[%c0, %c0_0] : memref<512x64xf32, #tpu.memory_space<vmem>>, vector<512x64xf32>
    %cst = arith.constant dense<0.000000e+00> : vector<64xf32>
    %1 = vector.multi_reduction <add>, %0, %cst [0] : vector<512x64xf32> to vector<64xf32>
    %2 = vector.shape_cast %1 : vector<64xf32> to vector<1x64xf32>
    %cst_1 = arith.constant 5.120000e+02 : f32
    %3 = vector.broadcast %cst_1 : f32 to vector<1x64xf32>
    %4 = arith.divf %2, %3 : vector<1x64xf32>
    %5 = vector.broadcast %4 : vector<1x64xf32> to vector<512x64xf32>
    %6 = arith.subf %0, %5 : vector<512x64xf32>
    %7 = arith.mulf %6, %6 : vector<512x64xf32>
    %cst_2 = arith.constant dense<0.000000e+00> : vector<64xf32>
    %8 = vector.multi_reduction <add>, %7, %cst_2 [0] : vector<512x64xf32> to vector<64xf32>
    %9 = vector.shape_cast %8 : vector<64xf32> to vector<1x64xf32>
    %cst_3 = arith.constant 5.120000e+02 : f32
    %10 = vector.broadcast %cst_3 : f32 to vector<1x64xf32>
    %11 = arith.divf %9, %10 : vector<1x64xf32>
    %cst_4 = arith.constant 9.99999974E-6 : f32
    %12 = vector.broadcast %cst_4 : f32 to vector<1x64xf32>
    %13 = arith.addf %11, %12 : vector<1x64xf32>
    %14 = math.rsqrt %13 : vector<1x64xf32>
    %15 = vector.broadcast %4 : vector<1x64xf32> to vector<512x64xf32>
    %16 = arith.subf %0, %15 : vector<512x64xf32>
    %17 = vector.broadcast %14 : vector<1x64xf32> to vector<512x64xf32>
    %18 = arith.mulf %16, %17 : vector<512x64xf32>
    %c0_5 = arith.constant 0 : index
    %c0_6 = arith.constant 0 : index
    %19 = vector.load %arg2[%c0_5, %c0_6] : memref<1x64xf32, #tpu.memory_space<vmem>>, vector<1x64xf32>
    %20 = vector.broadcast %19 : vector<1x64xf32> to vector<512x64xf32>
    %21 = arith.mulf %18, %20 : vector<512x64xf32>
    %c0_7 = arith.constant 0 : index
    %c0_8 = arith.constant 0 : index
    %22 = vector.load %arg3[%c0_7, %c0_8] : memref<1x64xf32, #tpu.memory_space<vmem>>, vector<1x64xf32>
    %23 = vector.broadcast %22 : vector<1x64xf32> to vector<512x64xf32>
    %24 = arith.addf %21, %23 : vector<512x64xf32>
    %cst_9 = arith.constant 0.000000e+00 : f32
    %25 = vector.broadcast %cst_9 : f32 to vector<512x64xf32>
    %26 = arith.maximumf %24, %25 : vector<512x64xf32>
    %c0_10 = arith.constant 0 : index
    %c0_11 = arith.constant 0 : index
    %27 = vector.load %arg4[%c0_10, %c0_11] : memref<512x64xf32, #tpu.memory_space<vmem>>, vector<512x64xf32>
    tpu.vector_store %arg4[%c0_10, %c0_11], %26 {strides = array<i32>} : memref<512x64xf32, #tpu.memory_space<vmem>>, vector<512x64xf32>,
    return
  }
  func.func @transform_0(%arg0: i32) -> (i32, i32) {
    %c0_i32 = arith.constant 0 : i32
    %c0_i32_0 = arith.constant 0 : i32
    return %c0_i32, %arg0 : i32, i32
  }
  func.func @transform_1(%arg0: i32) -> (i32, i32) {
    %c0_i32 = arith.constant 0 : i32
    %c0_i32_0 = arith.constant 0 : i32
    return %c0_i32, %arg0 : i32, i32
  }
  func.func @transform_2(%arg0: i32) -> (i32, i32) {
    %c0_i32 = arith.constant 0 : i32
    %c0_i32_0 = arith.constant 0 : i32
    return %c0_i32, %arg0 : i32, i32
  }
  func.func @transform_3(%arg0: i32) -> (i32, i32) {
    %c0_i32 = arith.constant 0 : i32
    %c0_i32_0 = arith.constant 0 : i32
    return %c0_i32, %arg0 : i32, i32
  }
}

module attributes {stable_mosaic.version = 11 : i64} {
  func.func @kernel(%arg0: i32, %arg1: i32, %arg2: i32, %arg3: memref<128x256xbf16, #tpu.memory_space<vmem>>, %arg4: memref<256x128xbf16, #tpu.memory_space<vmem>>, %arg5: memref<128x128xf32, #tpu.memory_space<vmem>>, %arg6: memref<128x128xf32, #tpu.memory_space<vmem>>) attributes {dimension_semantics = [#tpu.dimension_semantics<parallel>, #tpu.dimension_semantics<parallel>, #tpu.dimension_semantics<arbitrary>], iteration_bounds = array<i64: 5, 1, 1>, scalar_prefetch = 0 : i64, scratch_operands = 1 : i64, tpu.core_type = #tpu.core_type<tc>, window_params = [{transform_indices = @transform_0, window_bounds = array<i64: 128, 256>}, {transform_indices = @transform_1, window_bounds = array<i64: 256, 128>}, {transform_indices = @transform_2, window_bounds = array<i64: 128, 128>}]} {
    %c0_i32 = arith.constant 0 : i32
    %0 = arith.cmpi eq, %arg2, %c0_i32 : i32
    %1 = arith.extui %0 : i1 to i32
    %c0_i32_0 = arith.constant 0 : i32
    %2 = arith.cmpi ne, %1, %c0_i32_0 : i32
    scf.if %2 {
      %cst_10 = arith.constant 0.000000e+00 : f32
      %12 = vector.broadcast %cst_10 : f32 to vector<128x128xf32>
      %c0_11 = arith.constant 0 : index
      %c0_12 = arith.constant 0 : index
      %13 = vector.load %arg6[%c0_11, %c0_12] : memref<128x128xf32, #tpu.memory_space<vmem>>, vector<128x128xf32>
      tpu.vector_store %arg6[%c0_11, %c0_12], %12 {strides = array<i32>} : memref<128x128xf32, #tpu.memory_space<vmem>>, vector<128x128xf32>,
    } else {
    }
    %c0 = arith.constant 0 : index
    %c0_1 = arith.constant 0 : index
    %3 = vector.load %arg6[%c0, %c0_1] : memref<128x128xf32, #tpu.memory_space<vmem>>, vector<128x128xf32>
    %c0_2 = arith.constant 0 : index
    %c0_3 = arith.constant 0 : index
    %4 = vector.load %arg3[%c0_2, %c0_3] : memref<128x256xbf16, #tpu.memory_space<vmem>>, vector<128x256xbf16>
    %c0_4 = arith.constant 0 : index
    %c0_5 = arith.constant 0 : index
    %5 = vector.load %arg4[%c0_4, %c0_5] : memref<256x128xbf16, #tpu.memory_space<vmem>>, vector<256x128xbf16>
    %cst = arith.constant dense<0.000000e+00> : vector<128x128xf32>
    %6 = tpu.matmul %4, %5, %cst {dimension_numbers = #tpu.dot_dimension_numbers<[1], [0], [0], [1], [0, 0, 1, 1], [], []>} : vector<128x256xbf16>, vector<256x128xbf16>, vector<128x128xf32> -> vector<128x128xf32>
    %7 = arith.addf %3, %6 : vector<128x128xf32>
    %c0_6 = arith.constant 0 : index
    %c0_7 = arith.constant 0 : index
    %8 = vector.load %arg6[%c0_6, %c0_7] : memref<128x128xf32, #tpu.memory_space<vmem>>, vector<128x128xf32>
    tpu.vector_store %arg6[%c0_6, %c0_7], %7 {strides = array<i32>} : memref<128x128xf32, #tpu.memory_space<vmem>>, vector<128x128xf32>,
    %c0_i32_8 = arith.constant 0 : i32
    %9 = arith.cmpi eq, %arg2, %c0_i32_8 : i32
    %10 = arith.extui %9 : i1 to i32
    %c0_i32_9 = arith.constant 0 : i32
    %11 = arith.cmpi ne, %10, %c0_i32_9 : i32
    scf.if %11 {
      %c0_10 = arith.constant 0 : index
      %c0_11 = arith.constant 0 : index
      %12 = vector.load %arg6[%c0_10, %c0_11] : memref<128x128xf32, #tpu.memory_space<vmem>>, vector<128x128xf32>
      %13 = math.tanh %12 : vector<128x128xf32>
      %c0_12 = arith.constant 0 : index
      %c0_13 = arith.constant 0 : index
      %14 = vector.load %arg5[%c0_12, %c0_13] : memref<128x128xf32, #tpu.memory_space<vmem>>, vector<128x128xf32>
      tpu.vector_store %arg5[%c0_12, %c0_13], %13 {strides = array<i32>} : memref<128x128xf32, #tpu.memory_space<vmem>>, vector<128x128xf32>,
    } else {
    }
    return
  }
  func.func @transform_0(%arg0: i32, %arg1: i32, %arg2: i32) -> (i32, i32) {
    %c0_i32 = arith.constant 0 : i32
    return %arg0, %arg2 : i32, i32
  }
  func.func @transform_1(%arg0: i32, %arg1: i32, %arg2: i32) -> (i32, i32) {
    %c0_i32 = arith.constant 0 : i32
    return %arg2, %arg1 : i32, i32
  }
  func.func @transform_2(%arg0: i32, %arg1: i32, %arg2: i32) -> (i32, i32) {
    %c0_i32 = arith.constant 0 : i32
    return %arg0, %arg1 : i32, i32
  }
}

</mosaic_0001>

<bundles_post_ra>
// kernel: dcgan_generator_forward.8
= control target key start
LH: loop header
LB: loop body
LE: loop exit
PB: predicated region body
PF: predicated region fallthrough
CT: control target
= control target key end

     0   :  { %s520_s12 = smov 0   ;;  %s522_s13 = smov 0   ;;  %s592_s0 = inlined_call_operand.vmem [shape: f32[32,256], index: 0, kind: input, shape index: {}]   ;;  %s593_s1 = inlined_call_operand.vmem [shape: f32[1,256], index: 1, kind: input, shape index: {}]   ;;  %s594_s2 = inlined_call_operand.vmem [shape: f32[1,256], index: 2, kind: input, shape index: {}]   ;;  %s595_s3 = inlined_call_operand.vmem [shape: f32[32,256], index: 3, kind: output, shape index: {}]  }
   0x1   :  { %s524_s14 = smov 0  }
   0x2 LB: > { %s536_s15 = sadd.s32 4294967295, %s498_s14   ;;  %s539_s16 = sadd.s32 1, %s498_s14   ;;  %s498_s14 = sphi %s524_s14, %s599_s14   ;;  %s494_s13 = sphi %s522_s13, %s598_s13   ;;  %s490_s12 = sphi %s520_s12, %s597_s12  }
   0x3   : > { %s17_s17 = ssub.s32 %s498_s14, %s539_s16  ;;  %s20_s18 = sadd.s32 1, %s494_s13 }
   0x4   : > { %p18_p0 = scmp.eq.s32.totalorder %s17_s17, 0  ;;  %p27_p1 = scmp.ne.s32.totalorder %s494_s13, %s490_s12 }
   0x5   : > { %p28_p2 = scmp.eq.s32.totalorder %s498_s14, 0  ;;  %p109_p3 = scmp.eq.s32.totalorder %s536_s15, 1 }
   0x6   : > { %s549_s19 = scalar_select %p18_p0, %s494_s13, %s20_s18  }
   0x7   : > { %p29_p4 = por %p28_p2, %p27_p1  ;;  %p551_p5 = por %p109_p3, %p27_p1 }
   0x8   : > { %p438_p6 = scmp.ge.s32.totalorder %s498_s14, 2 }
   0xa   : > { %131 = sbr.rel (%p438_p6) target bundleno = 24 (0x18), region = 16 }
  0x11   : > { %134 = sbr.rel (!%p29_p4) target bundleno = 24 (0x18), region = 20  ;;  %s136_s21 = sand.u32 (%p29_p4), 1, %s494_s13  }
  0x12   : > { %s440_s22 = sshll.u32 (%p29_p4), %s498_s14, 3  ;;  %s439_s23 = sshll.u32 (%p29_p4), %s136_s21, 5 }
  0x13   : > { %s140_s26 = scalar_lea.vmem (%p29_p4), %s592_s0, %s440_s22  ;;  %s138_s27 = scalar_lea.vmem (%p29_p4), [#allocation2], %s439_s23 }
  0x14   : > { %v174_v0 = vld [vmem:[%s140_s26] sm:$0xff] (%p29_p4)  ;;  %v176_v1 = vld [vmem:[%s140_s26 + $0x10] sm:$0xff] (%p29_p4) }
  0x15   : > { %v178_v2 = vld [vmem:[%s140_s26 + $0x20] sm:$0xff] (%p29_p4)  ;;  %175 = vst [vmem:[%s138_s27] sm:$0xff] (%p29_p4), %v174_v0  ;;  %177 = vst [vmem:[%s138_s27 + $0x8] sm:$0xff] (%p29_p4), %v176_v1  ;;  %v180_v3 = vld [vmem:[%s140_s26 + $0x30] sm:$0xff] (%p29_p4) }
  0x16   : > { %179 = vst [vmem:[%s138_s27 + $0x10] sm:$0xff] (%p29_p4), %v178_v2  ;;  %181 = vst [vmem:[%s138_s27 + $0x18] sm:$0xff] (%p29_p4), %v180_v3 }
  0x18 PF: > { %p441_p7 = scmp.ge.s32.totalorder %s498_s14, 1  ;;  %p198_p8 = scmp.lt.s32.totalorder %s498_s14, 3 }
  0x1a   : > { %p199_p9 = pnand %p441_p7, %p198_p8 }
  0x1b   : > { %s205_s28 = sand.u32 (!%p199_p9), 1, %s490_s12   ;;  %p233_p10 = scmp.lt.s32.totalorder (!%p199_p9), %s536_s15, 1 }
  0x1c   : > { %202 = sbr.rel (%p199_p9) target bundleno = 106 (0x6a), region = 66  ;;  %s564_s29 = sshll.u32 (!%p199_p9), %s205_s28, 5 }
  0x1d   : > { %s207_s30 = scalar_lea.vmem (!%p199_p9), [#allocation2], %s564_s29  ;;  %s232_s11 = scalar_lea.vmem (!%p199_p9), [#allocation3], %s564_s29 }
  0x1e   : > { %v239_v4 = vld [vmem:[%s207_s30] sm:$0xff] (!%p199_p9)  ;;  %v240_v5 = vld [vmem:[%s207_s30 + $0x8] sm:$0xff] (!%p199_p9)  ;;  %v241_v6 = vld [vmem:[%s207_s30 + $0x10] sm:$0xff] (!%p199_p9) }
  0x1f   : > { %v243_v7 = vadd.f32 (!%p199_p9), %v240_v5, %v239_v4  ;;  %v242_v8 = vld [vmem:[%s207_s30 + $0x18] sm:$0xff] (!%p199_p9) }
  0x21   : > { %v244_v9 = vadd.f32 (!%p199_p9), %v243_v7, %v241_v6 }
  0x23   : > { %v245_v10 = vadd.f32 %v244_v9, %v242_v8  ;;  %s234_s4 = scalar_select %p233_p10, %s536_s15, 1 }
  0x24   : > { %s447_s12 = sshll.u32 (%p551_p5), %s536_s15, 3 }
  0x25   : > { %v246_v11 = vrot.slane %v245_v10, 4  ;;  %s235_s7 = scalar_lea.vmem %s593_s1, %s234_s4  ;;  %s238_s10 = scalar_lea.vmem %s594_s2, %s234_s4 }
  0x26   : > { %v444_v38 = vld [vmem:[%s235_s7] ss:$0 sm:$0xff]  ;;  %s316_s18 = scalar_lea.vmem (%p551_p5), %s595_s3, %s447_s12 }
  0x27   : > { %v247_v12 = vadd.f32 %v246_v11, %v245_v10  ;;  %v445_v43 = vld [vmem:[%s238_s10] ss:$0 sm:$0xff] }
  0x29   : > { %v248_v13 = vrot.slane %v247_v12, 2 }
  0x2b   : > { %v249_v14 = vadd.f32 %v248_v13, %v247_v12 }
  0x2d   : > { %v250_v15 = vrot.slane %v249_v14, 1 }
  0x2f   : > { %v251_v16 = vadd.f32 %v250_v15, %v249_v14 }
  0x31   : > { %v253_v17 = vmul.f32 0.03125, %v251_v16 }
  0x33   : > { %v254_v18 = vsub.f32 %v239_v4, %v253_v17  ;;  %v255_v19 = vsub.f32 %v240_v5, %v253_v17  ;;  %v256_v20 = vsub.f32 %v241_v6, %v253_v17  ;;  %v257_v21 = vsub.f32 %v242_v8, %v253_v17 }
  0x35   : > { %v258_v22 = vmul.f32 %v254_v18, %v254_v18  ;;  %v259_v23 = vmul.f32 %v255_v19, %v255_v19  ;;  %v260_v24 = vmul.f32 %v256_v20, %v256_v20  ;;  %v261_v25 = vmul.f32 %v257_v21, %v257_v21 }
  0x37   : > { %v262_v26 = vadd.f32 %v259_v23, %v258_v22 }
  0x39   : > { %v263_v27 = vadd.f32 %v262_v26, %v260_v24 }
  0x3b   : > { %v264_v28 = vadd.f32 %v263_v27, %v261_v25 }
  0x3d   : > { %v265_v29 = vrot.slane %v264_v28, 4 }
  0x3f   : > { %v266_v30 = vadd.f32 %v265_v29, %v264_v28 }
  0x41   : > { %v267_v31 = vrot.slane %v266_v30, 2 }
  0x43   : > { %v268_v32 = vadd.f32 %v267_v31, %v266_v30 }
  0x45   : > { %v269_v33 = vrot.slane %v268_v32, 1 }
  0x47   : > { %v270_v34 = vadd.f32 %v269_v33, %v268_v32 }
  0x49   : > { %v271_v35 = vmul.f32 0.03125, %v270_v34 }
  0x4b   : > { %v272_v36 = vadd.f32 1e-05, %v271_v35 }
  0x4d   : > { %474 = vrsqrt.f32 %v272_v36 }
  0x57   : > { %v475_v37 = vpop.eup %474 }
  0x58   : > { %v274_v39 = vmul.f32 %v475_v37, %v254_v18  ;;  %v275_v40 = vmul.f32 %v475_v37, %v255_v19  ;;  %v276_v41 = vmul.f32 %v475_v37, %v256_v20  ;;  %v277_v42 = vmul.f32 %v475_v37, %v257_v21 }
  0x5a   : > { %v285_v44 = vmul.f32 %v444_v38, %v274_v39  ;;  %v286_v45 = vmul.f32 %v444_v38, %v275_v40  ;;  %v287_v46 = vmul.f32 %v444_v38, %v276_v41  ;;  %v288_v47 = vmul.f32 %v444_v38, %v277_v42 }
  0x5b   : > { %314 = sbr.rel (!%p551_p5) target bundleno = 106 (0x6a), region = 74 }
  0x5c   : > { %v296_v48 = vadd.f32 %v445_v43, %v285_v44  ;;  %v297_v49 = vadd.f32 %v445_v43, %v286_v45  ;;  %v298_v50 = vadd.f32 %v445_v43, %v287_v46  ;;  %v299_v51 = vadd.f32 %v445_v43, %v288_v47 }
  0x5e   : > { %v300_v52 = vmax.f32 %v296_v48, 0.0  ;;  %v301_v53 = vmax.f32 %v297_v49, 0.0  ;;  %v302_v54 = vmax.f32 %v298_v50, 0.0  ;;  %v303_v55 = vmax.f32 %v299_v51, 0.0 }
  0x60   : > { %304 = vst [vmem:[%s232_s11] sm:$0xff] %v300_v52  ;;  %305 = vst [vmem:[%s232_s11 + $0x8] sm:$0xff] %v301_v53 }
  0x61   : > { %306 = vst [vmem:[%s232_s11 + $0x10] sm:$0xff] %v302_v54  ;;  %307 = vst [vmem:[%s232_s11 + $0x18] sm:$0xff] %v303_v55 }
  0x67   : > { %v350_v56 = vld [vmem:[%s232_s11] sm:$0xff]  ;;  %v352_v57 = vld [vmem:[%s232_s11 + $0x8] sm:$0xff] }
  0x68   : > { %v354_v58 = vld [vmem:[%s232_s11 + $0x10] sm:$0xff]  ;;  %v356_v59 = vld [vmem:[%s232_s11 + $0x18] sm:$0xff]  ;;  %351 = vst [vmem:[%s316_s18] sm:$0xff] %v350_v56  ;;  %353 = vst [vmem:[%s316_s18 + $0x10] sm:$0xff] %v352_v57 }
  0x69   : > { %355 = vst [vmem:[%s316_s18 + $0x20] sm:$0xff] %v354_v58  ;;  %357 = vst [vmem:[%s316_s18 + $0x30] sm:$0xff] %v356_v59 }
  0x6a PF: > { %p10_p11 = scmp.ge.s32.totalorder %s539_s16, 4   ;;  %s597_s12 = smov %s494_s13 }
  0x6b   : > { %s598_s13 = smov %s549_s19  ;;  %s599_s14 = smov %s539_s16 }
  0x6c   :  { %12 = sbr.rel (!%p10_p11) target bundleno = 2 (0x2), region = 149 }

// kernel: dcgan_generator_forward.7
= control target key start
LH: loop header
LB: loop body
LE: loop exit
PB: predicated region body
PF: predicated region fallthrough
CT: control target
= control target key end

     0   :  { %s1256_s9 = smov 0   ;;  %s1258_s10 = smov 0   ;;  %s1528_s0 = inlined_call_operand.vmem [shape: bf16[8,256], index: 0, kind: input, shape index: {}]   ;;  %s1529_s1 = inlined_call_operand.vmem [shape: bf16[256,4096], index: 1, kind: input, shape index: {}]   ;;  %s1530_s2 = inlined_call_operand.vmem [shape: f32[8,4096], index: 2, kind: output, shape index: {}]  }
   0x1   :  { %s1260_s11 = smov 0   ;;  %s1262_s12 = smov 0  }
   0x2   :  { %s1264_s13 = smov 0  }
   0x3 LB: > { %s27_s14 = sadd.s32 1, %s1235_s12  ;;  %p75_p1 = scmp.ne.s32.totalorder %s1227_s10, %s1223_s9  ;;  %s1239_s13 = sphi %s1264_s13, %s12_s13   ;;  %s1235_s12 = sphi %s1262_s12, %s1534_s12   ;;  %s1231_s11 = sphi %s1260_s11, %s1533_s11   ;;  %s1227_s10 = sphi %s1258_s10, %s1532_s10   ;;  %s1223_s9 = sphi %s1256_s9, %s1531_s9  }
   0x4   : > { %p29_p0 = scmp.ge.s32.totalorder %s27_s14, 8  ;;  %p76_p2 = scmp.eq.s32.totalorder %s1239_s13, 0 }
   0x5   : > { %s68_s16 = sadd.s32 1, %s1227_s10  ;;  %p986_p5 = scmp.ge.s32.totalorder %s1239_s13, 8 }
   0x6   : > { %s1536_s14 = smov (%p29_p0, %s27_s14), 0  ;;  %p77_p3 = por %p76_p2, %p75_p1 }
   0x7   : > { %s64_s15 = ssub.s32 %s1235_s12, %s1536_s14  ;;  %142 = sbr.rel (%p986_p5) target bundleno = 50 (0x32), region = 20 }
   0x8   : > { %p66_p4 = scmp.eq.s32.totalorder %s64_s15, 0 }
   0xa   : > { %s1291_s17 = scalar_select %p66_p4, %s1227_s10, %s68_s16  }
   0xe   : > { %145 = sbr.rel (!%p77_p3) target bundleno = 50 (0x32), region = 24  ;;  %s147_s18 = sand.u32 (%p77_p3), 1, %s1227_s10  }
   0xf   : > { %s1062_s19 = sshll.u32 (%p77_p3), %s1235_s12, 4  ;;  %s987_s20 = sshll.u32 (%p77_p3), %s147_s18, 9 }
  0x10   : > { %s1299_s23 = scalar_lea.vmem (%p77_p3), %s1529_s1, %s1062_s19  ;;  %s1304_s24 = scalar_lea.vmem (%p77_p3), [#allocation3], %s987_s20 }
  0x11   : > { %v168_v0 = vld [vmem:[%s1299_s23] sm:$0xff] (%p77_p3)  ;;  %v170_v1 = vld [vmem:[%s1299_s23 + $0x8] sm:$0xff] (%p77_p3) }
  0x12   : > { %v172_v2 = vld [vmem:[%s1299_s23 + $0x80] sm:$0xff] (%p77_p3)  ;;  %169 = vst [vmem:[%s1304_s24] sm:$0xff] (%p77_p3), %v168_v0  ;;  %171 = vst [vmem:[%s1304_s24 + $0x8] sm:$0xff] (%p77_p3), %v170_v1  ;;  %v174_v3 = vld [vmem:[%s1299_s23 + $0x88] sm:$0xff] (%p77_p3) }
  0x13   : > { %173 = vst [vmem:[%s1304_s24 + $0x10] sm:$0xff] (%p77_p3), %v172_v2  ;;  %v176_v4 = vld [vmem:[%s1299_s23 + $0x100] sm:$0xff] (%p77_p3)  ;;  %v178_v5 = vld [vmem:[%s1299_s23 + $0x108] sm:$0xff] (%p77_p3)  ;;  %175 = vst [vmem:[%s1304_s24 + $0x18] sm:$0xff] (%p77_p3), %v174_v3 }
  0x14   : > { %177 = vst [vmem:[%s1304_s24 + $0x20] sm:$0xff] (%p77_p3), %v176_v4  ;;  %179 = vst [vmem:[%s1304_s24 + $0x28] sm:$0xff] (%p77_p3), %v178_v5  ;;  %v180_v6 = vld [vmem:[%s1299_s23 + $0x180] sm:$0xff] (%p77_p3)  ;;  %v182_v7 = vld [vmem:[%s1299_s23 + $0x188] sm:$0xff] (%p77_p3) }
  0x15   : > { %v184_v8 = vld [vmem:[%s1299_s23 + $0x200] sm:$0xff]  ;;  %181 = vst [vmem:[%s1304_s24 + $0x30] sm:$0xff] %v180_v6  ;;  %183 = vst [vmem:[%s1304_s24 + $0x38] sm:$0xff] %v182_v7  ;;  %v186_v9 = vld [vmem:[%s1299_s23 + $0x208] sm:$0xff] }
  0x16   : > { %185 = vst [vmem:[%s1304_s24 + $0x40] sm:$0xff] %v184_v8  ;;  %v188_v10 = vld [vmem:[%s1299_s23 + $0x280] sm:$0xff]  ;;  %v190_v11 = vld [vmem:[%s1299_s23 + $0x288] sm:$0xff]  ;;  %187 = vst [vmem:[%s1304_s24 + $0x48] sm:$0xff] %v186_v9 }
  0x17   : > { %189 = vst [vmem:[%s1304_s24 + $0x50] sm:$0xff] %v188_v10  ;;  %191 = vst [vmem:[%s1304_s24 + $0x58] sm:$0xff] %v190_v11  ;;  %v192_v12 = vld [vmem:[%s1299_s23 + $0x300] sm:$0xff]  ;;  %v194_v13 = vld [vmem:[%s1299_s23 + $0x308] sm:$0xff] }
  0x18   : > { %v196_v14 = vld [vmem:[%s1299_s23 + $0x380] sm:$0xff]  ;;  %193 = vst [vmem:[%s1304_s24 + $0x60] sm:$0xff] %v192_v12  ;;  %195 = vst [vmem:[%s1304_s24 + $0x68] sm:$0xff] %v194_v13  ;;  %v198_v15 = vld [vmem:[%s1299_s23 + $0x388] sm:$0xff] }
  0x19   : > { %197 = vst [vmem:[%s1304_s24 + $0x70] sm:$0xff] %v196_v14  ;;  %v200_v16 = vld [vmem:[%s1299_s23 + $0x400] sm:$0xff]  ;;  %v202_v17 = vld [vmem:[%s1299_s23 + $0x408] sm:$0xff]  ;;  %199 = vst [vmem:[%s1304_s24 + $0x78] sm:$0xff] %v198_v15 }
  0x1a   : > { %201 = vst [vmem:[%s1304_s24 + $0x80] sm:$0xff] %v200_v16  ;;  %203 = vst [vmem:[%s1304_s24 + $0x88] sm:$0xff] %v202_v17  ;;  %v204_v18 = vld [vmem:[%s1299_s23 + $0x480] sm:$0xff]  ;;  %v206_v19 = vld [vmem:[%s1299_s23 + $0x488] sm:$0xff] }
  0x1b   : > { %v208_v20 = vld [vmem:[%s1299_s23 + $0x500] sm:$0xff]  ;;  %205 = vst [vmem:[%s1304_s24 + $0x90] sm:$0xff] %v204_v18  ;;  %207 = vst [vmem:[%s1304_s24 + $0x98] sm:$0xff] %v206_v19  ;;  %v210_v21 = vld [vmem:[%s1299_s23 + $0x508] sm:$0xff] }
  0x1c   : > { %209 = vst [vmem:[%s1304_s24 + $0xa0] sm:$0xff] %v208_v20  ;;  %v212_v22 = vld [vmem:[%s1299_s23 + $0x580] sm:$0xff]  ;;  %v214_v23 = vld [vmem:[%s1299_s23 + $0x588] sm:$0xff]  ;;  %211 = vst [vmem:[%s1304_s24 + $0xa8] sm:$0xff] %v210_v21 }
  0x1d   : > { %213 = vst [vmem:[%s1304_s24 + $0xb0] sm:$0xff] %v212_v22  ;;  %215 = vst [vmem:[%s1304_s24 + $0xb8] sm:$0xff] %v214_v23  ;;  %v216_v24 = vld [vmem:[%s1299_s23 + $0x600] sm:$0xff]  ;;  %v218_v25 = vld [vmem:[%s1299_s23 + $0x608] sm:$0xff] }
  0x1e   : > { %v220_v26 = vld [vmem:[%s1299_s23 + $0x680] sm:$0xff]  ;;  %217 = vst [vmem:[%s1304_s24 + $0xc0] sm:$0xff] %v216_v24  ;;  %219 = vst [vmem:[%s1304_s24 + $0xc8] sm:$0xff] %v218_v25  ;;  %v222_v27 = vld [vmem:[%s1299_s23 + $0x688] sm:$0xff] }
  0x1f   : > { %221 = vst [vmem:[%s1304_s24 + $0xd0] sm:$0xff] %v220_v26  ;;  %v224_v28 = vld [vmem:[%s1299_s23 + $0x700] sm:$0xff]  ;;  %v226_v29 = vld [vmem:[%s1299_s23 + $0x708] sm:$0xff]  ;;  %223 = vst [vmem:[%s1304_s24 + $0xd8] sm:$0xff] %v222_v27 }
  0x20   : > { %225 = vst [vmem:[%s1304_s24 + $0xe0] sm:$0xff] %v224_v28  ;;  %227 = vst [vmem:[%s1304_s24 + $0xe8] sm:$0xff] %v226_v29  ;;  %v228_v30 = vld [vmem:[%s1299_s23 + $0x780] sm:$0xff]  ;;  %v230_v31 = vld [vmem:[%s1299_s23 + $0x788] sm:$0xff] }
  0x21   : > { %v232_v32 = vld [vmem:[%s1299_s23 + $0x800] sm:$0xff]  ;;  %229 = vst [vmem:[%s1304_s24 + $0xf0] sm:$0xff] %v228_v30  ;;  %231 = vst [vmem:[%s1304_s24 + $0xf8] sm:$0xff] %v230_v31  ;;  %v234_v33 = vld [vmem:[%s1299_s23 + $0x808] sm:$0xff] }
  0x22   : > { %233 = vst [vmem:[%s1304_s24 + $0x100] sm:$0xff] %v232_v32  ;;  %v236_v34 = vld [vmem:[%s1299_s23 + $0x880] sm:$0xff]  ;;  %v238_v35 = vld [vmem:[%s1299_s23 + $0x888] sm:$0xff]  ;;  %235 = vst [vmem:[%s1304_s24 + $0x108] sm:$0xff] %v234_v33 }
  0x23   : > { %237 = vst [vmem:[%s1304_s24 + $0x110] sm:$0xff] %v236_v34  ;;  %239 = vst [vmem:[%s1304_s24 + $0x118] sm:$0xff] %v238_v35  ;;  %v240_v36 = vld [vmem:[%s1299_s23 + $0x900] sm:$0xff]  ;;  %v242_v37 = vld [vmem:[%s1299_s23 + $0x908] sm:$0xff] }
  0x24   : > { %v244_v38 = vld [vmem:[%s1299_s23 + $0x980] sm:$0xff]  ;;  %241 = vst [vmem:[%s1304_s24 + $0x120] sm:$0xff] %v240_v36  ;;  %243 = vst [vmem:[%s1304_s24 + $0x128] sm:$0xff] %v242_v37  ;;  %v246_v39 = vld [vmem:[%s1299_s23 + $0x988] sm:$0xff] }
  0x25   : > { %245 = vst [vmem:[%s1304_s24 + $0x130] sm:$0xff] %v244_v38  ;;  %v248_v40 = vld [vmem:[%s1299_s23 + $0xa00] sm:$0xff]  ;;  %v250_v41 = vld [vmem:[%s1299_s23 + $0xa08] sm:$0xff]  ;;  %247 = vst [vmem:[%s1304_s24 + $0x138] sm:$0xff] %v246_v39 }
  0x26   : > { %249 = vst [vmem:[%s1304_s24 + $0x140] sm:$0xff] %v248_v40  ;;  %251 = vst [vmem:[%s1304_s24 + $0x148] sm:$0xff] %v250_v41  ;;  %v252_v42 = vld [vmem:[%s1299_s23 + $0xa80] sm:$0xff]  ;;  %v254_v43 = vld [vmem:[%s1299_s23 + $0xa88] sm:$0xff] }
  0x27   : > { %v256_v44 = vld [vmem:[%s1299_s23 + $0xb00] sm:$0xff]  ;;  %253 = vst [vmem:[%s1304_s24 + $0x150] sm:$0xff] %v252_v42  ;;  %255 = vst [vmem:[%s1304_s24 + $0x158] sm:$0xff] %v254_v43  ;;  %v258_v45 = vld [vmem:[%s1299_s23 + $0xb08] sm:$0xff] }
  0x28   : > { %257 = vst [vmem:[%s1304_s24 + $0x160] sm:$0xff] %v256_v44  ;;  %v260_v46 = vld [vmem:[%s1299_s23 + $0xb80] sm:$0xff]  ;;  %v262_v47 = vld [vmem:[%s1299_s23 + $0xb88] sm:$0xff]  ;;  %259 = vst [vmem:[%s1304_s24 + $0x168] sm:$0xff] %v258_v45 }
  0x29   : > { %261 = vst [vmem:[%s1304_s24 + $0x170] sm:$0xff] %v260_v46  ;;  %263 = vst [vmem:[%s1304_s24 + $0x178] sm:$0xff] %v262_v47  ;;  %v264_v48 = vld [vmem:[%s1299_s23 + $0xc00] sm:$0xff]  ;;  %v266_v49 = vld [vmem:[%s1299_s23 + $0xc08] sm:$0xff] }
  0x2a   : > { %v268_v50 = vld [vmem:[%s1299_s23 + $0xc80] sm:$0xff]  ;;  %265 = vst [vmem:[%s1304_s24 + $0x180] sm:$0xff] %v264_v48  ;;  %267 = vst [vmem:[%s1304_s24 + $0x188] sm:$0xff] %v266_v49  ;;  %v270_v51 = vld [vmem:[%s1299_s23 + $0xc88] sm:$0xff] }
  0x2b   : > { %269 = vst [vmem:[%s1304_s24 + $0x190] sm:$0xff] %v268_v50  ;;  %v272_v52 = vld [vmem:[%s1299_s23 + $0xd00] sm:$0xff]  ;;  %v274_v53 = vld [vmem:[%s1299_s23 + $0xd08] sm:$0xff]  ;;  %271 = vst [vmem:[%s1304_s24 + $0x198] sm:$0xff] %v270_v51 }
  0x2c   : > { %273 = vst [vmem:[%s1304_s24 + $0x1a0] sm:$0xff] %v272_v52  ;;  %275 = vst [vmem:[%s1304_s24 + $0x1a8] sm:$0xff] %v274_v53  ;;  %v276_v54 = vld [vmem:[%s1299_s23 + $0xd80] sm:$0xff]  ;;  %v278_v55 = vld [vmem:[%s1299_s23 + $0xd88] sm:$0xff] }
  0x2d   : > { %v280_v56 = vld [vmem:[%s1299_s23 + $0xe00] sm:$0xff]  ;;  %277 = vst [vmem:[%s1304_s24 + $0x1b0] sm:$0xff] %v276_v54  ;;  %279 = vst [vmem:[%s1304_s24 + $0x1b8] sm:$0xff] %v278_v55  ;;  %v282_v57 = vld [vmem:[%s1299_s23 + $0xe08] sm:$0xff] }
  0x2e   : > { %281 = vst [vmem:[%s1304_s24 + $0x1c0] sm:$0xff] %v280_v56  ;;  %v284_v58 = vld [vmem:[%s1299_s23 + $0xe80] sm:$0xff]  ;;  %v286_v59 = vld [vmem:[%s1299_s23 + $0xe88] sm:$0xff]  ;;  %283 = vst [vmem:[%s1304_s24 + $0x1c8] sm:$0xff] %v282_v57 }
  0x2f   : > { %285 = vst [vmem:[%s1304_s24 + $0x1d0] sm:$0xff] %v284_v58  ;;  %287 = vst [vmem:[%s1304_s24 + $0x1d8] sm:$0xff] %v286_v59  ;;  %v288_v60 = vld [vmem:[%s1299_s23 + $0xf00] sm:$0xff]  ;;  %v290_v61 = vld [vmem:[%s1299_s23 + $0xf08] sm:$0xff] }
  0x30   : > { %v292_v62 = vld [vmem:[%s1299_s23 + $0xf80] sm:$0xff]  ;;  %289 = vst [vmem:[%s1304_s24 + $0x1e0] sm:$0xff] %v288_v60  ;;  %291 = vst [vmem:[%s1304_s24 + $0x1e8] sm:$0xff] %v290_v61  ;;  %v294_v63 = vld [vmem:[%s1299_s23 + $0xf88] sm:$0xff] }
  0x31   : > { %293 = vst [vmem:[%s1304_s24 + $0x1f0] sm:$0xff] %v292_v62  ;;  %295 = vst [vmem:[%s1304_s24 + $0x1f8] sm:$0xff] %v294_v63 }
  0x32 PF: > { %p990_p6 = scmp.ge.s32.totalorder %s1239_s13, 1  ;;  %p300_p7 = scmp.lt.s32.totalorder %s1239_s13, 9 }
  0x34   : > { %p301_p8 = pnand %p990_p6, %p300_p7 }
  0x35   : > { %s307_s25 = sand.u32 (!%p301_p8), 1, %s1223_s9   ;;  %v1437_v0 = vld [vmem:[%s1528_s0] sm:$0xff] (!%p301_p8)  ;;  %s992_s30 = sshll.u32 (!%p301_p8), %s1231_s11, 2 }
  0x36   : > { %304 = sbr.rel (%p301_p8) target bundleno = 336 (0x150), region = 47  ;;  %s991_s28 = sshll.u32 (!%p301_p8), %s307_s25, 9  ;;  %v995_v1 = vcombine.high (!%p301_p8), %v1437_v0, %v1437_v0 }
  0x37   : > { %s1441_s29 = scalar_lea.vmem (!%p301_p8), [#allocation3], %s991_s28  ;;  %p356_p9 = scmp.lt.s32.totalorder (!%p301_p8), %s992_s30, 31 }
  0x38   : > { %v1103_v2 = vld [vmem:[%s1441_s29 + $0x4] ss:$16 sps:$4 sm:$0xff] (!%p301_p8)   ;;  %799 = vmatprep.mubr.bf16.mxu0 (!%p301_p8), %v995_v1  ;;  %840 = vmatprep.mubr.bf16.mxu1 (!%p301_p8), %v995_v1  ;;  %v1105_v3 = vld [vmem:[%s1441_s29 + $0xc] ss:$16 sps:$4 sm:$0xff] (!%p301_p8)   ;;  %v1107_v4 = vld [vmem:[%s1441_s29] ss:$16 sps:$4 sm:$0xff] (!%p301_p8)  }
  0x39   : > { %767 = vmatprep.subr.bf16.mxu0 (!%p301_p8), %v1103_v2  ;;  %v1108_v5 = vld [vmem:[%s1441_s29 + $0x8] ss:$16 sps:$4 sm:$0xff] (!%p301_p8)   ;;  %808 = vmatprep.subr.bf16.mxu1 (!%p301_p8), %v1105_v3  ;;  %v1109_v6 = vld [vmem:[%s1441_s29 + $0x24] ss:$16 sps:$4 sm:$0xff] (!%p301_p8)   ;;  %v1111_v7 = vld [vmem:[%s1441_s29 + $0x2c] ss:$16 sps:$4 sm:$0xff] (!%p301_p8)   ;;  %v994_v3 = vcombine.low (!%p301_p8), %v1437_v0, %v1437_v0 }
  0x3a   : > { %768 = vmatpush1.bf16.msra.mxu0 (!%p301_p8), %v1107_v4  ;;  %809 = vmatpush1.bf16.msra.mxu1 (!%p301_p8), %v1108_v5  ;;  %v1113_v8 = vld [vmem:[%s1441_s29 + $0x20] ss:$16 sps:$4 sm:$0xff] (!%p301_p8)   ;;  %v1114_v9 = vld [vmem:[%s1441_s29 + $0x28] ss:$16 sps:$4 sm:$0xff] (!%p301_p8)   ;;  %v1115_v10 = vld [vmem:[%s1441_s29 + $0x44] ss:$16 sps:$4 sm:$0xff] (!%p301_p8)  }
  0x3b   : > { %769 = vmatprep.subr.bf16.mxu0 (!%p301_p8), %v1109_v6  ;;  %810 = vmatprep.subr.bf16.mxu1 (!%p301_p8), %v1111_v7  ;;  %v1117_v11 = vld [vmem:[%s1441_s29 + $0x4c] ss:$16 sps:$4 sm:$0xff] (!%p301_p8)   ;;  %v1119_v12 = vld [vmem:[%s1441_s29 + $0x40] ss:$16 sps:$4 sm:$0xff] (!%p301_p8)   ;;  %v1120_v13 = vld [vmem:[%s1441_s29 + $0x48] ss:$16 sps:$4 sm:$0xff] (!%p301_p8)  }
  0x3c   : > { %v1121_v14 = vld [vmem:[%s1441_s29 + $0x64] ss:$16 sps:$4 sm:$0xff] (!%p301_p8)   ;;  %v1123_v15 = vld [vmem:[%s1441_s29 + $0x6c] ss:$16 sps:$4 sm:$0xff] (!%p301_p8)   ;;  %v1125_v16 = vld [vmem:[%s1441_s29 + $0x60] ss:$16 sps:$4 sm:$0xff] (!%p301_p8)  }
  0x3d   : > { %v1126_v17 = vld [vmem:[%s1441_s29 + $0x68] ss:$16 sps:$4 sm:$0xff]   ;;  %v1127_v18 = vld [vmem:[%s1441_s29 + $0x84] ss:$16 sps:$4 sm:$0xff]   ;;  %v1129_v19 = vld [vmem:[%s1441_s29 + $0x8c] ss:$16 sps:$4 sm:$0xff]  }
  0x3e   : > { %770 = vmatpush1.bf16.msra.mxu0 %v1113_v8  ;;  %811 = vmatpush1.bf16.msra.mxu1 %v1114_v9  ;;  %v1131_v20 = vld [vmem:[%s1441_s29 + $0x80] ss:$16 sps:$4 sm:$0xff]   ;;  %v1132_v21 = vld [vmem:[%s1441_s29 + $0x88] ss:$16 sps:$4 sm:$0xff]   ;;  %v1133_v22 = vld [vmem:[%s1441_s29 + $0xa4] ss:$16 sps:$4 sm:$0xff]  }
  0x3f   : > { %771 = vmatprep.subr.bf16.mxu0 %v1115_v10  ;;  %812 = vmatprep.subr.bf16.mxu1 %v1117_v11  ;;  %v1135_v23 = vld [vmem:[%s1441_s29 + $0xac] ss:$16 sps:$4 sm:$0xff]   ;;  %v1137_v24 = vld [vmem:[%s1441_s29 + $0xa0] ss:$16 sps:$4 sm:$0xff]   ;;  %v1138_v25 = vld [vmem:[%s1441_s29 + $0xa8] ss:$16 sps:$4 sm:$0xff]  }
  0x40   : > { %v1139_v26 = vld [vmem:[%s1441_s29 + $0xc4] ss:$16 sps:$4 sm:$0xff]   ;;  %v1141_v27 = vld [vmem:[%s1441_s29 + $0xcc] ss:$16 sps:$4 sm:$0xff]   ;;  %v1143_v28 = vld [vmem:[%s1441_s29 + $0xc0] ss:$16 sps:$4 sm:$0xff]  }
  0x41   : > { %v1144_v29 = vld [vmem:[%s1441_s29 + $0xc8] ss:$16 sps:$4 sm:$0xff]   ;;  %v1145_v30 = vld [vmem:[%s1441_s29 + $0xe4] ss:$16 sps:$4 sm:$0xff]   ;;  %v1147_v31 = vld [vmem:[%s1441_s29 + $0xec] ss:$16 sps:$4 sm:$0xff]  }
  0x42   : > { %772 = vmatpush1.bf16.msra.mxu0 %v1119_v12  ;;  %813 = vmatpush1.bf16.msra.mxu1 %v1120_v13  ;;  %v1149_v32 = vld [vmem:[%s1441_s29 + $0xe0] ss:$16 sps:$4 sm:$0xff]   ;;  %v1150_v33 = vld [vmem:[%s1441_s29 + $0xe8] ss:$16 sps:$4 sm:$0xff]   ;;  %v1151_v34 = vld [vmem:[%s1441_s29 + $0x104] ss:$16 sps:$4 sm:$0xff]  }
  0x43   : > { %773 = vmatprep.subr.bf16.mxu0 %v1121_v14  ;;  %814 = vmatprep.subr.bf16.mxu1 %v1123_v15  ;;  %v1153_v35 = vld [vmem:[%s1441_s29 + $0x10c] ss:$16 sps:$4 sm:$0xff]   ;;  %v1155_v36 = vld [vmem:[%s1441_s29 + $0x100] ss:$16 sps:$4 sm:$0xff]   ;;  %v1156_v37 = vld [vmem:[%s1441_s29 + $0x108] ss:$16 sps:$4 sm:$0xff]  }
  0x44   : > { %v1157_v38 = vld [vmem:[%s1441_s29 + $0x124] ss:$16 sps:$4 sm:$0xff]   ;;  %v1159_v39 = vld [vmem:[%s1441_s29 + $0x12c] ss:$16 sps:$4 sm:$0xff]   ;;  %v1161_v40 = vld [vmem:[%s1441_s29 + $0x120] ss:$16 sps:$4 sm:$0xff]  }
  0x45   : > { %v1162_v41 = vld [vmem:[%s1441_s29 + $0x128] ss:$16 sps:$4 sm:$0xff]   ;;  %v1163_v42 = vld [vmem:[%s1441_s29 + $0x144] ss:$16 sps:$4 sm:$0xff]   ;;  %v1165_v43 = vld [vmem:[%s1441_s29 + $0x14c] ss:$16 sps:$4 sm:$0xff]  }
  0x46   : > { %774 = vmatpush1.bf16.msra.mxu0 %v1125_v16  ;;  %815 = vmatpush1.bf16.msra.mxu1 %v1126_v17  ;;  %v1167_v44 = vld [vmem:[%s1441_s29 + $0x140] ss:$16 sps:$4 sm:$0xff]   ;;  %v1168_v45 = vld [vmem:[%s1441_s29 + $0x148] ss:$16 sps:$4 sm:$0xff]   ;;  %v1169_v46 = vld [vmem:[%s1441_s29 + $0x164] ss:$16 sps:$4 sm:$0xff]  }
  0x47   : > { %775 = vmatprep.subr.bf16.mxu0 %v1127_v18  ;;  %816 = vmatprep.subr.bf16.mxu1 %v1129_v19  ;;  %v1171_v47 = vld [vmem:[%s1441_s29 + $0x16c] ss:$16 sps:$4 sm:$0xff]   ;;  %v1173_v48 = vld [vmem:[%s1441_s29 + $0x160] ss:$16 sps:$4 sm:$0xff]   ;;  %v1174_v49 = vld [vmem:[%s1441_s29 + $0x168] ss:$16 sps:$4 sm:$0xff]  }
  0x48   : > { %v1175_v50 = vld [vmem:[%s1441_s29 + $0x184] ss:$16 sps:$4 sm:$0xff]   ;;  %v1177_v51 = vld [vmem:[%s1441_s29 + $0x18c] ss:$16 sps:$4 sm:$0xff]   ;;  %v1179_v52 = vld [vmem:[%s1441_s29 + $0x180] ss:$16 sps:$4 sm:$0xff]  }
  0x49   : > { %v1180_v53 = vld [vmem:[%s1441_s29 + $0x188] ss:$16 sps:$4 sm:$0xff]   ;;  %v1181_v54 = vld [vmem:[%s1441_s29 + $0x1a4] ss:$16 sps:$4 sm:$0xff]   ;;  %v1183_v55 = vld [vmem:[%s1441_s29 + $0x1ac] ss:$16 sps:$4 sm:$0xff]  }
  0x4a   : > { %776 = vmatpush1.bf16.msra.mxu0 %v1131_v20  ;;  %817 = vmatpush1.bf16.msra.mxu1 %v1132_v21  ;;  %v1185_v56 = vld [vmem:[%s1441_s29 + $0x1a0] ss:$16 sps:$4 sm:$0xff]   ;;  %v1186_v57 = vld [vmem:[%s1441_s29 + $0x1a8] ss:$16 sps:$4 sm:$0xff]   ;;  %v1187_v58 = vld [vmem:[%s1441_s29 + $0x1c4] ss:$16 sps:$4 sm:$0xff]  }
  0x4b   : > { %777 = vmatprep.subr.bf16.mxu0 %v1133_v22  ;;  %818 = vmatprep.subr.bf16.mxu1 %v1135_v23  ;;  %v1189_v59 = vld [vmem:[%s1441_s29 + $0x1cc] ss:$16 sps:$4 sm:$0xff]   ;;  %v1191_v60 = vld [vmem:[%s1441_s29 + $0x1c0] ss:$16 sps:$4 sm:$0xff]   ;;  %v1192_v61 = vld [vmem:[%s1441_s29 + $0x1c8] ss:$16 sps:$4 sm:$0xff]  }
  0x4c   : > { %v1193_v62 = vld [vmem:[%s1441_s29 + $0x1e4] ss:$16 sps:$4 sm:$0xff]   ;;  %v1195_v63 = vld [vmem:[%s1441_s29 + $0x1ec] ss:$16 sps:$4 sm:$0xff]   ;;  %v1197_v1 = vld [vmem:[%s1441_s29 + $0x1e0] ss:$16 sps:$4 sm:$0xff]  }
  0x4d   : > { %v1198_v2 = vld [vmem:[%s1441_s29 + $0x1e8] ss:$16 sps:$4 sm:$0xff]   ;;  %s1538_s30 = smov (!%p356_p9, %s992_s30), 31 }
  0x4e   : > { %778 = vmatpush1.bf16.msra.mxu0 %v1137_v24  ;;  %819 = vmatpush1.bf16.msra.mxu1 %v1138_v25  ;;  %s993_s3 = sshll.u32 %s1538_s30, 3 }
  0x4f   : > { %779 = vmatprep.subr.bf16.mxu0 %v1139_v26  ;;  %820 = vmatprep.subr.bf16.mxu1 %v1141_v27  ;;  %s361_s6 = scalar_lea.vmem %s1530_s2, %s993_s3 }
  0x52   : > { %780 = vmatpush1.bf16.msra.mxu0 %v1143_v28  ;;  %821 = vmatpush1.bf16.msra.mxu1 %v1144_v29 }
  0x53   : > { %781 = vmatprep.subr.bf16.mxu0 %v1145_v30  ;;  %822 = vmatprep.subr.bf16.mxu1 %v1147_v31 }
  0x56   : > { %782 = vmatpush1.bf16.msra.mxu0 %v1149_v32  ;;  %823 = vmatpush1.bf16.msra.mxu1 %v1150_v33 }
  0x57   : > { %783 = vmatprep.subr.bf16.mxu0 %v1151_v34  ;;  %824 = vmatprep.subr.bf16.mxu1 %v1153_v35 }
  0x5a   : > { %784 = vmatpush1.bf16.msra.mxu0 %v1155_v36  ;;  %825 = vmatpush1.bf16.msra.mxu1 %v1156_v37 }
  0x5b   : > { %785 = vmatprep.subr.bf16.mxu0 %v1157_v38  ;;  %826 = vmatprep.subr.bf16.mxu1 %v1159_v39 }
  0x5e   : > { %786 = vmatpush1.bf16.msra.mxu0 %v1161_v40  ;;  %827 = vmatpush1.bf16.msra.mxu1 %v1162_v41 }
  0x5f   : > { %787 = vmatprep.subr.bf16.mxu0 %v1163_v42  ;;  %828 = vmatprep.subr.bf16.mxu1 %v1165_v43 }
  0x62   : > { %788 = vmatpush1.bf16.msra.mxu0 %v1167_v44  ;;  %829 = vmatpush1.bf16.msra.mxu1 %v1168_v45 }
  0x63   : > { %789 = vmatprep.subr.bf16.mxu0 %v1169_v46  ;;  %830 = vmatprep.subr.bf16.mxu1 %v1171_v47 }
  0x66   : > { %790 = vmatpush1.bf16.msra.mxu0 %v1173_v48  ;;  %831 = vmatpush1.bf16.msra.mxu1 %v1174_v49 }
  0x67   : > { %791 = vmatprep.subr.bf16.mxu0 %v1175_v50  ;;  %832 = vmatprep.subr.bf16.mxu1 %v1177_v51 }
  0x6a   : > { %792 = vmatpush1.bf16.msra.mxu0 %v1179_v52  ;;  %833 = vmatpush1.bf16.msra.mxu1 %v1180_v53 }
  0x6b   : > { %793 = vmatprep.subr.bf16.mxu0 %v1181_v54  ;;  %834 = vmatprep.subr.bf16.mxu1 %v1183_v55 }
  0x6e   : > { %794 = vmatpush1.bf16.msra.mxu0 %v1185_v56  ;;  %835 = vmatpush1.bf16.msra.mxu1 %v1186_v57 }
  0x6f   : > { %795 = vmatprep.subr.bf16.mxu0 %v1187_v58  ;;  %836 = vmatprep.subr.bf16.mxu1 %v1189_v59 }
  0x72   : > { %796 = vmatpush1.bf16.msra.mxu0 %v1191_v60  ;;  %837 = vmatpush1.bf16.msra.mxu1 %v1192_v61 }
  0x73   : > { %797 = vmatprep.subr.bf16.mxu0 %v1193_v62  ;;  %838 = vmatprep.subr.bf16.mxu1 %v1195_v63 }
  0x76   : > { %798 = vmatpush1.bf16.msra.mxu0 %v1197_v1  ;;  %839 = vmatpush1.bf16.msra.mxu1 %v1198_v2 }
  0x79   : > { %800 = vmatmul.mubr.bf16.vlgmr.msra.gmra.mrb[0].mxu0 %v994_v3  ;;  %841 = vmatmul.mubr.bf16.vlgmr.msra.gmra.mrb[0].mxu1 %v994_v3 }
 0x14c   : > { %v801_v4 = vpop.f32.mrb[0].mxu0  ;;  %v842_v5 = vpop.f32.mrb[0].mxu1 }
 0x14d   : > { %864 = vst [vmem:[%s361_s6] sm:$0xff] %v801_v4  ;;  %866 = vst [vmem:[%s361_s6 + $0x10] sm:$0xff] %v842_v5  ;;  %v803_v6 = vpop.f32.mrb[1].mxu0  ;;  %v844_v7 = vpop.f32.mrb[1].mxu1 }
 0x14e   : > { %865 = vst [vmem:[%s361_s6 + $0x8] sm:$0xff] %v803_v6  ;;  %867 = vst [vmem:[%s361_s6 + $0x18] sm:$0xff] %v844_v7  ;;  %v805_v0 = vpop.f32.mrb[2].mxu0  ;;  %v846_v8 = vpop.f32.mrb[2].mxu1 }
 0x14f   : > { %v806_v9 = vpop.f32.mrb[3].mxu0  ;;  %v847_v10 = vpop.f32.mrb[3].mxu1 }
 0x150 PF: > { %s12_s13 = sadd.s32 1, %s1239_s13   ;;  %s1531_s9 = smov %s1227_s10 }
 0x151   : > { %p9_p10 = scmp.ge.s32.totalorder %s12_s13, 10   ;;  %s1532_s10 = smov %s1291_s17 }
 0x152   : > { %s1533_s11 = smov %s1235_s12  ;;  %s1534_s12 = smov %s1536_s14 }
 0x153   :  { %11 = sbr.rel (!%p9_p10) target bundleno = 3 (0x3), region = 97 }

// kernel: dcgan_generator_forward.9
= control target key start
LH: loop header
LB: loop body
LE: loop exit
PB: predicated region body
PF: predicated region fallthrough
CT: control target
= control target key end

     0   :  { %s2196_s9 = smov 0   ;;  %s2198_s10 = smov 0   ;;  %s2505_s0 = inlined_call_operand.vmem [shape: bf16[56,1024], index: 0, kind: input, shape index: {}]   ;;  %s2506_s1 = inlined_call_operand.vmem [shape: bf16[1024,512], index: 1, kind: input, shape index: {}]   ;;  %s2507_s2 = inlined_call_operand.vmem [shape: f32[56,512], index: 2, kind: output, shape index: {}]  }
   0x1   :  { %s2200_s11 = smov 0   ;;  %s2202_s12 = smov 0  }
   0x2   :  { %s2204_s13 = smov 0  }
   0x3 LB: > { %s24_s14 = sadd.s32 1, %s2174_s12  ;;  %p47_p1 = scmp.ne.s32.totalorder %s2166_s10, %s2162_s9  ;;  %s2178_s13 = sphi %s2204_s13, %s12_s13   ;;  %s2174_s12 = sphi %s2202_s12, %s2511_s12   ;;  %s2170_s11 = sphi %s2200_s11, %s2510_s11   ;;  %s2166_s10 = sphi %s2198_s10, %s2509_s10   ;;  %s2162_s9 = sphi %s2196_s9, %s2508_s9  }
   0x4   : > { %p25_p0 = scmp.ge.s32.totalorder %s24_s14, 2  ;;  %p48_p2 = scmp.eq.s32.totalorder %s2178_s13, 0 }
   0x5   : > { %s40_s16 = sadd.s32 1, %s2166_s10  ;;  %p1700_p5 = scmp.ge.s32.totalorder %s2178_s13, 2 }
   0x6   : > { %s2513_s14 = smov (%p25_p0, %s24_s14), 0  ;;  %p49_p3 = por %p48_p2, %p47_p1 }
   0x7   : > { %s36_s15 = ssub.s32 %s2174_s12, %s2513_s14  ;;  %129 = sbr.rel (%p1700_p5) target bundleno = 25 (0x19), region = 16 }
   0x8   : > { %p38_p4 = scmp.eq.s32.totalorder %s36_s15, 0 }
   0xa   : > { %s2231_s17 = scalar_select %p38_p4, %s2166_s10, %s40_s16  }
   0xe   : > { %132 = sbr.rel (!%p49_p3) target bundleno = 25 (0x19), region = 20  ;;  %s134_s18 = sand.u32 (%p49_p3), 1, %s2166_s10  }
   0xf   : > { %s1857_s19 = sshll.u32 (%p49_p3), %s2174_s12, 4  ;;  %s1883_s20 = smul.u32 (%p49_p3), 112, %s134_s18 }
  0x10   : > { %s142_s23 = scalar_lea.vmem (%p49_p3), %s2505_s0, %s1857_s19 }
  0x11   : > { %v155_v0 = vld [vmem:[%s142_s23] sm:$0xff] (%p49_p3)  ;;  %v157_v1 = vld [vmem:[%s142_s23 + $0x8] sm:$0xff] (%p49_p3)  ;;  %s136_s24 = scalar_lea.vmem (%p49_p3), [#allocation3], %s1883_s20 }
  0x12   : > { %v159_v2 = vld [vmem:[%s142_s23 + $0x20] sm:$0xff] (%p49_p3)  ;;  %v161_v3 = vld [vmem:[%s142_s23 + $0x28] sm:$0xff] (%p49_p3)  ;;  %156 = vst [vmem:[%s136_s24] sm:$0xff] (%p49_p3), %v155_v0  ;;  %158 = vst [vmem:[%s136_s24 + $0x8] sm:$0xff] (%p49_p3), %v157_v1 }
  0x13   : > { %v163_v4 = vld [vmem:[%s142_s23 + $0x40] sm:$0xff] (%p49_p3)  ;;  %v165_v5 = vld [vmem:[%s142_s23 + $0x48] sm:$0xff] (%p49_p3)  ;;  %160 = vst [vmem:[%s136_s24 + $0x10] sm:$0xff] (%p49_p3), %v159_v2  ;;  %162 = vst [vmem:[%s136_s24 + $0x18] sm:$0xff] (%p49_p3), %v161_v3 }
  0x14   : > { %164 = vst [vmem:[%s136_s24 + $0x20] sm:$0xff] (%p49_p3), %v163_v4  ;;  %166 = vst [vmem:[%s136_s24 + $0x28] sm:$0xff] (%p49_p3), %v165_v5  ;;  %v167_v6 = vld [vmem:[%s142_s23 + $0x60] sm:$0xff] (%p49_p3)  ;;  %v169_v7 = vld [vmem:[%s142_s23 + $0x68] sm:$0xff] (%p49_p3) }
  0x15   : > { %v171_v8 = vld [vmem:[%s142_s23 + $0x80] sm:$0xff]  ;;  %168 = vst [vmem:[%s136_s24 + $0x30] sm:$0xff] %v167_v6  ;;  %170 = vst [vmem:[%s136_s24 + $0x38] sm:$0xff] %v169_v7  ;;  %v173_v9 = vld [vmem:[%s142_s23 + $0x88] sm:$0xff] }
  0x16   : > { %172 = vst [vmem:[%s136_s24 + $0x40] sm:$0xff] %v171_v8  ;;  %v175_v10 = vld [vmem:[%s142_s23 + $0xa0] sm:$0xff]  ;;  %v177_v11 = vld [vmem:[%s142_s23 + $0xa8] sm:$0xff]  ;;  %174 = vst [vmem:[%s136_s24 + $0x48] sm:$0xff] %v173_v9 }
  0x17   : > { %176 = vst [vmem:[%s136_s24 + $0x50] sm:$0xff] %v175_v10  ;;  %178 = vst [vmem:[%s136_s24 + $0x58] sm:$0xff] %v177_v11  ;;  %v179_v12 = vld [vmem:[%s142_s23 + $0xc0] sm:$0xff]  ;;  %v181_v13 = vld [vmem:[%s142_s23 + $0xc8] sm:$0xff] }
  0x18   : > { %180 = vst [vmem:[%s136_s24 + $0x60] sm:$0xff] %v179_v12  ;;  %182 = vst [vmem:[%s136_s24 + $0x68] sm:$0xff] %v181_v13 }
  0x19 PF: > { %p1703_p6 = scmp.ge.s32.totalorder %s2178_s13, 1  ;;  %p202_p7 = scmp.lt.s32.totalorder %s2178_s13, 3 }
  0x1b   : > { %p203_p8 = pnand %p1703_p6, %p202_p7 }
  0x1c   : > { %s209_s25 = sand.u32 (!%p203_p8), 1, %s2162_s9   ;;  %s1704_s26 = sshll.u32 (!%p203_p8), %s2170_s11, 6 }
  0x1d   : > { %206 = sbr.rel (%p203_p8) target bundleno = 431 (0x1af), region = 47  ;;  %p249_p9 = scmp.lt.s32.totalorder (!%p203_p8), %s1704_s26, 127 }
  0x1e   : > { %s1884_s27 = smul.u32 (!%p203_p8), 112, %s209_s25  ;;  %p1707_p10 = scmp.ne.s32.totalorder (!%p203_p8), %s2170_s11, 0 }
  0x20   : > { %s2248_s4 = scalar_lea.vmem (!%p203_p8), [#allocation3], %s1884_s27 }
  0x24   : > { %s2515_s26 = smov (!%p249_p9, %s1704_s26), 127  ;;  %274 = sbr.rel (%p1707_p10) target bundleno = 52 (0x34), region = 55 }
  0x25   : > { %s1858_s28 = sshll.u32 %s2515_s26, 4  ;;  %v2180_v14 = vmov (!%p1707_p10), 0.0  }
  0x26   : > { %s2246_s3 = scalar_lea.vmem %s2506_s1, %s1858_s28  ;;  %275 = vst [vmem:[#allocation2] sm:$0xff] (!%p1707_p10), %v2180_v14  ;;  %276 = vst [vmem:[#allocation2 + $0x8] sm:$0xff] (!%p1707_p10), %v2180_v14 }
  0x27   : > { %277 = vst [vmem:[#allocation2 + $0x10] sm:$0xff] (!%p1707_p10), %v2180_v14  ;;  %278 = vst [vmem:[#allocation2 + $0x18] sm:$0xff] (!%p1707_p10), %v2180_v14 }
  0x28   : > { %279 = vst [vmem:[#allocation2 + $0x20] sm:$0xff] (!%p1707_p10), %v2180_v14  ;;  %280 = vst [vmem:[#allocation2 + $0x28] sm:$0xff] (!%p1707_p10), %v2180_v14 }
  0x29   : > { %281 = vst [vmem:[#allocation2 + $0x30] sm:$0xff] (!%p1707_p10), %v2180_v14  ;;  %282 = vst [vmem:[#allocation2 + $0x38] sm:$0xff] (!%p1707_p10), %v2180_v14 }
  0x2a   : > { %283 = vst [vmem:[#allocation2 + $0x40] sm:$0xff] (!%p1707_p10), %v2180_v14  ;;  %284 = vst [vmem:[#allocation2 + $0x48] sm:$0xff] (!%p1707_p10), %v2180_v14 }
  0x2b   : > { %285 = vst [vmem:[#allocation2 + $0x50] sm:$0xff] %v2180_v14  ;;  %286 = vst [vmem:[#allocation2 + $0x58] sm:$0xff] %v2180_v14 }
  0x2c   : > { %287 = vst [vmem:[#allocation2 + $0x60] sm:$0xff] %v2180_v14  ;;  %288 = vst [vmem:[#allocation2 + $0x68] sm:$0xff] %v2180_v14 }
  0x2d   : > { %289 = vst [vmem:[#allocation2 + $0x70] sm:$0xff] %v2180_v14  ;;  %290 = vst [vmem:[#allocation2 + $0x78] sm:$0xff] %v2180_v14 }
  0x2e   : > { %291 = vst [vmem:[#allocation2 + $0x80] sm:$0xff] %v2180_v14  ;;  %292 = vst [vmem:[#allocation2 + $0x88] sm:$0xff] %v2180_v14 }
  0x2f   : > { %293 = vst [vmem:[#allocation2 + $0x90] sm:$0xff] %v2180_v14  ;;  %294 = vst [vmem:[#allocation2 + $0x98] sm:$0xff] %v2180_v14 }
  0x30   : > { %295 = vst [vmem:[#allocation2 + $0xa0] sm:$0xff] %v2180_v14  ;;  %296 = vst [vmem:[#allocation2 + $0xa8] sm:$0xff] %v2180_v14 }
  0x31   : > { %297 = vst [vmem:[#allocation2 + $0xb0] sm:$0xff] %v2180_v14  ;;  %298 = vst [vmem:[#allocation2 + $0xb8] sm:$0xff] %v2180_v14 }
  0x32   : > { %299 = vst [vmem:[#allocation2 + $0xc0] sm:$0xff] %v2180_v14  ;;  %300 = vst [vmem:[#allocation2 + $0xc8] sm:$0xff] %v2180_v14 }
  0x33   : > { %301 = vst [vmem:[#allocation2 + $0xd0] sm:$0xff] %v2180_v14  ;;  %302 = vst [vmem:[#allocation2 + $0xd8] sm:$0xff] %v2180_v14 }
  0x34 PF: > { %v1926_v15 = vld [vmem:[%s2246_s3 + $0x4] ss:$16 sps:$4 sm:$0xff]   ;;  %v1928_v16 = vld [vmem:[%s2246_s3 + $0xc] ss:$16 sps:$4 sm:$0xff]   ;;  %v1930_v17 = vld [vmem:[%s2246_s3] ss:$16 sps:$4 sm:$0xff]  }
  0x35   : > { %1187 = vmatprep.subr.bf16.mxu0 %v1926_v15  ;;  %v1931_v18 = vld [vmem:[%s2246_s3 + $0x8] ss:$16 sps:$4 sm:$0xff]   ;;  %1329 = vmatprep.subr.bf16.mxu1 %v1928_v16  ;;  %v1932_v19 = vld [vmem:[%s2246_s3 + $0x24] ss:$16 sps:$4 sm:$0xff]   ;;  %v1934_v20 = vld [vmem:[%s2246_s3 + $0x2c] ss:$16 sps:$4 sm:$0xff]  }
  0x36   : > { %1188 = vmatpush1.bf16.msra.mxu0 %v1930_v17  ;;  %1330 = vmatpush1.bf16.msra.mxu1 %v1931_v18  ;;  %v1936_v21 = vld [vmem:[%s2246_s3 + $0x20] ss:$16 sps:$4 sm:$0xff]   ;;  %v1937_v22 = vld [vmem:[%s2246_s3 + $0x28] ss:$16 sps:$4 sm:$0xff]   ;;  %v1938_v23 = vld [vmem:[%s2246_s3 + $0x44] ss:$16 sps:$4 sm:$0xff]  }
  0x37   : > { %1189 = vmatprep.subr.bf16.mxu0 %v1932_v19  ;;  %1331 = vmatprep.subr.bf16.mxu1 %v1934_v20  ;;  %v1940_v24 = vld [vmem:[%s2246_s3 + $0x4c] ss:$16 sps:$4 sm:$0xff]   ;;  %v1942_v25 = vld [vmem:[%s2246_s3 + $0x40] ss:$16 sps:$4 sm:$0xff]   ;;  %v1943_v26 = vld [vmem:[%s2246_s3 + $0x48] ss:$16 sps:$4 sm:$0xff]  }
  0x38   : > { %v1944_v27 = vld [vmem:[%s2246_s3 + $0x64] ss:$16 sps:$4 sm:$0xff]   ;;  %v1946_v28 = vld [vmem:[%s2246_s3 + $0x6c] ss:$16 sps:$4 sm:$0xff]   ;;  %v1948_v29 = vld [vmem:[%s2246_s3 + $0x60] ss:$16 sps:$4 sm:$0xff]  }
  0x39   : > { %v1949_v30 = vld [vmem:[%s2246_s3 + $0x68] ss:$16 sps:$4 sm:$0xff]   ;;  %v1950_v31 = vld [vmem:[%s2246_s3 + $0x84] ss:$16 sps:$4 sm:$0xff]   ;;  %v1952_v32 = vld [vmem:[%s2246_s3 + $0x8c] ss:$16 sps:$4 sm:$0xff]  }
  0x3a   : > { %1190 = vmatpush1.bf16.msra.mxu0 %v1936_v21  ;;  %1332 = vmatpush1.bf16.msra.mxu1 %v1937_v22  ;;  %v1954_v33 = vld [vmem:[%s2246_s3 + $0x80] ss:$16 sps:$4 sm:$0xff]   ;;  %v1955_v34 = vld [vmem:[%s2246_s3 + $0x88] ss:$16 sps:$4 sm:$0xff]   ;;  %v1956_v35 = vld [vmem:[%s2246_s3 + $0xa4] ss:$16 sps:$4 sm:$0xff]  }
  0x3b   : > { %1191 = vmatprep.subr.bf16.mxu0 %v1938_v23  ;;  %1333 = vmatprep.subr.bf16.mxu1 %v1940_v24  ;;  %v1958_v36 = vld [vmem:[%s2246_s3 + $0xac] ss:$16 sps:$4 sm:$0xff]   ;;  %v1960_v37 = vld [vmem:[%s2246_s3 + $0xa0] ss:$16 sps:$4 sm:$0xff]   ;;  %v1961_v38 = vld [vmem:[%s2246_s3 + $0xa8] ss:$16 sps:$4 sm:$0xff]  }
  0x3c   : > { %v1962_v39 = vld [vmem:[%s2246_s3 + $0xc4] ss:$16 sps:$4 sm:$0xff]   ;;  %v1964_v40 = vld [vmem:[%s2246_s3 + $0xcc] ss:$16 sps:$4 sm:$0xff]   ;;  %v1966_v41 = vld [vmem:[%s2246_s3 + $0xc0] ss:$16 sps:$4 sm:$0xff]  }
  0x3d   : > { %v1967_v42 = vld [vmem:[%s2246_s3 + $0xc8] ss:$16 sps:$4 sm:$0xff]   ;;  %v1968_v43 = vld [vmem:[%s2246_s3 + $0xe4] ss:$16 sps:$4 sm:$0xff]   ;;  %v1970_v44 = vld [vmem:[%s2246_s3 + $0xec] ss:$16 sps:$4 sm:$0xff]  }
  0x3e   : > { %1192 = vmatpush1.bf16.msra.mxu0 %v1942_v25  ;;  %1334 = vmatpush1.bf16.msra.mxu1 %v1943_v26  ;;  %v1972_v45 = vld [vmem:[%s2246_s3 + $0xe0] ss:$16 sps:$4 sm:$0xff]   ;;  %v1973_v46 = vld [vmem:[%s2246_s3 + $0xe8] ss:$16 sps:$4 sm:$0xff]   ;;  %v1974_v47 = vld [vmem:[%s2246_s3 + $0x104] ss:$16 sps:$4 sm:$0xff]  }
  0x3f   : > { %1193 = vmatprep.subr.bf16.mxu0 %v1944_v27  ;;  %1335 = vmatprep.subr.bf16.mxu1 %v1946_v28  ;;  %v1976_v48 = vld [vmem:[%s2246_s3 + $0x10c] ss:$16 sps:$4 sm:$0xff]   ;;  %v1978_v49 = vld [vmem:[%s2246_s3 + $0x100] ss:$16 sps:$4 sm:$0xff]   ;;  %v1979_v50 = vld [vmem:[%s2246_s3 + $0x108] ss:$16 sps:$4 sm:$0xff]  }
  0x40   : > { %v1980_v51 = vld [vmem:[%s2246_s3 + $0x124] ss:$16 sps:$4 sm:$0xff]   ;;  %v1982_v52 = vld [vmem:[%s2246_s3 + $0x12c] ss:$16 sps:$4 sm:$0xff]   ;;  %v1984_v53 = vld [vmem:[%s2246_s3 + $0x120] ss:$16 sps:$4 sm:$0xff]  }
  0x41   : > { %v1985_v54 = vld [vmem:[%s2246_s3 + $0x128] ss:$16 sps:$4 sm:$0xff]   ;;  %v1986_v55 = vld [vmem:[%s2246_s3 + $0x144] ss:$16 sps:$4 sm:$0xff]   ;;  %v1988_v56 = vld [vmem:[%s2246_s3 + $0x14c] ss:$16 sps:$4 sm:$0xff]  }
  0x42   : > { %1194 = vmatpush1.bf16.msra.mxu0 %v1948_v29  ;;  %1336 = vmatpush1.bf16.msra.mxu1 %v1949_v30  ;;  %v1990_v57 = vld [vmem:[%s2246_s3 + $0x140] ss:$16 sps:$4 sm:$0xff]   ;;  %v1991_v58 = vld [vmem:[%s2246_s3 + $0x148] ss:$16 sps:$4 sm:$0xff]   ;;  %v1992_v59 = vld [vmem:[%s2246_s3 + $0x164] ss:$16 sps:$4 sm:$0xff]  }
  0x43   : > { %1195 = vmatprep.subr.bf16.mxu0 %v1950_v31  ;;  %1337 = vmatprep.subr.bf16.mxu1 %v1952_v32  ;;  %v1994_v60 = vld [vmem:[%s2246_s3 + $0x16c] ss:$16 sps:$4 sm:$0xff]   ;;  %v1996_v61 = vld [vmem:[%s2246_s3 + $0x160] ss:$16 sps:$4 sm:$0xff]   ;;  %v1997_v62 = vld [vmem:[%s2246_s3 + $0x168] ss:$16 sps:$4 sm:$0xff]  }
  0x44   : > { %v2024_v63 = vld [vmem:[%s2248_s4 + $0x4] ss:$16 sps:$4 sm:$0xff]   ;;  %v2000_v1 = vld [vmem:[%s2246_s3 + $0x18c] ss:$16 sps:$4 sm:$0xff]   ;;  %v2002_v2 = vld [vmem:[%s2246_s3 + $0x180] ss:$16 sps:$4 sm:$0xff]  }
  0x45   : > { %v1998_v0 = vld [vmem:[%s2246_s3 + $0x184] ss:$16 sps:$4 sm:$0xff]   ;;  %1219 = vmatprep.mubr.bf16.mxu0 %v2024_v63  ;;  %1361 = vmatprep.mubr.bf16.mxu1 %v2024_v63  ;;  %v2003_v3 = vld [vmem:[%s2246_s3 + $0x188] ss:$16 sps:$4 sm:$0xff]   ;;  %v2006_v5 = vld [vmem:[%s2246_s3 + $0x1ac] ss:$16 sps:$4 sm:$0xff]  }
  0x46   : > { %1196 = vmatpush1.bf16.msra.mxu0 %v1954_v33  ;;  %1338 = vmatpush1.bf16.msra.mxu1 %v1955_v34  ;;  %v2004_v4 = vld [vmem:[%s2246_s3 + $0x1a4] ss:$16 sps:$4 sm:$0xff]   ;;  %v2008_v6 = vld [vmem:[%s2246_s3 + $0x1a0] ss:$16 sps:$4 sm:$0xff]   ;;  %v2009_v7 = vld [vmem:[%s2246_s3 + $0x1a8] ss:$16 sps:$4 sm:$0xff]  }
  0x47   : > { %1197 = vmatprep.subr.bf16.mxu0 %v1956_v35  ;;  %1339 = vmatprep.subr.bf16.mxu1 %v1958_v36  ;;  %v2010_v8 = vld [vmem:[%s2246_s3 + $0x1c4] ss:$16 sps:$4 sm:$0xff]   ;;  %v2012_v9 = vld [vmem:[%s2246_s3 + $0x1cc] ss:$16 sps:$4 sm:$0xff]   ;;  %v2014_v10 = vld [vmem:[%s2246_s3 + $0x1c0] ss:$16 sps:$4 sm:$0xff]  }
  0x48   : > { %v2015_v11 = vld [vmem:[%s2246_s3 + $0x1c8] ss:$16 sps:$4 sm:$0xff]   ;;  %v2016_v12 = vld [vmem:[%s2246_s3 + $0x1e4] ss:$16 sps:$4 sm:$0xff]   ;;  %v2018_v13 = vld [vmem:[%s2246_s3 + $0x1ec] ss:$16 sps:$4 sm:$0xff]  }
  0x49   : > { %v2020_v14 = vld [vmem:[%s2246_s3 + $0x1e0] ss:$16 sps:$4 sm:$0xff]   ;;  %v2021_v15 = vld [vmem:[%s2246_s3 + $0x1e8] ss:$16 sps:$4 sm:$0xff]   ;;  %v2027_v16 = vld [vmem:[%s2246_s3 + $0x204] ss:$16 sps:$4 sm:$0xff]  }
  0x4a   : > { %1198 = vmatpush1.bf16.msra.mxu0 %v1960_v37  ;;  %1340 = vmatpush1.bf16.msra.mxu1 %v1961_v38  ;;  %v2030_v17 = vld [vmem:[%s2246_s3 + $0x20c] ss:$16 sps:$4 sm:$0xff]   ;;  %v2022_v18 = vld [vmem:[%s2248_s4] ss:$16 sps:$4 sm:$0xff]   ;;  %v2028_v20 = vld [vmem:[%s2246_s3 + $0x208] ss:$16 sps:$4 sm:$0xff]  }
  0x4b   : > { %1199 = vmatprep.subr.bf16.mxu0 %v1962_v39  ;;  %1341 = vmatprep.subr.bf16.mxu1 %v1964_v40  ;;  %v2025_v19 = vld [vmem:[%s2246_s3 + $0x200] ss:$16 sps:$4 sm:$0xff]   ;;  %v2033_v21 = vld [vmem:[%s2246_s3 + $0x224] ss:$16 sps:$4 sm:$0xff]   ;;  %v2036_v22 = vld [vmem:[%s2246_s3 + $0x22c] ss:$16 sps:$4 sm:$0xff]  }
  0x4c   : > { %v2031_v23 = vld [vmem:[%s2246_s3 + $0x220] ss:$16 sps:$4 sm:$0xff]   ;;  %v2034_v24 = vld [vmem:[%s2246_s3 + $0x228] ss:$16 sps:$4 sm:$0xff]   ;;  %v2039_v25 = vld [vmem:[%s2246_s3 + $0x244] ss:$16 sps:$4 sm:$0xff]  }
  0x4d   : > { %v2079_v26 = vld [vmem:[%s2248_s4 + $0x24] ss:$16 sps:$4 sm:$0xff]   ;;  %v2042_v27 = vld [vmem:[%s2246_s3 + $0x24c] ss:$16 sps:$4 sm:$0xff]   ;;  %v2037_v28 = vld [vmem:[%s2246_s3 + $0x240] ss:$16 sps:$4 sm:$0xff]  }
  0x4e   : > { %1200 = vmatpush1.bf16.msra.mxu0 %v1966_v41  ;;  %1342 = vmatpush1.bf16.msra.mxu1 %v1967_v42  ;;  %v2040_v29 = vld [vmem:[%s2246_s3 + $0x248] ss:$16 sps:$4 sm:$0xff]   ;;  %v2087_v30 = vld [vmem:[%s2248_s4 + $0x20] ss:$16 sps:$4 sm:$0xff]   ;;  %v2045_v31 = vld [vmem:[%s2246_s3 + $0x264] ss:$16 sps:$4 sm:$0xff]  }
  0x4f   : > { %1201 = vmatprep.subr.bf16.mxu0 %v1968_v43  ;;  %1343 = vmatprep.subr.bf16.mxu1 %v1970_v44  ;;  %v2048_v32 = vld [vmem:[%s2246_s3 + $0x26c] ss:$16 sps:$4 sm:$0xff]   ;;  %v2043_v33 = vld [vmem:[%s2246_s3 + $0x260] ss:$16 sps:$4 sm:$0xff]   ;;  %v2094_v34 = vld [vmem:[%s2248_s4 + $0x44] ss:$16 sps:$4 sm:$0xff]  }
  0x50   : > { %v2046_v35 = vld [vmem:[%s2246_s3 + $0x268] ss:$16 sps:$4 sm:$0xff]   ;;  %v2051_v36 = vld [vmem:[%s2246_s3 + $0x284] ss:$16 sps:$4 sm:$0xff]   ;;  %v2054_v37 = vld [vmem:[%s2246_s3 + $0x28c] ss:$16 sps:$4 sm:$0xff]  }
  0x51   : > { %v2049_v38 = vld [vmem:[%s2246_s3 + $0x280] ss:$16 sps:$4 sm:$0xff]   ;;  %v2052_v39 = vld [vmem:[%s2246_s3 + $0x288] ss:$16 sps:$4 sm:$0xff]   ;;  %v2057_v41 = vld [vmem:[%s2246_s3 + $0x2a4] ss:$16 sps:$4 sm:$0xff]  }
  0x52   : > { %1202 = vmatpush1.bf16.msra.mxu0 %v1972_v45  ;;  %1344 = vmatpush1.bf16.msra.mxu1 %v1973_v46  ;;  %v2102_v40 = vld [vmem:[%s2248_s4 + $0x40] ss:$16 sps:$4 sm:$0xff]   ;;  %v2060_v42 = vld [vmem:[%s2246_s3 + $0x2ac] ss:$16 sps:$4 sm:$0xff]   ;;  %v2058_v46 = vld [vmem:[%s2246_s3 + $0x2a8] ss:$16 sps:$4 sm:$0xff]  }
  0x53   : > { %1203 = vmatprep.subr.bf16.mxu0 %v1974_v47  ;;  %1345 = vmatprep.subr.bf16.mxu1 %v1976_v48  ;;  %v343_v43 = vld [vmem:[%s2248_s4 + $0x60] sm:$0xff]  ;;  %v2066_v48 = vld [vmem:[%s2246_s3 + $0x2cc] ss:$16 sps:$4 sm:$0xff]   ;;  %p1852_p11 = scmp.ne.s32.totalorder %s2170_s11, 1 }
  0x54   : > { %v1721_v44 = vcombine.high %v343_v43, %v343_v43  ;;  %v2055_v45 = vld [vmem:[%s2246_s3 + $0x2a0] ss:$16 sps:$4 sm:$0xff]   ;;  %v2063_v47 = vld [vmem:[%s2246_s3 + $0x2c4] ss:$16 sps:$4 sm:$0xff]  }
  0x55   : > { %v2081_v63 = vld [vmem:[%s2246_s3 + $0x320] ss:$16 sps:$4 sm:$0xff]  }
  0x56   : > { %1204 = vmatpush1.bf16.msra.mxu0 %v1978_v49  ;;  %1346 = vmatpush1.bf16.msra.mxu1 %v1979_v50  ;;  %v2061_v49 = vld [vmem:[%s2246_s3 + $0x2c0] ss:$16 sps:$4 sm:$0xff]   ;;  %v1720_v50 = vcombine.low %v343_v43, %v343_v43  ;;  %v304_v43 = vld [vmem:[#allocation2 + $0x8] sm:$0xff] }
  0x57   : > { %1205 = vmatprep.subr.bf16.mxu0 %v1980_v51  ;;  %1347 = vmatprep.subr.bf16.mxu1 %v1982_v52  ;;  %v2064_v51 = vld [vmem:[%s2246_s3 + $0x2c8] ss:$16 sps:$4 sm:$0xff]   ;;  %v2069_v52 = vld [vmem:[%s2246_s3 + $0x2e4] ss:$16 sps:$4 sm:$0xff]  }
  0x5a   : > { %1206 = vmatpush1.bf16.msra.mxu0 %v1984_v53  ;;  %1348 = vmatpush1.bf16.msra.mxu1 %v1985_v54  ;;  %v2072_v53 = vld [vmem:[%s2246_s3 + $0x2ec] ss:$16 sps:$4 sm:$0xff]  }
  0x5b   : > { %1207 = vmatprep.subr.bf16.mxu0 %v1986_v55  ;;  %1349 = vmatprep.subr.bf16.mxu1 %v1988_v56  ;;  %v2131_v54 = vld [vmem:[%s2248_s4 + $0xc] ss:$16 sps:$4 sm:$0xff]   ;;  %v2067_v55 = vld [vmem:[%s2246_s3 + $0x2e0] ss:$16 sps:$4 sm:$0xff]   ;;  %v2070_v56 = vld [vmem:[%s2246_s3 + $0x2e8] ss:$16 sps:$4 sm:$0xff]  }
  0x5e   : > { %1208 = vmatpush1.bf16.msra.mxu0 %v1990_v57  ;;  %1350 = vmatpush1.bf16.msra.mxu1 %v1991_v58  ;;  %v2075_v57 = vld [vmem:[%s2246_s3 + $0x304] ss:$16 sps:$4 sm:$0xff]   ;;  %v2078_v58 = vld [vmem:[%s2246_s3 + $0x30c] ss:$16 sps:$4 sm:$0xff]  }
  0x5f   : > { %1209 = vmatprep.subr.bf16.mxu0 %v1992_v59  ;;  %1351 = vmatprep.subr.bf16.mxu1 %v1994_v60  ;;  %v2073_v59 = vld [vmem:[%s2246_s3 + $0x300] ss:$16 sps:$4 sm:$0xff]   ;;  %v2076_v60 = vld [vmem:[%s2246_s3 + $0x308] ss:$16 sps:$4 sm:$0xff]  }
  0x62   : > { %1210 = vmatpush1.bf16.msra.mxu0 %v1996_v61  ;;  %1352 = vmatpush1.bf16.msra.mxu1 %v1997_v62  ;;  %v2083_v61 = vld [vmem:[%s2246_s3 + $0x324] ss:$16 sps:$4 sm:$0xff]   ;;  %v2086_v62 = vld [vmem:[%s2246_s3 + $0x32c] ss:$16 sps:$4 sm:$0xff]  }
  0x63   : > { %1211 = vmatprep.subr.bf16.mxu0 %v1998_v0  ;;  %1353 = vmatprep.subr.bf16.mxu1 %v2000_v1  ;;  %v2084_v0 = vld [vmem:[%s2246_s3 + $0x328] ss:$16 sps:$4 sm:$0xff]   ;;  %v2090_v1 = vld [vmem:[%s2246_s3 + $0x344] ss:$16 sps:$4 sm:$0xff]  }
  0x66   : > { %1212 = vmatpush1.bf16.msra.mxu0 %v2002_v2  ;;  %1354 = vmatpush1.bf16.msra.mxu1 %v2003_v3  ;;  %v2093_v2 = vld [vmem:[%s2246_s3 + $0x34c] ss:$16 sps:$4 sm:$0xff]   ;;  %v2088_v3 = vld [vmem:[%s2246_s3 + $0x340] ss:$16 sps:$4 sm:$0xff]  }
  0x67   : > { %1213 = vmatprep.subr.bf16.mxu0 %v2004_v4  ;;  %1355 = vmatprep.subr.bf16.mxu1 %v2006_v5  ;;  %v2091_v4 = vld [vmem:[%s2246_s3 + $0x348] ss:$16 sps:$4 sm:$0xff]   ;;  %v2098_v5 = vld [vmem:[%s2246_s3 + $0x364] ss:$16 sps:$4 sm:$0xff]  }
  0x6a   : > { %1214 = vmatpush1.bf16.msra.mxu0 %v2008_v6  ;;  %1356 = vmatpush1.bf16.msra.mxu1 %v2009_v7  ;;  %v2101_v6 = vld [vmem:[%s2246_s3 + $0x36c] ss:$16 sps:$4 sm:$0xff]   ;;  %v2096_v7 = vld [vmem:[%s2246_s3 + $0x360] ss:$16 sps:$4 sm:$0xff]  }
  0x6b   : > { %1215 = vmatprep.subr.bf16.mxu0 %v2010_v8  ;;  %1357 = vmatprep.subr.bf16.mxu1 %v2012_v9  ;;  %v2099_v8 = vld [vmem:[%s2246_s3 + $0x368] ss:$16 sps:$4 sm:$0xff]   ;;  %v2105_v9 = vld [vmem:[%s2246_s3 + $0x384] ss:$16 sps:$4 sm:$0xff]  }
  0x6e   : > { %1216 = vmatpush1.bf16.msra.mxu0 %v2014_v10  ;;  %1358 = vmatpush1.bf16.msra.mxu1 %v2015_v11  ;;  %v2108_v10 = vld [vmem:[%s2246_s3 + $0x38c] ss:$16 sps:$4 sm:$0xff]   ;;  %v2103_v11 = vld [vmem:[%s2246_s3 + $0x380] ss:$16 sps:$4 sm:$0xff]  }
  0x6f   : > { %1217 = vmatprep.subr.bf16.mxu0 %v2016_v12  ;;  %1359 = vmatprep.subr.bf16.mxu1 %v2018_v13  ;;  %v2106_v12 = vld [vmem:[%s2246_s3 + $0x388] ss:$16 sps:$4 sm:$0xff]   ;;  %v2112_v13 = vld [vmem:[%s2246_s3 + $0x3a4] ss:$16 sps:$4 sm:$0xff]  }
  0x72   : > { %1218 = vmatpush1.bf16.msra.mxu0 %v2020_v14  ;;  %1360 = vmatpush1.bf16.msra.mxu1 %v2021_v15  ;;  %v2115_v14 = vld [vmem:[%s2246_s3 + $0x3ac] ss:$16 sps:$4 sm:$0xff]   ;;  %v2110_v15 = vld [vmem:[%s2246_s3 + $0x3a0] ss:$16 sps:$4 sm:$0xff]  }
  0x73   : > { %1258 = vmatprep.subr.bf16.mxu0 %v2027_v16  ;;  %1400 = vmatprep.subr.bf16.mxu1 %v2030_v17  ;;  %v2113_v16 = vld [vmem:[%s2246_s3 + $0x3a8] ss:$16 sps:$4 sm:$0xff]   ;;  %v2119_v17 = vld [vmem:[%s2246_s3 + $0x3c4] ss:$16 sps:$4 sm:$0xff]  }
  0x75   : > { %1220 = vmatmul.mubr.bf16.vlgmr.msra.gmra.mrb[0].mxu0 %v2022_v18  ;;  %1362 = vmatmul.mubr.bf16.vlgmr.msra.gmra.mrb[0].mxu1 %v2022_v18  ;;  %v2122_v18 = vld [vmem:[%s2246_s3 + $0x3cc] ss:$16 sps:$4 sm:$0xff]  }
  0x76   : > { %1259 = vmatpush1.bf16.msra.mxu0 %v2025_v19  ;;  %1401 = vmatpush1.bf16.msra.mxu1 %v2028_v20  ;;  %v2117_v19 = vld [vmem:[%s2246_s3 + $0x3c0] ss:$16 sps:$4 sm:$0xff]   ;;  %v2120_v20 = vld [vmem:[%s2246_s3 + $0x3c8] ss:$16 sps:$4 sm:$0xff]  }
  0x77   : > { %1260 = vmatprep.subr.bf16.mxu0 %v2033_v21  ;;  %1402 = vmatprep.subr.bf16.mxu1 %v2036_v22  ;;  %v2125_v21 = vld [vmem:[%s2246_s3 + $0x3e4] ss:$16 sps:$4 sm:$0xff]   ;;  %v2128_v22 = vld [vmem:[%s2246_s3 + $0x3ec] ss:$16 sps:$4 sm:$0xff]  }
  0x78   : > { %1229 = vmatprep.mubr.bf16.mxu0 %v2079_v26  ;;  %1371 = vmatprep.mubr.bf16.mxu1 %v2079_v26  ;;  %v2132_v26 = vld [vmem:[%s2248_s4 + $0x2c] ss:$16 sps:$4 sm:$0xff]  }
  0x7a   : > { %1261 = vmatpush1.bf16.msra.mxu0 %v2031_v23  ;;  %1403 = vmatpush1.bf16.msra.mxu1 %v2034_v24  ;;  %v2123_v23 = vld [vmem:[%s2246_s3 + $0x3e0] ss:$16 sps:$4 sm:$0xff]   ;;  %v2126_v24 = vld [vmem:[%s2246_s3 + $0x3e8] ss:$16 sps:$4 sm:$0xff]  }
  0x7b   : > { %1262 = vmatprep.subr.bf16.mxu0 %v2039_v25  ;;  %1404 = vmatprep.subr.bf16.mxu1 %v2042_v27  ;;  %v2129_v25 = vld [vmem:[%s2248_s4 + $0x8] ss:$16 sps:$4 sm:$0xff]  }
  0x7c   : > { %v2134_v27 = vld [vmem:[%s2248_s4 + $0x28] ss:$16 sps:$4 sm:$0xff]  }
  0x7d   : > { %1230 = vmatmul.mubr.bf16.gmra.mrb[4].mxu0 %v2087_v30  ;;  %1372 = vmatmul.mubr.bf16.gmra.mrb[4].mxu1 %v2087_v30  ;;  %v2137_v30 = vld [vmem:[%s2248_s4 + $0x48] ss:$16 sps:$4 sm:$0xff]  }
  0x7e   : > { %1263 = vmatpush1.bf16.msra.mxu0 %v2037_v28  ;;  %1405 = vmatpush1.bf16.msra.mxu1 %v2040_v29  ;;  %v2135_v28 = vld [vmem:[%s2248_s4 + $0x4c] ss:$16 sps:$4 sm:$0xff]  }
  0x7f   : > { %1264 = vmatprep.subr.bf16.mxu0 %v2045_v31  ;;  %1406 = vmatprep.subr.bf16.mxu1 %v2048_v32  ;;  %v344_v29 = vld [vmem:[%s2248_s4 + $0x68] sm:$0xff] }
  0x80   : > { %1239 = vmatprep.mubr.bf16.mxu0 %v2094_v34  ;;  %1381 = vmatprep.mubr.bf16.mxu1 %v2094_v34  ;;  %v1723_v31 = vcombine.high %v344_v29, %v344_v29  ;;  %v1722_v32 = vcombine.low %v344_v29, %v344_v29 }
  0x82   : > { %1265 = vmatpush1.bf16.msra.mxu0 %v2043_v33  ;;  %1407 = vmatpush1.bf16.msra.mxu1 %v2046_v35 }
  0x83   : > { %1266 = vmatprep.subr.bf16.mxu0 %v2051_v36  ;;  %1408 = vmatprep.subr.bf16.mxu1 %v2054_v37 }
  0x85   : > { %1240 = vmatmul.mubr.bf16.gmra.mrb[8].mxu0 %v2102_v40  ;;  %1382 = vmatmul.mubr.bf16.gmra.mrb[8].mxu1 %v2102_v40 }
  0x86   : > { %1267 = vmatpush1.bf16.msra.mxu0 %v2049_v38  ;;  %1409 = vmatpush1.bf16.msra.mxu1 %v2052_v39 }
  0x87   : > { %1268 = vmatprep.subr.bf16.mxu0 %v2057_v41  ;;  %1410 = vmatprep.subr.bf16.mxu1 %v2060_v42  ;;  %v303_v41 = vld [vmem:[#allocation2] sm:$0xff]  ;;  %v305_v42 = vld [vmem:[#allocation2 + $0x10] sm:$0xff] }
  0x88   : > { %1249 = vmatprep.mubr.bf16.mxu0 %v1721_v44  ;;  %1391 = vmatprep.mubr.bf16.mxu1 %v1721_v44  ;;  %v306_v44 = vld [vmem:[#allocation2 + $0x18] sm:$0xff] }
  0x8a   : > { %1269 = vmatpush1.bf16.msra.mxu0 %v2055_v45  ;;  %1411 = vmatpush1.bf16.msra.mxu1 %v2058_v46 }
  0x8b   : > { %1270 = vmatprep.subr.bf16.mxu0 %v2063_v47  ;;  %1412 = vmatprep.subr.bf16.mxu1 %v2066_v48  ;;  %v307_v47 = vld [vmem:[#allocation2 + $0x20] sm:$0xff]  ;;  %v309_v48 = vld [vmem:[#allocation2 + $0x30] sm:$0xff] }
  0x8d   : > { %1250 = vmatmul.mubr.bf16.gmra.mrb[12].mxu0 %v1720_v50  ;;  %1392 = vmatmul.mubr.bf16.gmra.mrb[12].mxu1 %v1720_v50 }
  0x8e   : > { %1271 = vmatpush1.bf16.msra.mxu0 %v2061_v49  ;;  %1413 = vmatpush1.bf16.msra.mxu1 %v2064_v51 }
  0x8f   : > { %1272 = vmatprep.subr.bf16.mxu0 %v2069_v52  ;;  %1414 = vmatprep.subr.bf16.mxu1 %v2072_v53  ;;  %v308_v53 = vld [vmem:[#allocation2 + $0x28] sm:$0xff] }
  0x90   : > { %1290 = vmatprep.mubr.bf16.mxu0 %v2131_v54  ;;  %1432 = vmatprep.mubr.bf16.mxu1 %v2131_v54  ;;  %v310_v54 = vld [vmem:[#allocation2 + $0x38] sm:$0xff] }
  0x92   : > { %1273 = vmatpush1.bf16.msra.mxu0 %v2067_v55  ;;  %1415 = vmatpush1.bf16.msra.mxu1 %v2070_v56 }
  0x93   : > { %1274 = vmatprep.subr.bf16.mxu0 %v2075_v57  ;;  %1416 = vmatprep.subr.bf16.mxu1 %v2078_v58 }
  0x96   : > { %1275 = vmatpush1.bf16.msra.mxu0 %v2073_v59  ;;  %1417 = vmatpush1.bf16.msra.mxu1 %v2076_v60 }
  0x97   : > { %1276 = vmatprep.subr.bf16.mxu0 %v2083_v61  ;;  %1418 = vmatprep.subr.bf16.mxu1 %v2086_v62 }
  0x9a   : > { %1277 = vmatpush1.bf16.msra.mxu0 %v2081_v63  ;;  %1419 = vmatpush1.bf16.msra.mxu1 %v2084_v0 }
  0x9b   : > { %1278 = vmatprep.subr.bf16.mxu0 %v2090_v1  ;;  %1420 = vmatprep.subr.bf16.mxu1 %v2093_v2  ;;  %v311_v1 = vld [vmem:[#allocation2 + $0x40] sm:$0xff]  ;;  %v313_v2 = vld [vmem:[#allocation2 + $0x50] sm:$0xff] }
  0x9e   : > { %1279 = vmatpush1.bf16.msra.mxu0 %v2088_v3  ;;  %1421 = vmatpush1.bf16.msra.mxu1 %v2091_v4  ;;  %v312_v3 = vld [vmem:[#allocation2 + $0x48] sm:$0xff]  ;;  %v314_v4 = vld [vmem:[#allocation2 + $0x58] sm:$0xff] }
  0x9f   : > { %1280 = vmatprep.subr.bf16.mxu0 %v2098_v5  ;;  %1422 = vmatprep.subr.bf16.mxu1 %v2101_v6 }
  0xa2   : > { %1281 = vmatpush1.bf16.msra.mxu0 %v2096_v7  ;;  %1423 = vmatpush1.bf16.msra.mxu1 %v2099_v8  ;;  %v315_v7 = vld [vmem:[#allocation2 + $0x60] sm:$0xff]  ;;  %v317_v8 = vld [vmem:[#allocation2 + $0x70] sm:$0xff] }
  0xa3   : > { %1282 = vmatprep.subr.bf16.mxu0 %v2105_v9  ;;  %1424 = vmatprep.subr.bf16.mxu1 %v2108_v10 }
  0xa6   : > { %1283 = vmatpush1.bf16.msra.mxu0 %v2103_v11  ;;  %1425 = vmatpush1.bf16.msra.mxu1 %v2106_v12 }
  0xa7   : > { %1284 = vmatprep.subr.bf16.mxu0 %v2112_v13  ;;  %1426 = vmatprep.subr.bf16.mxu1 %v2115_v14  ;;  %v316_v13 = vld [vmem:[#allocation2 + $0x68] sm:$0xff]  ;;  %v318_v14 = vld [vmem:[#allocation2 + $0x78] sm:$0xff] }
  0xaa   : > { %1285 = vmatpush1.bf16.msra.mxu0 %v2110_v15  ;;  %1427 = vmatpush1.bf16.msra.mxu1 %v2113_v16 }
  0xab   : > { %1286 = vmatprep.subr.bf16.mxu0 %v2119_v17  ;;  %1428 = vmatprep.subr.bf16.mxu1 %v2122_v18 }
  0xae   : > { %1287 = vmatpush1.bf16.msra.mxu0 %v2117_v19  ;;  %1429 = vmatpush1.bf16.msra.mxu1 %v2120_v20 }
  0xaf   : > { %1288 = vmatprep.subr.bf16.mxu0 %v2125_v21  ;;  %1430 = vmatprep.subr.bf16.mxu1 %v2128_v22 }
  0xb2   : > { %1289 = vmatpush1.bf16.msra.mxu0 %v2123_v23  ;;  %1431 = vmatpush1.bf16.msra.mxu1 %v2126_v24 }
  0xb5   : > { %1291 = vmatmul.mubr.bf16.vlgmr.msra.gmra.mrb[0].mxu0 %v2129_v25  ;;  %1433 = vmatmul.mubr.bf16.vlgmr.msra.gmra.mrb[0].mxu1 %v2129_v25  ;;  %v319_v25 = vld [vmem:[#allocation2 + $0x80] sm:$0xff] }
  0xb6   : > { %1300 = vmatprep.mubr.bf16.mxu0 %v2132_v26  ;;  %1442 = vmatprep.mubr.bf16.mxu1 %v2132_v26  ;;  %v321_v26 = vld [vmem:[#allocation2 + $0x90] sm:$0xff] }
  0xbd   : > { %1301 = vmatmul.mubr.bf16.gmra.mrb[4].mxu0 %v2134_v27  ;;  %1443 = vmatmul.mubr.bf16.gmra.mrb[4].mxu1 %v2134_v27  ;;  %v320_v27 = vld [vmem:[#allocation2 + $0x88] sm:$0xff] }
  0xbe   : > { %1310 = vmatprep.mubr.bf16.mxu0 %v2135_v28  ;;  %1452 = vmatprep.mubr.bf16.mxu1 %v2135_v28  ;;  %v322_v28 = vld [vmem:[#allocation2 + $0x98] sm:$0xff] }
  0xc5   : > { %1311 = vmatmul.mubr.bf16.gmra.mrb[8].mxu0 %v2137_v30  ;;  %1453 = vmatmul.mubr.bf16.gmra.mrb[8].mxu1 %v2137_v30 }
  0xc6   : > { %1320 = vmatprep.mubr.bf16.mxu0 %v1723_v31  ;;  %1462 = vmatprep.mubr.bf16.mxu1 %v1723_v31  ;;  %v323_v31 = vld [vmem:[#allocation2 + $0xa0] sm:$0xff] }
  0xcd   : > { %1321 = vmatmul.mubr.bf16.gmra.mrb[16].mxu0 %v1722_v32  ;;  %1463 = vmatmul.mubr.bf16.gmra.mrb[16].mxu1 %v1722_v32  ;;  %v325_v32 = vld [vmem:[#allocation2 + $0xb0] sm:$0xff] }
 0x160   : > { %v2393_v33 = vpop.f32.mrb[12].mxu0  ;;  %v2395_v34 = vpop.f32.mrb[12].mxu1 }
 0x161   : > { %v2397_v35 = vpop.f32.mrb[13].mxu0  ;;  %v2399_v36 = vpop.f32.mrb[13].mxu1 }
 0x162   : > { %v1255_v37 = vpop.f32.mrb[14].mxu0  ;;  %v1397_v38 = vpop.f32.mrb[14].mxu1 }
 0x163   : > { %v1256_v39 = vpop.f32.mrb[15].mxu0  ;;  %v1398_v40 = vpop.f32.mrb[15].mxu1 }
 0x188   : > { %v1292_v45 = vpop.f32.mrb[0].mxu0  ;;  %v1434_v46 = vpop.f32.mrb[0].mxu1 }
 0x189   : > { %v1471_v49 = vadd.f32 %v1292_v45, %v303_v41  ;;  %v1473_v50 = vadd.f32 %v1434_v46, %v305_v42  ;;  %v1294_v51 = vpop.f32.mrb[1].mxu0  ;;  %v1436_v52 = vpop.f32.mrb[1].mxu1  ;;  %v324_v41 = vld [vmem:[#allocation2 + $0xa8] sm:$0xff]  ;;  %v326_v42 = vld [vmem:[#allocation2 + $0xb8] sm:$0xff] }
 0x18a   : > { %v1472_v55 = vadd.f32 %v1294_v51, %v304_v43  ;;  %v1474_v56 = vadd.f32 %v1436_v52, %v306_v44  ;;  %v1296_v57 = vpop.f32.mrb[2].mxu0  ;;  %v1438_v58 = vpop.f32.mrb[2].mxu1 }
 0x18b   : > { %1499 = vst [vmem:[#allocation2] sm:$0xff] %v1471_v49  ;;  %1501 = vst [vmem:[#allocation2 + $0x10] sm:$0xff] %v1473_v50  ;;  %v1475_v59 = vadd.f32 %v1296_v57, %v307_v47  ;;  %v1477_v60 = vadd.f32 %v1438_v58, %v309_v48  ;;  %v1298_v61 = vpop.f32.mrb[3].mxu0  ;;  %v1440_v62 = vpop.f32.mrb[3].mxu1 }
 0x18c   : > { %1500 = vst [vmem:[#allocation2 + $0x8] sm:$0xff] %v1472_v55  ;;  %1502 = vst [vmem:[#allocation2 + $0x18] sm:$0xff] %v1474_v56  ;;  %v1476_v63 = vadd.f32 %v1298_v61, %v308_v53  ;;  %v1478_v0 = vadd.f32 %v1440_v62, %v310_v54  ;;  %v327_v53 = vld [vmem:[#allocation2 + $0xc0] sm:$0xff]  ;;  %v329_v55 = vld [vmem:[#allocation2 + $0xd0] sm:$0xff] }
 0x18d   : > { %1503 = vst [vmem:[#allocation2 + $0x20] sm:$0xff] %v1475_v59  ;;  %1505 = vst [vmem:[#allocation2 + $0x30] sm:$0xff] %v1477_v60  ;;  %v328_v59 = vld [vmem:[#allocation2 + $0xc8] sm:$0xff]  ;;  %v330_v61 = vld [vmem:[#allocation2 + $0xd8] sm:$0xff] }
 0x18e   : > { %1504 = vst [vmem:[#allocation2 + $0x28] sm:$0xff] %v1476_v63  ;;  %1506 = vst [vmem:[#allocation2 + $0x38] sm:$0xff] %v1478_v0 }
 0x190   : > { %v1302_v5 = vpop.f32.mrb[4].mxu0  ;;  %v1444_v6 = vpop.f32.mrb[4].mxu1 }
 0x191   : > { %v1479_v9 = vadd.f32 %v1302_v5, %v311_v1  ;;  %v1481_v10 = vadd.f32 %v1444_v6, %v313_v2  ;;  %v1304_v11 = vpop.f32.mrb[5].mxu0  ;;  %v1446_v12 = vpop.f32.mrb[5].mxu1 }
 0x192   : > { %v1480_v15 = vadd.f32 %v1304_v11, %v312_v3  ;;  %v1482_v16 = vadd.f32 %v1446_v12, %v314_v4  ;;  %v1306_v17 = vpop.f32.mrb[6].mxu0  ;;  %v1448_v18 = vpop.f32.mrb[6].mxu1 }
 0x193   : > { %1507 = vst [vmem:[#allocation2 + $0x40] sm:$0xff] %v1479_v9  ;;  %1509 = vst [vmem:[#allocation2 + $0x50] sm:$0xff] %v1481_v10  ;;  %v1483_v19 = vadd.f32 %v1306_v17, %v315_v7  ;;  %v1485_v20 = vadd.f32 %v1448_v18, %v317_v8  ;;  %v1308_v21 = vpop.f32.mrb[7].mxu0  ;;  %v1450_v22 = vpop.f32.mrb[7].mxu1 }
 0x194   : > { %1508 = vst [vmem:[#allocation2 + $0x48] sm:$0xff] %v1480_v15  ;;  %1510 = vst [vmem:[#allocation2 + $0x58] sm:$0xff] %v1482_v16  ;;  %v1484_v23 = vadd.f32 %v1308_v21, %v316_v13  ;;  %v1486_v24 = vadd.f32 %v1450_v22, %v318_v14  ;;  %v1535_v9 = vld [vmem:[#allocation2 + $0x20] sm:$0xff] (!%p1852_p11)  ;;  %v1537_v11 = vld [vmem:[#allocation2 + $0x30] sm:$0xff] (!%p1852_p11) }
 0x195   : > { %1511 = vst [vmem:[#allocation2 + $0x60] sm:$0xff] %v1483_v19  ;;  %1513 = vst [vmem:[#allocation2 + $0x70] sm:$0xff] %v1485_v20  ;;  %v1536_v10 = vld [vmem:[#allocation2 + $0x28] sm:$0xff] (!%p1852_p11)  ;;  %v1538_v12 = vld [vmem:[#allocation2 + $0x38] sm:$0xff] (!%p1852_p11) }
 0x196   : > { %1512 = vst [vmem:[#allocation2 + $0x68] sm:$0xff] %v1484_v23  ;;  %1514 = vst [vmem:[#allocation2 + $0x78] sm:$0xff] %v1486_v24 }
 0x197   : > { %1563 = vst [vmem:[%s2507_s2 + $0x20] sm:$0xff] (!%p1852_p11), %v1535_v9  ;;  %1564 = vst [vmem:[%s2507_s2 + $0x28] sm:$0xff] (!%p1852_p11), %v1536_v10 }
 0x198   : > { %v1312_v29 = vpop.f32.mrb[8].mxu0  ;;  %v1454_v30 = vpop.f32.mrb[8].mxu1  ;;  %1565 = vst [vmem:[%s2507_s2 + $0x30] sm:$0xff] (!%p1852_p11), %v1537_v11  ;;  %1566 = vst [vmem:[%s2507_s2 + $0x38] sm:$0xff] (!%p1852_p11), %v1538_v12 }
 0x199   : > { %v1487_v37 = vadd.f32 %v1312_v29, %v319_v25  ;;  %v1489_v38 = vadd.f32 %v1454_v30, %v321_v26  ;;  %v1314_v39 = vpop.f32.mrb[9].mxu0  ;;  %v1456_v40 = vpop.f32.mrb[9].mxu1 }
 0x19a   : > { %v1488_v43 = vadd.f32 %v1314_v39, %v320_v27  ;;  %v1490_v44 = vadd.f32 %v1456_v40, %v322_v28  ;;  %v1316_v45 = vpop.f32.mrb[10].mxu0  ;;  %v1458_v46 = vpop.f32.mrb[10].mxu1  ;;  %v1539_v13 = vld [vmem:[#allocation2 + $0x40] sm:$0xff] (!%p1852_p11)  ;;  %v1541_v15 = vld [vmem:[#allocation2 + $0x50] sm:$0xff] (!%p1852_p11) }
 0x19b   : > { %1515 = vst [vmem:[#allocation2 + $0x80] sm:$0xff] %v1487_v37  ;;  %1517 = vst [vmem:[#allocation2 + $0x90] sm:$0xff] %v1489_v38  ;;  %v1491_v47 = vadd.f32 %v1316_v45, %v323_v31  ;;  %v1493_v48 = vadd.f32 %v1458_v46, %v325_v32  ;;  %v1318_v49 = vpop.f32.mrb[11].mxu0  ;;  %v1460_v50 = vpop.f32.mrb[11].mxu1  ;;  %v1540_v14 = vld [vmem:[#allocation2 + $0x48] sm:$0xff] (!%p1852_p11)  ;;  %v1542_v16 = vld [vmem:[#allocation2 + $0x58] sm:$0xff] (!%p1852_p11) }
 0x19c   : > { %1516 = vst [vmem:[#allocation2 + $0x88] sm:$0xff] %v1488_v43  ;;  %1518 = vst [vmem:[#allocation2 + $0x98] sm:$0xff] %v1490_v44  ;;  %v1492_v51 = vadd.f32 %v1318_v49, %v324_v41  ;;  %v1494_v52 = vadd.f32 %v1460_v50, %v326_v42  ;;  %v1543_v17 = vld [vmem:[#allocation2 + $0x60] sm:$0xff] (!%p1852_p11)  ;;  %v1545_v19 = vld [vmem:[#allocation2 + $0x70] sm:$0xff] (!%p1852_p11) }
 0x19d   : > { %1519 = vst [vmem:[#allocation2 + $0xa0] sm:$0xff] %v1491_v47  ;;  %1521 = vst [vmem:[#allocation2 + $0xb0] sm:$0xff] %v1493_v48  ;;  %v1544_v18 = vld [vmem:[#allocation2 + $0x68] sm:$0xff] (!%p1852_p11)  ;;  %v1546_v20 = vld [vmem:[#allocation2 + $0x78] sm:$0xff] (!%p1852_p11) }
 0x19e   : > { %1520 = vst [vmem:[#allocation2 + $0xa8] sm:$0xff] %v1492_v51  ;;  %1522 = vst [vmem:[#allocation2 + $0xb8] sm:$0xff] %v1494_v52 }
 0x19f   : > { %1567 = vst [vmem:[%s2507_s2 + $0x40] sm:$0xff] (!%p1852_p11), %v1539_v13  ;;  %1568 = vst [vmem:[%s2507_s2 + $0x48] sm:$0xff] (!%p1852_p11), %v1540_v14 }
 0x1a0   : > { %v1322_v54 = vpop.f32.mrb[16].mxu0  ;;  %v1464_v56 = vpop.f32.mrb[16].mxu1  ;;  %1530 = sbr.rel (%p1852_p11) target bundleno = 431 (0x1af), region = 59  ;;  %1569 = vst [vmem:[%s2507_s2 + $0x50] sm:$0xff] (!%p1852_p11), %v1541_v15  ;;  %1570 = vst [vmem:[%s2507_s2 + $0x58] sm:$0xff] (!%p1852_p11), %v1542_v16 }
 0x1a1   : > { %v1323_v57 = vadd.f32 %v1322_v54, %v2393_v33  ;;  %v1465_v58 = vadd.f32 %v1464_v56, %v2395_v34  ;;  %v1324_v60 = vpop.f32.mrb[17].mxu0  ;;  %v1466_v62 = vpop.f32.mrb[17].mxu1  ;;  %v1531_v33 = vld [vmem:[#allocation2] sm:$0xff] (!%p1852_p11)  ;;  %v1532_v34 = vld [vmem:[#allocation2 + $0x8] sm:$0xff] (!%p1852_p11)  ;;  %1571 = vst [vmem:[%s2507_s2 + $0x60] sm:$0xff] (!%p1852_p11), %v1543_v17  ;;  %1572 = vst [vmem:[%s2507_s2 + $0x68] sm:$0xff] (!%p1852_p11), %v1544_v18 }
 0x1a2   : > { %v1325_v63 = vadd.f32 %v1324_v60, %v2397_v35  ;;  %v1467_v0 = vadd.f32 %v1466_v62, %v2399_v36  ;;  %v1326_v1 = vpop.f32.mrb[18].mxu0  ;;  %v1468_v2 = vpop.f32.mrb[18].mxu1  ;;  %v1533_v35 = vld [vmem:[#allocation2 + $0x10] sm:$0xff] (!%p1852_p11)  ;;  %1559 = vst [vmem:[%s2507_s2] sm:$0xff] (!%p1852_p11), %v1531_v33  ;;  %1560 = vst [vmem:[%s2507_s2 + $0x8] sm:$0xff] (!%p1852_p11), %v1532_v34  ;;  %v1534_v36 = vld [vmem:[#allocation2 + $0x18] sm:$0xff] (!%p1852_p11) }
 0x1a3   : > { %v1495_v3 = vadd.f32 %v1323_v57, %v327_v53  ;;  %v1497_v4 = vadd.f32 %v1465_v58, %v329_v55  ;;  %v1327_v5 = vpop.f32.mrb[19].mxu0  ;;  %v1469_v6 = vpop.f32.mrb[19].mxu1  ;;  %1561 = vst [vmem:[%s2507_s2 + $0x10] sm:$0xff] (!%p1852_p11), %v1533_v35  ;;  %1562 = vst [vmem:[%s2507_s2 + $0x18] sm:$0xff] (!%p1852_p11), %v1534_v36  ;;  %v1547_v21 = vld [vmem:[#allocation2 + $0x80] sm:$0xff] (!%p1852_p11)  ;;  %v1548_v22 = vld [vmem:[#allocation2 + $0x88] sm:$0xff] (!%p1852_p11) }
 0x1a4   : > { %v1496_v7 = vadd.f32 %v1325_v63, %v328_v59  ;;  %v1498_v8 = vadd.f32 %v1467_v0, %v330_v61  ;;  %1573 = vst [vmem:[%s2507_s2 + $0x70] sm:$0xff] (!%p1852_p11), %v1545_v19  ;;  %1574 = vst [vmem:[%s2507_s2 + $0x78] sm:$0xff] (!%p1852_p11), %v1546_v20  ;;  %v1549_v23 = vld [vmem:[#allocation2 + $0x90] sm:$0xff] (!%p1852_p11)  ;;  %v1550_v24 = vld [vmem:[#allocation2 + $0x98] sm:$0xff] (!%p1852_p11) }
 0x1a5   : > { %1523 = vst [vmem:[#allocation2 + $0xc0] sm:$0xff] %v1495_v3  ;;  %1525 = vst [vmem:[#allocation2 + $0xd0] sm:$0xff] %v1497_v4  ;;  %v1551_v25 = vld [vmem:[#allocation2 + $0xa0] sm:$0xff] (!%p1852_p11)  ;;  %v1552_v26 = vld [vmem:[#allocation2 + $0xa8] sm:$0xff] (!%p1852_p11) }
 0x1a6   : > { %1524 = vst [vmem:[#allocation2 + $0xc8] sm:$0xff] %v1496_v7  ;;  %1526 = vst [vmem:[#allocation2 + $0xd8] sm:$0xff] %v1498_v8  ;;  %v1553_v27 = vld [vmem:[#allocation2 + $0xb0] sm:$0xff] (!%p1852_p11)  ;;  %v1554_v28 = vld [vmem:[#allocation2 + $0xb8] sm:$0xff] (!%p1852_p11) }
 0x1a7   : > { %1575 = vst [vmem:[%s2507_s2 + $0x80] sm:$0xff] %v1547_v21  ;;  %1576 = vst [vmem:[%s2507_s2 + $0x88] sm:$0xff] %v1548_v22 }
 0x1a8   : > { %1577 = vst [vmem:[%s2507_s2 + $0x90] sm:$0xff] %v1549_v23  ;;  %1578 = vst [vmem:[%s2507_s2 + $0x98] sm:$0xff] %v1550_v24 }
 0x1a9   : > { %1579 = vst [vmem:[%s2507_s2 + $0xa0] sm:$0xff] %v1551_v25  ;;  %1580 = vst [vmem:[%s2507_s2 + $0xa8] sm:$0xff] %v1552_v26 }
 0x1aa   : > { %1581 = vst [vmem:[%s2507_s2 + $0xb0] sm:$0xff] %v1553_v27  ;;  %1582 = vst [vmem:[%s2507_s2 + $0xb8] sm:$0xff] %v1554_v28 }
 0x1ac   : > { %v1555_v29 = vld [vmem:[#allocation2 + $0xc0] sm:$0xff]  ;;  %v1557_v31 = vld [vmem:[#allocation2 + $0xd0] sm:$0xff] }
 0x1ad   : > { %v1556_v30 = vld [vmem:[#allocation2 + $0xc8] sm:$0xff]  ;;  %1583 = vst [vmem:[%s2507_s2 + $0xc0] sm:$0xff] %v1555_v29  ;;  %1585 = vst [vmem:[%s2507_s2 + $0xd0] sm:$0xff] %v1557_v31  ;;  %v1558_v32 = vld [vmem:[#allocation2 + $0xd8] sm:$0xff] }
 0x1ae   : > { %1584 = vst [vmem:[%s2507_s2 + $0xc8] sm:$0xff] %v1556_v30  ;;  %1586 = vst [vmem:[%s2507_s2 + $0xd8] sm:$0xff] %v1558_v32 }
 0x1af PF: > { %s12_s13 = sadd.s32 1, %s2178_s13   ;;  %s2508_s9 = smov %s2166_s10 }
 0x1b0   : > { %p9_p12 = scmp.ge.s32.totalorder %s12_s13, 4   ;;  %s2509_s10 = smov %s2231_s17 }
 0x1b1   : > { %s2510_s11 = smov %s2174_s12  ;;  %s2511_s12 = smov %s2513_s14 }
 0x1b2   :  { %11 = sbr.rel (!%p9_p12) target bundleno = 3 (0x3), region = 97 }

// kernel: dcgan_generator_forward.10
= control target key start
LH: loop header
LB: loop body
LE: loop exit
PB: predicated region body
PF: predicated region fallthrough
CT: control target
= control target key end

     0   :  { %s373_s0 = inlined_call_operand.vmem [shape: f32[128,128], index: 0, kind: input, shape index: {}]   ;;  %s374_s1 = inlined_call_operand.vmem [shape: f32[1,128], index: 1, kind: input, shape index: {}]   ;;  %s375_s2 = inlined_call_operand.vmem [shape: f32[1,128], index: 2, kind: input, shape index: {}]   ;;  %s376_s3 = inlined_call_operand.vmem [shape: f32[128,128], index: 3, kind: output, shape index: {}]  }
   0x1   :  { %v14_v0 = vld [vmem:[%s373_s0] sm:$0xff]  ;;  %v15_v1 = vld [vmem:[%s373_s0 + $0x8] sm:$0xff]  ;;  %v16_v2 = vld [vmem:[%s373_s0 + $0x10] sm:$0xff] }
   0x2   :  { %v30_v3 = vadd.f32 %v15_v1, %v14_v0  ;;  %v17_v4 = vld [vmem:[%s373_s0 + $0x18] sm:$0xff]  ;;  %v18_v6 = vld [vmem:[%s373_s0 + $0x20] sm:$0xff]  ;;  %v19_v8 = vld [vmem:[%s373_s0 + $0x28] sm:$0xff] }
   0x3   :  { %v20_v10 = vld [vmem:[%s373_s0 + $0x30] sm:$0xff]  ;;  %v21_v12 = vld [vmem:[%s373_s0 + $0x38] sm:$0xff]  ;;  %v22_v14 = vld [vmem:[%s373_s0 + $0x40] sm:$0xff] }
   0x4   :  { %v31_v5 = vadd.f32 %v30_v3, %v16_v2  ;;  %v23_v16 = vld [vmem:[%s373_s0 + $0x48] sm:$0xff]  ;;  %v24_v18 = vld [vmem:[%s373_s0 + $0x50] sm:$0xff]  ;;  %v25_v20 = vld [vmem:[%s373_s0 + $0x58] sm:$0xff] }
   0x5   :  { %v26_v22 = vld [vmem:[%s373_s0 + $0x60] sm:$0xff]  ;;  %v27_v24 = vld [vmem:[%s373_s0 + $0x68] sm:$0xff]  ;;  %v28_v26 = vld [vmem:[%s373_s0 + $0x70] sm:$0xff] }
   0x6   :  { %v32_v7 = vadd.f32 %v31_v5, %v17_v4  ;;  %v29_v28 = vld [vmem:[%s373_s0 + $0x78] sm:$0xff] }
   0x8   :  { %v33_v9 = vadd.f32 %v32_v7, %v18_v6 }
   0xa   :  { %v34_v11 = vadd.f32 %v33_v9, %v19_v8 }
   0xc   :  { %v35_v13 = vadd.f32 %v34_v11, %v20_v10 }
   0xe   :  { %v36_v15 = vadd.f32 %v35_v13, %v21_v12 }
  0x10   :  { %v37_v17 = vadd.f32 %v36_v15, %v22_v14 }
  0x12   :  { %v38_v19 = vadd.f32 %v37_v17, %v23_v16 }
  0x14   :  { %v39_v21 = vadd.f32 %v38_v19, %v24_v18 }
  0x16   :  { %v40_v23 = vadd.f32 %v39_v21, %v25_v20 }
  0x18   :  { %v41_v25 = vadd.f32 %v40_v23, %v26_v22 }
  0x1a   :  { %v42_v27 = vadd.f32 %v41_v25, %v27_v24 }
  0x1c   :  { %v43_v29 = vadd.f32 %v42_v27, %v28_v26 }
  0x1e   :  { %v44_v30 = vadd.f32 %v43_v29, %v29_v28 }
  0x20   :  { %v45_v31 = vrot.slane %v44_v30, 4 }
  0x22   :  { %v46_v32 = vadd.f32 %v45_v31, %v44_v30  ;;  %v207_v30 = vld [vmem:[%s374_s1] ss:$0 sm:$0xff] }
  0x24   :  { %v47_v33 = vrot.slane %v46_v32, 2 }
  0x26   :  { %v48_v34 = vadd.f32 %v47_v33, %v46_v32 }
  0x28   :  { %v49_v35 = vrot.slane %v48_v34, 1 }
  0x2a   :  { %v50_v36 = vadd.f32 %v49_v35, %v48_v34  ;;  %v208_v35 = vld [vmem:[%s375_s2] ss:$0 sm:$0xff] }
  0x2c   :  { %v52_v37 = vmul.f32 0.0078125, %v50_v36 }
  0x2e   :  { %v53_v38 = vsub.f32 %v14_v0, %v52_v37  ;;  %v54_v39 = vsub.f32 %v15_v1, %v52_v37  ;;  %v55_v40 = vsub.f32 %v16_v2, %v52_v37  ;;  %v56_v41 = vsub.f32 %v17_v4, %v52_v37 }
  0x2f   :  { %v57_v44 = vsub.f32 %v18_v6, %v52_v37  ;;  %v58_v46 = vsub.f32 %v19_v8, %v52_v37  ;;  %v59_v49 = vsub.f32 %v20_v10, %v52_v37  ;;  %v60_v52 = vsub.f32 %v21_v12, %v52_v37 }
  0x30   :  { %v69_v42 = vmul.f32 %v53_v38, %v53_v38  ;;  %v70_v43 = vmul.f32 %v54_v39, %v54_v39  ;;  %v71_v45 = vmul.f32 %v55_v40, %v55_v40  ;;  %v72_v47 = vmul.f32 %v56_v41, %v56_v41 }
  0x31   :  { %v73_v50 = vmul.f32 %v57_v44, %v57_v44  ;;  %v74_v53 = vmul.f32 %v58_v46, %v58_v46  ;;  %v279_v55 = vsub.f32 %v22_v14, %v52_v37  ;;  %v75_v56 = vmul.f32 %v59_v49, %v59_v49 }
  0x32   :  { %v85_v48 = vadd.f32 %v70_v43, %v69_v42  ;;  %v281_v58 = vsub.f32 %v23_v16, %v52_v37  ;;  %v76_v59 = vmul.f32 %v60_v52, %v60_v52  ;;  %v283_v61 = vsub.f32 %v24_v18, %v52_v37 }
  0x33   :  { %v77_v62 = vmul.f32 %v279_v55, %v279_v55  ;;  %v287_v0 = vsub.f32 %v25_v20, %v52_v37  ;;  %v291_v3 = vsub.f32 %v26_v22, %v52_v37  ;;  %v295_v6 = vsub.f32 %v27_v24, %v52_v37 }
  0x34   :  { %v86_v51 = vadd.f32 %v85_v48, %v71_v45  ;;  %v78_v1 = vmul.f32 %v281_v58, %v281_v58  ;;  %v79_v4 = vmul.f32 %v283_v61, %v283_v61  ;;  %v299_v9 = vsub.f32 %v28_v26, %v52_v37 }
  0x35   :  { %v80_v7 = vmul.f32 %v287_v0, %v287_v0  ;;  %v81_v10 = vmul.f32 %v291_v3, %v291_v3  ;;  %v303_v12 = vsub.f32 %v29_v28, %v52_v37  ;;  %v82_v13 = vmul.f32 %v295_v6, %v295_v6 }
  0x36   :  { %v87_v54 = vadd.f32 %v86_v51, %v72_v47  ;;  %v83_v15 = vmul.f32 %v299_v9, %v299_v9 }
  0x37   :  { %v84_v17 = vmul.f32 %v303_v12, %v303_v12 }
  0x38   :  { %v88_v57 = vadd.f32 %v87_v54, %v73_v50 }
  0x3a   :  { %v89_v60 = vadd.f32 %v88_v57, %v74_v53 }
  0x3c   :  { %v90_v63 = vadd.f32 %v89_v60, %v75_v56 }
  0x3e   :  { %v91_v2 = vadd.f32 %v90_v63, %v76_v59 }
  0x40   :  { %v92_v5 = vadd.f32 %v91_v2, %v77_v62 }
  0x42   :  { %v93_v8 = vadd.f32 %v92_v5, %v78_v1 }
  0x44   :  { %v94_v11 = vadd.f32 %v93_v8, %v79_v4 }
  0x46   :  { %v95_v14 = vadd.f32 %v94_v11, %v80_v7 }
  0x48   :  { %v96_v16 = vadd.f32 %v95_v14, %v81_v10 }
  0x4a   :  { %v97_v18 = vadd.f32 %v96_v16, %v82_v13 }
  0x4c   :  { %v98_v19 = vadd.f32 %v97_v18, %v83_v15 }
  0x4e   :  { %v99_v20 = vadd.f32 %v98_v19, %v84_v17 }
  0x50   :  { %v100_v21 = vrot.slane %v99_v20, 4 }
  0x52   :  { %v101_v22 = vadd.f32 %v100_v21, %v99_v20 }
  0x54   :  { %v102_v23 = vrot.slane %v101_v22, 2 }
  0x56   :  { %v103_v24 = vadd.f32 %v102_v23, %v101_v22 }
  0x58   :  { %v104_v25 = vrot.slane %v103_v24, 1 }
  0x5a   :  { %v105_v26 = vadd.f32 %v104_v25, %v103_v24 }
  0x5c   :  { %v106_v27 = vmul.f32 0.0078125, %v105_v26 }
  0x5e   :  { %v107_v28 = vadd.f32 1e-05, %v106_v27 }
  0x60   :  { %209 = vrsqrt.f32 %v107_v28 }
  0x6a   :  { %v210_v29 = vpop.eup %209 }
  0x6b   :  { %v109_v31 = vmul.f32 %v210_v29, %v53_v38  ;;  %v110_v32 = vmul.f32 %v210_v29, %v54_v39  ;;  %v111_v33 = vmul.f32 %v210_v29, %v55_v40  ;;  %v112_v34 = vmul.f32 %v210_v29, %v56_v41 }
  0x6c   :  { %v113_v36 = vmul.f32 %v210_v29, %v57_v44  ;;  %v114_v37 = vmul.f32 %v210_v29, %v58_v46  ;;  %v115_v42 = vmul.f32 %v210_v29, %v59_v49  ;;  %v116_v43 = vmul.f32 %v210_v29, %v60_v52 }
  0x6d   :  { %v132_v45 = vmul.f32 %v207_v30, %v109_v31  ;;  %v133_v47 = vmul.f32 %v207_v30, %v110_v32  ;;  %v134_v48 = vmul.f32 %v207_v30, %v111_v33  ;;  %v135_v50 = vmul.f32 %v207_v30, %v112_v34 }
  0x6e   :  { %v136_v51 = vmul.f32 %v207_v30, %v113_v36  ;;  %v137_v53 = vmul.f32 %v207_v30, %v114_v37  ;;  %v138_v54 = vmul.f32 %v207_v30, %v115_v42  ;;  %v139_v56 = vmul.f32 %v207_v30, %v116_v43 }
  0x6f   :  { %v155_v38 = vadd.f32 %v208_v35, %v132_v45  ;;  %v156_v39 = vadd.f32 %v208_v35, %v133_v47  ;;  %v157_v40 = vadd.f32 %v208_v35, %v134_v48  ;;  %v158_v41 = vadd.f32 %v208_v35, %v135_v50 }
  0x70   :  { %v159_v57 = vadd.f32 %v208_v35, %v136_v51  ;;  %v160_v59 = vadd.f32 %v208_v35, %v137_v53  ;;  %v161_v60 = vadd.f32 %v208_v35, %v138_v54  ;;  %v162_v62 = vadd.f32 %v208_v35, %v139_v56 }
  0x71   :  { %v171_v44 = vmax.f32 %v155_v38, 0.0  ;;  %v172_v46 = vmax.f32 %v156_v39, 0.0  ;;  %v173_v49 = vmax.f32 %v157_v40, 0.0  ;;  %v174_v52 = vmax.f32 %v158_v41, 0.0 }
  0x72   :  { %v175_v63 = vmax.f32 %v159_v57, 0.0  ;;  %v176_v1 = vmax.f32 %v160_v59, 0.0  ;;  %v177_v2 = vmax.f32 %v161_v60, 0.0  ;;  %v178_v4 = vmax.f32 %v162_v62, 0.0 }
  0x73   :  { %187 = vst [vmem:[%s376_s3] sm:$0xff] %v171_v44  ;;  %188 = vst [vmem:[%s376_s3 + $0x8] sm:$0xff] %v172_v46  ;;  %v117_v5 = vmul.f32 %v210_v29, %v279_v55  ;;  %v118_v7 = vmul.f32 %v210_v29, %v281_v58  ;;  %v119_v8 = vmul.f32 %v210_v29, %v283_v61 }
  0x74   :  { %189 = vst [vmem:[%s376_s3 + $0x10] sm:$0xff] %v173_v49  ;;  %190 = vst [vmem:[%s376_s3 + $0x18] sm:$0xff] %v174_v52  ;;  %v120_v10 = vmul.f32 %v210_v29, %v287_v0  ;;  %v121_v55 = vmul.f32 %v210_v29, %v291_v3  ;;  %v122_v58 = vmul.f32 %v210_v29, %v295_v6 }
  0x75   :  { %191 = vst [vmem:[%s376_s3 + $0x20] sm:$0xff] %v175_v63  ;;  %192 = vst [vmem:[%s376_s3 + $0x28] sm:$0xff] %v176_v1  ;;  %v123_v61 = vmul.f32 %v210_v29, %v299_v9  ;;  %v124_v0 = vmul.f32 %v210_v29, %v303_v12  ;;  %v140_v11 = vmul.f32 %v207_v30, %v117_v5 }
  0x76   :  { %193 = vst [vmem:[%s376_s3 + $0x30] sm:$0xff] %v177_v2  ;;  %194 = vst [vmem:[%s376_s3 + $0x38] sm:$0xff] %v178_v4  ;;  %v141_v13 = vmul.f32 %v207_v30, %v118_v7  ;;  %v142_v14 = vmul.f32 %v207_v30, %v119_v8  ;;  %v143_v15 = vmul.f32 %v207_v30, %v120_v10 }
  0x77   :  { %v144_v16 = vmul.f32 %v207_v30, %v121_v55  ;;  %v145_v17 = vmul.f32 %v207_v30, %v122_v58  ;;  %v146_v18 = vmul.f32 %v207_v30, %v123_v61  ;;  %v147_v19 = vmul.f32 %v207_v30, %v124_v0 }
  0x78   :  { %v163_v20 = vadd.f32 %v208_v35, %v140_v11  ;;  %v164_v21 = vadd.f32 %v208_v35, %v141_v13  ;;  %v165_v22 = vadd.f32 %v208_v35, %v142_v14  ;;  %v166_v23 = vadd.f32 %v208_v35, %v143_v15 }
  0x79   :  { %v167_v24 = vadd.f32 %v208_v35, %v144_v16  ;;  %v168_v3 = vadd.f32 %v208_v35, %v145_v17  ;;  %v169_v25 = vadd.f32 %v208_v35, %v146_v18  ;;  %v170_v6 = vadd.f32 %v208_v35, %v147_v19 }
  0x7a   :  { %v179_v26 = vmax.f32 %v163_v20, 0.0  ;;  %v180_v9 = vmax.f32 %v164_v21, 0.0  ;;  %v181_v27 = vmax.f32 %v165_v22, 0.0  ;;  %v182_v12 = vmax.f32 %v166_v23, 0.0 }
  0x7b   :  { %v183_v28 = vmax.f32 %v167_v24, 0.0  ;;  %v184_v29 = vmax.f32 %v168_v3, 0.0  ;;  %v185_v31 = vmax.f32 %v169_v25, 0.0  ;;  %v186_v32 = vmax.f32 %v170_v6, 0.0 }
  0x7c   :  { %195 = vst [vmem:[%s376_s3 + $0x40] sm:$0xff] %v179_v26  ;;  %196 = vst [vmem:[%s376_s3 + $0x48] sm:$0xff] %v180_v9 }
  0x7d   :  { %197 = vst [vmem:[%s376_s3 + $0x50] sm:$0xff] %v181_v27  ;;  %198 = vst [vmem:[%s376_s3 + $0x58] sm:$0xff] %v182_v12 }
  0x7e   :  { %199 = vst [vmem:[%s376_s3 + $0x60] sm:$0xff] %v183_v28  ;;  %200 = vst [vmem:[%s376_s3 + $0x68] sm:$0xff] %v184_v29 }
  0x7f   :  { %201 = vst [vmem:[%s376_s3 + $0x70] sm:$0xff] %v185_v31  ;;  %202 = vst [vmem:[%s376_s3 + $0x78] sm:$0xff] %v186_v32 }

// kernel: dcgan_generator_forward.11
= control target key start
LH: loop header
LB: loop body
LE: loop exit
PB: predicated region body
PF: predicated region fallthrough
CT: control target
= control target key end

     0   :  { %s1894_s9 = smov 0   ;;  %s1896_s10 = smov 0   ;;  %s2250_s0 = inlined_call_operand.vmem [shape: bf16[256,512], index: 0, kind: input, shape index: {}]   ;;  %s2251_s1 = inlined_call_operand.vmem [shape: bf16[512,256], index: 1, kind: input, shape index: {}]   ;;  %s2252_s2 = inlined_call_operand.vmem [shape: f32[256,256], index: 2, kind: output, shape index: {}]  }
   0x1   :  { %s1898_s11 = smov 0   ;;  %s1900_s12 = smov 0  }
   0x2   :  { %s1902_s13 = smov 0   ;;  %s1904_s14 = smov 0  }
   0x3   :  { %s1906_s15 = smov 0   ;;  %s1908_s16 = smov 0  }
   0x4   :  { %s1910_s17 = smov 0  }
   0x5 LB: > { %s1443_s18 = sadd.s32 4294967295, %s1877_s17   ;;  %s27_s19 = sadd.s32 1, %s1869_s15  ;;  %s1877_s17 = sphi %s1910_s17, %s12_s17   ;;  %s1873_s16 = sphi %s1908_s16, %s2261_s16   ;;  %s1869_s15 = sphi %s1906_s15, %s2260_s15   ;;  %s1865_s14 = sphi %s1904_s14, %s2259_s14   ;;  %s1861_s13 = sphi %s1902_s13, %s2258_s13   ;;  %s1857_s12 = sphi %s1900_s12, %s2257_s12   ;;  %s1853_s11 = sphi %s1898_s11, %s2256_s11   ;;  %s1849_s10 = sphi %s1896_s10, %s2255_s10   ;;  %s1845_s9 = sphi %s1894_s9, %s2254_s9  }
   0x6   : > { %p29_p0 = scmp.ge.s32.totalorder %s27_s19, 2  ;;  %s31_s20 = sadd.s32 1, %s1873_s16 }
   0x7   : > { %s68_s21 = sadd.s32 1, %s1857_s12  ;;  %p75_p1 = scmp.ne.s32.totalorder %s1857_s12, %s1853_s11 }
   0x8   : > { %s2263_s19 = smov (%p29_p0, %s27_s19), 0  ;;  %s2265_s20 = smov (!%p29_p0, %s31_s20), %s1873_s16 }
   0x9   : > { %s64_s22 = ssub.s32 %s1869_s15, %s2263_s19  ;;  %p76_p2 = scmp.eq.s32.totalorder %s1877_s17, 0 }
   0xa   : > { %p33_p3 = scmp.ge.s32.totalorder %s2265_s20, 2  ;;  %p66_p4 = scmp.eq.s32.totalorder %s64_s22, 0 }
   0xb   : > { %p77_p5 = por %p76_p2, %p75_p1  ;;  %s96_s23 = sadd.s32 1, %s1849_s10 }
   0xc   : > { %s2267_s20 = smov (%p33_p3, %s2265_s20), 0  ;;  %p106_p6 = scmp.ne.s32.totalorder %s1849_s10, %s1845_s9 }
   0xd   : > { %s1955_s24 = scalar_select %p66_p4, %s1857_s12, %s68_s21  }
   0xe   : > { %s91_s25 = ssub.s32 %s1873_s16, %s2267_s20  ;;  %p107_p7 = scmp.eq.s32.totalorder %s1443_s18, 3 }
   0xf   : > { %s93_s26 = sor.u32 %s91_s25, %s64_s22  ;;  %p1446_p10 = scmp.ge.s32.totalorder %s1877_s17, 4 }
  0x10   : > { %p94_p8 = scmp.eq.s32.totalorder %s93_s26, 0  ;;  %p1961_p9 = por %p107_p7, %p106_p6 }
  0x11   : > { %129 = sbr.rel (%p1446_p10) target bundleno = 70 (0x46), region = 16 }
  0x12   : > { %s1966_s28 = scalar_select %p94_p8, %s1849_s10, %s96_s23  }
  0x18   : > { %147 = sbr.rel (!%p77_p5) target bundleno = 70 (0x46), region = 24  ;;  %s149_s29 = sand.u32 (%p77_p5), 1, %s1857_s12  }
  0x19   : > { %s1448_s30 = sshll.u32 (%p77_p5), %s1869_s15, 2  ;;  %s1447_s3 = sshll.u32 (%p77_p5), %s149_s29, 8 }
  0x1a   : > { %s1974_s6 = scalar_lea.vmem (%p77_p5), %s2251_s1, %s1448_s30  ;;  %s1978_s7 = scalar_lea.vmem (%p77_p5), [#allocation3], %s1447_s3 }
  0x1b   : > { %v172_v0 = vld [vmem:[%s1974_s6] sm:$0xf] (%p77_p5)  ;;  %v174_v1 = vld [vmem:[%s1974_s6 + $0x8] sm:$0xf] (%p77_p5)  ;;  %v176_v2 = vld [vmem:[%s1974_s6 + $0x10] sm:$0xf] (%p77_p5) }
  0x1c   : > { %173 = vst [vmem:[%s1978_s7] sm:$0xf] (%p77_p5), %v172_v0  ;;  %175 = vst [vmem:[%s1978_s7 + $0x4] sm:$0xf] (%p77_p5), %v174_v1  ;;  %v178_v3 = vld [vmem:[%s1974_s6 + $0x18] sm:$0xf] (%p77_p5) }
  0x1d   : > { %v180_v4 = vld [vmem:[%s1974_s6 + $0x20] sm:$0xf] (%p77_p5)  ;;  %177 = vst [vmem:[%s1978_s7 + $0x8] sm:$0xf] (%p77_p5), %v176_v2  ;;  %179 = vst [vmem:[%s1978_s7 + $0xc] sm:$0xf] (%p77_p5), %v178_v3 }
  0x1e   : > { %181 = vst [vmem:[%s1978_s7 + $0x10] sm:$0xf] (%p77_p5), %v180_v4  ;;  %v182_v5 = vld [vmem:[%s1974_s6 + $0x28] sm:$0xf] (%p77_p5)  ;;  %v184_v6 = vld [vmem:[%s1974_s6 + $0x30] sm:$0xf] (%p77_p5) }
  0x1f   : > { %v186_v7 = vld [vmem:[%s1974_s6 + $0x38] sm:$0xf]  ;;  %183 = vst [vmem:[%s1978_s7 + $0x14] sm:$0xf] %v182_v5  ;;  %185 = vst [vmem:[%s1978_s7 + $0x18] sm:$0xf] %v184_v6 }
  0x20   : > { %187 = vst [vmem:[%s1978_s7 + $0x1c] sm:$0xf] %v186_v7  ;;  %v188_v8 = vld [vmem:[%s1974_s6 + $0x40] sm:$0xf]  ;;  %v190_v9 = vld [vmem:[%s1974_s6 + $0x48] sm:$0xf] }
  0x21   : > { %v192_v10 = vld [vmem:[%s1974_s6 + $0x50] sm:$0xf]  ;;  %189 = vst [vmem:[%s1978_s7 + $0x20] sm:$0xf] %v188_v8  ;;  %191 = vst [vmem:[%s1978_s7 + $0x24] sm:$0xf] %v190_v9 }
  0x22   : > { %193 = vst [vmem:[%s1978_s7 + $0x28] sm:$0xf] %v192_v10  ;;  %v194_v11 = vld [vmem:[%s1974_s6 + $0x58] sm:$0xf]  ;;  %v196_v12 = vld [vmem:[%s1974_s6 + $0x60] sm:$0xf] }
  0x23   : > { %v198_v13 = vld [vmem:[%s1974_s6 + $0x68] sm:$0xf]  ;;  %195 = vst [vmem:[%s1978_s7 + $0x2c] sm:$0xf] %v194_v11  ;;  %197 = vst [vmem:[%s1978_s7 + $0x30] sm:$0xf] %v196_v12 }
  0x24   : > { %199 = vst [vmem:[%s1978_s7 + $0x34] sm:$0xf] %v198_v13  ;;  %v200_v14 = vld [vmem:[%s1974_s6 + $0x70] sm:$0xf]  ;;  %v202_v15 = vld [vmem:[%s1974_s6 + $0x78] sm:$0xf] }
  0x25   : > { %v204_v16 = vld [vmem:[%s1974_s6 + $0x80] sm:$0xf]  ;;  %201 = vst [vmem:[%s1978_s7 + $0x38] sm:$0xf] %v200_v14  ;;  %203 = vst [vmem:[%s1978_s7 + $0x3c] sm:$0xf] %v202_v15 }
  0x26   : > { %205 = vst [vmem:[%s1978_s7 + $0x40] sm:$0xf] %v204_v16  ;;  %v206_v17 = vld [vmem:[%s1974_s6 + $0x88] sm:$0xf]  ;;  %v208_v18 = vld [vmem:[%s1974_s6 + $0x90] sm:$0xf] }
  0x27   : > { %v210_v19 = vld [vmem:[%s1974_s6 + $0x98] sm:$0xf]  ;;  %207 = vst [vmem:[%s1978_s7 + $0x44] sm:$0xf] %v206_v17  ;;  %209 = vst [vmem:[%s1978_s7 + $0x48] sm:$0xf] %v208_v18 }
  0x28   : > { %211 = vst [vmem:[%s1978_s7 + $0x4c] sm:$0xf] %v210_v19  ;;  %v212_v20 = vld [vmem:[%s1974_s6 + $0xa0] sm:$0xf]  ;;  %v214_v21 = vld [vmem:[%s1974_s6 + $0xa8] sm:$0xf] }
  0x29   : > { %v216_v22 = vld [vmem:[%s1974_s6 + $0xb0] sm:$0xf]  ;;  %213 = vst [vmem:[%s1978_s7 + $0x50] sm:$0xf] %v212_v20  ;;  %215 = vst [vmem:[%s1978_s7 + $0x54] sm:$0xf] %v214_v21 }
  0x2a   : > { %217 = vst [vmem:[%s1978_s7 + $0x58] sm:$0xf] %v216_v22  ;;  %v218_v23 = vld [vmem:[%s1974_s6 + $0xb8] sm:$0xf]  ;;  %v220_v24 = vld [vmem:[%s1974_s6 + $0xc0] sm:$0xf] }
  0x2b   : > { %v222_v25 = vld [vmem:[%s1974_s6 + $0xc8] sm:$0xf]  ;;  %219 = vst [vmem:[%s1978_s7 + $0x5c] sm:$0xf] %v218_v23  ;;  %221 = vst [vmem:[%s1978_s7 + $0x60] sm:$0xf] %v220_v24 }
  0x2c   : > { %223 = vst [vmem:[%s1978_s7 + $0x64] sm:$0xf] %v222_v25  ;;  %v224_v26 = vld [vmem:[%s1974_s6 + $0xd0] sm:$0xf]  ;;  %v226_v27 = vld [vmem:[%s1974_s6 + $0xd8] sm:$0xf] }
  0x2d   : > { %v228_v28 = vld [vmem:[%s1974_s6 + $0xe0] sm:$0xf]  ;;  %225 = vst [vmem:[%s1978_s7 + $0x68] sm:$0xf] %v224_v26  ;;  %227 = vst [vmem:[%s1978_s7 + $0x6c] sm:$0xf] %v226_v27 }
  0x2e   : > { %229 = vst [vmem:[%s1978_s7 + $0x70] sm:$0xf] %v228_v28  ;;  %v230_v29 = vld [vmem:[%s1974_s6 + $0xe8] sm:$0xf]  ;;  %v232_v30 = vld [vmem:[%s1974_s6 + $0xf0] sm:$0xf] }
  0x2f   : > { %v234_v31 = vld [vmem:[%s1974_s6 + $0xf8] sm:$0xf]  ;;  %231 = vst [vmem:[%s1978_s7 + $0x74] sm:$0xf] %v230_v29  ;;  %233 = vst [vmem:[%s1978_s7 + $0x78] sm:$0xf] %v232_v30 }
  0x30   : > { %235 = vst [vmem:[%s1978_s7 + $0x7c] sm:$0xf] %v234_v31  ;;  %v236_v32 = vld [vmem:[%s1974_s6 + $0x100] sm:$0xf]  ;;  %v238_v33 = vld [vmem:[%s1974_s6 + $0x108] sm:$0xf] }
  0x31   : > { %v240_v34 = vld [vmem:[%s1974_s6 + $0x110] sm:$0xf]  ;;  %237 = vst [vmem:[%s1978_s7 + $0x80] sm:$0xf] %v236_v32  ;;  %239 = vst [vmem:[%s1978_s7 + $0x84] sm:$0xf] %v238_v33 }
  0x32   : > { %241 = vst [vmem:[%s1978_s7 + $0x88] sm:$0xf] %v240_v34  ;;  %v242_v35 = vld [vmem:[%s1974_s6 + $0x118] sm:$0xf]  ;;  %v244_v36 = vld [vmem:[%s1974_s6 + $0x120] sm:$0xf] }
  0x33   : > { %v246_v37 = vld [vmem:[%s1974_s6 + $0x128] sm:$0xf]  ;;  %243 = vst [vmem:[%s1978_s7 + $0x8c] sm:$0xf] %v242_v35  ;;  %245 = vst [vmem:[%s1978_s7 + $0x90] sm:$0xf] %v244_v36 }
  0x34   : > { %247 = vst [vmem:[%s1978_s7 + $0x94] sm:$0xf] %v246_v37  ;;  %v248_v38 = vld [vmem:[%s1974_s6 + $0x130] sm:$0xf]  ;;  %v250_v39 = vld [vmem:[%s1974_s6 + $0x138] sm:$0xf] }
  0x35   : > { %v252_v40 = vld [vmem:[%s1974_s6 + $0x140] sm:$0xf]  ;;  %249 = vst [vmem:[%s1978_s7 + $0x98] sm:$0xf] %v248_v38  ;;  %251 = vst [vmem:[%s1978_s7 + $0x9c] sm:$0xf] %v250_v39 }
  0x36   : > { %253 = vst [vmem:[%s1978_s7 + $0xa0] sm:$0xf] %v252_v40  ;;  %v254_v41 = vld [vmem:[%s1974_s6 + $0x148] sm:$0xf]  ;;  %v256_v42 = vld [vmem:[%s1974_s6 + $0x150] sm:$0xf] }
  0x37   : > { %v258_v43 = vld [vmem:[%s1974_s6 + $0x158] sm:$0xf]  ;;  %255 = vst [vmem:[%s1978_s7 + $0xa4] sm:$0xf] %v254_v41  ;;  %257 = vst [vmem:[%s1978_s7 + $0xa8] sm:$0xf] %v256_v42 }
  0x38   : > { %259 = vst [vmem:[%s1978_s7 + $0xac] sm:$0xf] %v258_v43  ;;  %v260_v44 = vld [vmem:[%s1974_s6 + $0x160] sm:$0xf]  ;;  %v262_v45 = vld [vmem:[%s1974_s6 + $0x168] sm:$0xf] }
  0x39   : > { %v264_v46 = vld [vmem:[%s1974_s6 + $0x170] sm:$0xf]  ;;  %261 = vst [vmem:[%s1978_s7 + $0xb0] sm:$0xf] %v260_v44  ;;  %263 = vst [vmem:[%s1978_s7 + $0xb4] sm:$0xf] %v262_v45 }
  0x3a   : > { %265 = vst [vmem:[%s1978_s7 + $0xb8] sm:$0xf] %v264_v46  ;;  %v266_v47 = vld [vmem:[%s1974_s6 + $0x178] sm:$0xf]  ;;  %v268_v48 = vld [vmem:[%s1974_s6 + $0x180] sm:$0xf] }
  0x3b   : > { %v270_v49 = vld [vmem:[%s1974_s6 + $0x188] sm:$0xf]  ;;  %267 = vst [vmem:[%s1978_s7 + $0xbc] sm:$0xf] %v266_v47  ;;  %269 = vst [vmem:[%s1978_s7 + $0xc0] sm:$0xf] %v268_v48 }
  0x3c   : > { %271 = vst [vmem:[%s1978_s7 + $0xc4] sm:$0xf] %v270_v49  ;;  %v272_v50 = vld [vmem:[%s1974_s6 + $0x190] sm:$0xf]  ;;  %v274_v51 = vld [vmem:[%s1974_s6 + $0x198] sm:$0xf] }
  0x3d   : > { %v276_v52 = vld [vmem:[%s1974_s6 + $0x1a0] sm:$0xf]  ;;  %273 = vst [vmem:[%s1978_s7 + $0xc8] sm:$0xf] %v272_v50  ;;  %275 = vst [vmem:[%s1978_s7 + $0xcc] sm:$0xf] %v274_v51 }
  0x3e   : > { %277 = vst [vmem:[%s1978_s7 + $0xd0] sm:$0xf] %v276_v52  ;;  %v278_v53 = vld [vmem:[%s1974_s6 + $0x1a8] sm:$0xf]  ;;  %v280_v54 = vld [vmem:[%s1974_s6 + $0x1b0] sm:$0xf] }
  0x3f   : > { %v282_v55 = vld [vmem:[%s1974_s6 + $0x1b8] sm:$0xf]  ;;  %279 = vst [vmem:[%s1978_s7 + $0xd4] sm:$0xf] %v278_v53  ;;  %281 = vst [vmem:[%s1978_s7 + $0xd8] sm:$0xf] %v280_v54 }
  0x40   : > { %283 = vst [vmem:[%s1978_s7 + $0xdc] sm:$0xf] %v282_v55  ;;  %v284_v56 = vld [vmem:[%s1974_s6 + $0x1c0] sm:$0xf]  ;;  %v286_v57 = vld [vmem:[%s1974_s6 + $0x1c8] sm:$0xf] }
  0x41   : > { %v288_v58 = vld [vmem:[%s1974_s6 + $0x1d0] sm:$0xf]  ;;  %285 = vst [vmem:[%s1978_s7 + $0xe0] sm:$0xf] %v284_v56  ;;  %287 = vst [vmem:[%s1978_s7 + $0xe4] sm:$0xf] %v286_v57 }
  0x42   : > { %289 = vst [vmem:[%s1978_s7 + $0xe8] sm:$0xf] %v288_v58  ;;  %v290_v59 = vld [vmem:[%s1974_s6 + $0x1d8] sm:$0xf]  ;;  %v292_v60 = vld [vmem:[%s1974_s6 + $0x1e0] sm:$0xf] }
  0x43   : > { %v294_v61 = vld [vmem:[%s1974_s6 + $0x1e8] sm:$0xf]  ;;  %291 = vst [vmem:[%s1978_s7 + $0xec] sm:$0xf] %v290_v59  ;;  %293 = vst [vmem:[%s1978_s7 + $0xf0] sm:$0xf] %v292_v60 }
  0x44   : > { %295 = vst [vmem:[%s1978_s7 + $0xf4] sm:$0xf] %v294_v61  ;;  %v296_v62 = vld [vmem:[%s1974_s6 + $0x1f0] sm:$0xf]  ;;  %v298_v63 = vld [vmem:[%s1974_s6 + $0x1f8] sm:$0xf] }
  0x45   : > { %297 = vst [vmem:[%s1978_s7 + $0xf8] sm:$0xf] %v296_v62  ;;  %299 = vst [vmem:[%s1978_s7 + $0xfc] sm:$0xf] %v298_v63 }
  0x46 PF: > { %p1449_p11 = scmp.ge.s32.totalorder %s1877_s17, 1  ;;  %p449_p12 = scmp.lt.s32.totalorder %s1877_s17, 5 }
  0x48   : > { %p450_p13 = pnand %p1449_p11, %p449_p12 }
  0x49   : > { %s456_s8 = sand.u32 (!%p450_p13), 1, %s1853_s11   ;;  %s1452_s11 = sshll.u32 (!%p450_p13), %s1865_s14, 4 }
  0x4a   : > { %453 = sbr.rel (%p450_p13) target bundleno = 395 (0x18b), region = 65  ;;  %s1450_s18 = sshll.u32 (!%p450_p13), %s456_s8, 8 }
  0x4b   : > { %s2109_s21 = scalar_lea.vmem (!%p450_p13), [#allocation3], %s1450_s18  ;;  %p488_p0 = scmp.lt.s32.totalorder (!%p450_p13), %s1452_s11, 31 }
  0x4c   : > { %v1727_v0 = vld [vmem:[%s2109_s21 + $0x40] sm:$0xff] (!%p450_p13)   ;;  %v1731_v4 = vld [vmem:[%s2109_s21 + $0x48] sm:$0xff] (!%p450_p13)   ;;  %v1735_v8 = vld [vmem:[%s2109_s21 + $0x50] sm:$0xff] (!%p450_p13)   ;;  %s483_s29 = sand.u32 (!%p450_p13), 1, %s1845_s9  }
  0x4d   : > { %v1728_v1 = vld [vmem:[%s2109_s21 + $0xc0] sm:$0xff] (!%p450_p13)   ;;  %1527 = vmatprep.subr.bf16.mxu0 (!%p450_p13), %v1727_v0  ;;  %v1732_v5 = vld [vmem:[%s2109_s21 + $0xc8] sm:$0xff] (!%p450_p13)   ;;  %v1736_v9 = vld [vmem:[%s2109_s21 + $0xd0] sm:$0xff] (!%p450_p13)   ;;  %s1451_s30 = sshll.u32 (!%p450_p13), %s483_s29, 7 }
  0x4e   : > { %v1729_v2 = vld [vmem:[%s2109_s21] sm:$0xff] (!%p450_p13)   ;;  %1591 = vmatprep.subr.bf16.mxu1 (!%p450_p13), %v1728_v1  ;;  %v1733_v6 = vld [vmem:[%s2109_s21 + $0x8] sm:$0xff] (!%p450_p13)   ;;  %v1737_v10 = vld [vmem:[%s2109_s21 + $0x10] sm:$0xff] (!%p450_p13)   ;;  %s2182_s3 = scalar_lea.vmem (!%p450_p13), [#allocation4], %s1451_s30 }
  0x4f   : > { %v1730_v3 = vld [vmem:[%s2109_s21 + $0x80] sm:$0xff] (!%p450_p13)   ;;  %1528 = vmatpush3.bf16.msra.mxu0 (!%p450_p13), %v1729_v2  ;;  %v1734_v7 = vld [vmem:[%s2109_s21 + $0x88] sm:$0xff] (!%p450_p13)   ;;  %v1738_v11 = vld [vmem:[%s2109_s21 + $0x90] sm:$0xff] (!%p450_p13)  }
  0x50   : > { %1592 = vmatpush3.bf16.msra.mxu1 (!%p450_p13), %v1730_v3  ;;  %1529 = vmatprep.subr.bf16.mxu0 (!%p450_p13), %v1731_v4  ;;  %v1739_v12 = vld [vmem:[%s2109_s21 + $0x58] sm:$0xff] (!%p450_p13)   ;;  %v1743_v16 = vld [vmem:[%s2109_s21 + $0x60] sm:$0xff] (!%p450_p13)   ;;  %v1747_v20 = vld [vmem:[%s2109_s21 + $0x68] sm:$0xff] (!%p450_p13)  }
  0x51   : > { %1593 = vmatprep.subr.bf16.mxu1 %v1732_v5  ;;  %v1740_v13 = vld [vmem:[%s2109_s21 + $0xd8] sm:$0xff]   ;;  %v1744_v17 = vld [vmem:[%s2109_s21 + $0xe0] sm:$0xff]   ;;  %v1748_v21 = vld [vmem:[%s2109_s21 + $0xe8] sm:$0xff]   ;;  %s2269_s11 = smov (!%p488_p0, %s1452_s11), 31  ;;  %s1526_s9 = sshll.u32 (%p1961_p9), %s1865_s14, 5 }
  0x52   : > { %v1741_v14 = vld [vmem:[%s2109_s21 + $0x18] sm:$0xff]   ;;  %v1745_v18 = vld [vmem:[%s2109_s21 + $0x20] sm:$0xff]   ;;  %v1749_v22 = vld [vmem:[%s2109_s21 + $0x28] sm:$0xff]   ;;  %s1525_s22 = sshll.u32 %s2269_s11, 4  ;;  %s1255_s27 = sadd.s32 (%p1961_p9), %s1861_s13, %s1526_s9 }
  0x53   : > { %1530 = vmatpush3.bf16.msra.mxu0 %v1733_v6  ;;  %v1742_v15 = vld [vmem:[%s2109_s21 + $0x98] sm:$0xff]   ;;  %v1746_v19 = vld [vmem:[%s2109_s21 + $0xa0] sm:$0xff]   ;;  %v1750_v23 = vld [vmem:[%s2109_s21 + $0xa8] sm:$0xff]   ;;  %s2145_s26 = scalar_lea.vmem %s2250_s0, %s1525_s22  ;;  %s1522_s4 = sshll.u32 (%p1961_p9), %s1255_s27, 3 }
  0x54   : > { %1594 = vmatpush3.bf16.msra.mxu1 %v1734_v7  ;;  %1531 = vmatprep.subr.bf16.mxu0 %v1735_v8  ;;  %v1751_v24 = vld [vmem:[%s2109_s21 + $0x70] sm:$0xff]   ;;  %v1755_v28 = vld [vmem:[%s2109_s21 + $0x78] sm:$0xff]   ;;  %s1257_s7 = scalar_lea.vmem (%p1961_p9), %s2252_s2, %s1522_s4 }
  0x55   : > { %1595 = vmatprep.subr.bf16.mxu1 %v1736_v9  ;;  %v1752_v25 = vld [vmem:[%s2109_s21 + $0xf0] sm:$0xff]   ;;  %v1756_v29 = vld [vmem:[%s2109_s21 + $0xf8] sm:$0xff]  }
  0x56   : > { %v1753_v26 = vld [vmem:[%s2109_s21 + $0x30] sm:$0xff]   ;;  %v1757_v30 = vld [vmem:[%s2109_s21 + $0x38] sm:$0xff]  }
  0x57   : > { %1532 = vmatpush3.bf16.msra.mxu0 %v1737_v10  ;;  %v1754_v27 = vld [vmem:[%s2109_s21 + $0xb0] sm:$0xff]   ;;  %v1758_v31 = vld [vmem:[%s2109_s21 + $0xb8] sm:$0xff]  }
  0x58   : > { %1596 = vmatpush3.bf16.msra.mxu1 %v1738_v11  ;;  %1533 = vmatprep.subr.bf16.mxu0 %v1739_v12  ;;  %v1759_v32 = vld [vmem:[%s2145_s26] ss:$16 sps:$4 sm:$0xff]   ;;  %v1761_v33 = vld [vmem:[%s2145_s26 + $0x4] ss:$16 sps:$4 sm:$0xff]   ;;  %v1762_v34 = vld [vmem:[%s2145_s26 + $0x8] ss:$16 sps:$4 sm:$0xff]  }
  0x59   : > { %1597 = vmatprep.subr.bf16.mxu1 %v1740_v13  ;;  %v1764_v35 = vld [vmem:[%s2145_s26 + $0xc] ss:$16 sps:$4 sm:$0xff]   ;;  %1017 = vmatprep.mubr.bf16.mxu0 %v1761_v33  ;;  %v1765_v36 = vld [vmem:[%s2145_s26 + $0x24] ss:$16 sps:$4 sm:$0xff]   ;;  %v1769_v38 = vld [vmem:[%s2145_s26 + $0x20] ss:$16 sps:$4 sm:$0xff]  }
  0x5a   : > { %1114 = vmatprep.mubr.bf16.mxu1 %v1764_v35  ;;  %v1767_v37 = vld [vmem:[%s2145_s26 + $0x2c] ss:$16 sps:$4 sm:$0xff]   ;;  %v1770_v39 = vld [vmem:[%s2145_s26 + $0x28] ss:$16 sps:$4 sm:$0xff]   ;;  %v1771_v40 = vld [vmem:[%s2145_s26 + $0x44] ss:$16 sps:$4 sm:$0xff]  }
  0x5b   : > { %1534 = vmatpush3.bf16.msra.mxu0 %v1741_v14  ;;  %v1773_v41 = vld [vmem:[%s2145_s26 + $0x4c] ss:$16 sps:$4 sm:$0xff]   ;;  %v1775_v42 = vld [vmem:[%s2145_s26 + $0x40] ss:$16 sps:$4 sm:$0xff]   ;;  %v1776_v43 = vld [vmem:[%s2145_s26 + $0x48] ss:$16 sps:$4 sm:$0xff]  }
  0x5c   : > { %1598 = vmatpush3.bf16.msra.mxu1 %v1742_v15  ;;  %1535 = vmatprep.subr.bf16.mxu0 %v1743_v16  ;;  %v1777_v44 = vld [vmem:[%s2145_s26 + $0x64] ss:$16 sps:$4 sm:$0xff]   ;;  %v1779_v45 = vld [vmem:[%s2145_s26 + $0x6c] ss:$16 sps:$4 sm:$0xff]   ;;  %v1781_v46 = vld [vmem:[%s2145_s26 + $0x60] ss:$16 sps:$4 sm:$0xff]  }
  0x5d   : > { %1599 = vmatprep.subr.bf16.mxu1 %v1744_v17  ;;  %v1782_v47 = vld [vmem:[%s2145_s26 + $0x68] ss:$16 sps:$4 sm:$0xff]   ;;  %v1783_v48 = vld [vmem:[%s2145_s26 + $0x84] ss:$16 sps:$4 sm:$0xff]   ;;  %v1785_v49 = vld [vmem:[%s2145_s26 + $0x8c] ss:$16 sps:$4 sm:$0xff]  }
  0x5e   : > { %v1787_v50 = vld [vmem:[%s2145_s26 + $0x80] ss:$16 sps:$4 sm:$0xff]   ;;  %v1788_v51 = vld [vmem:[%s2145_s26 + $0x88] ss:$16 sps:$4 sm:$0xff]   ;;  %v1789_v52 = vld [vmem:[%s2145_s26 + $0xa4] ss:$16 sps:$4 sm:$0xff]  }
  0x5f   : > { %1536 = vmatpush3.bf16.msra.mxu0 %v1745_v18  ;;  %v1791_v53 = vld [vmem:[%s2145_s26 + $0xac] ss:$16 sps:$4 sm:$0xff]   ;;  %v1793_v54 = vld [vmem:[%s2145_s26 + $0xa0] ss:$16 sps:$4 sm:$0xff]   ;;  %v1794_v55 = vld [vmem:[%s2145_s26 + $0xa8] ss:$16 sps:$4 sm:$0xff]  }
  0x60   : > { %1600 = vmatpush3.bf16.msra.mxu1 %v1746_v19  ;;  %1537 = vmatprep.subr.bf16.mxu0 %v1747_v20  ;;  %v1795_v56 = vld [vmem:[%s2145_s26 + $0xc4] ss:$16 sps:$4 sm:$0xff]   ;;  %v1797_v57 = vld [vmem:[%s2145_s26 + $0xcc] ss:$16 sps:$4 sm:$0xff]   ;;  %v1799_v58 = vld [vmem:[%s2145_s26 + $0xc0] ss:$16 sps:$4 sm:$0xff]  }
  0x61   : > { %1601 = vmatprep.subr.bf16.mxu1 %v1748_v21  ;;  %v1800_v59 = vld [vmem:[%s2145_s26 + $0xc8] ss:$16 sps:$4 sm:$0xff]   ;;  %v1801_v60 = vld [vmem:[%s2145_s26 + $0xe4] ss:$16 sps:$4 sm:$0xff]   ;;  %v1803_v61 = vld [vmem:[%s2145_s26 + $0xec] ss:$16 sps:$4 sm:$0xff]  }
  0x62   : > { %v1805_v62 = vld [vmem:[%s2145_s26 + $0xe0] ss:$16 sps:$4 sm:$0xff]   ;;  %v1806_v63 = vld [vmem:[%s2145_s26 + $0xe8] ss:$16 sps:$4 sm:$0xff]  }
  0x63   : > { %1538 = vmatpush3.bf16.msra.mxu0 %v1749_v22 }
  0x64   : > { %1602 = vmatpush3.bf16.msra.mxu1 %v1750_v23  ;;  %1539 = vmatprep.subr.bf16.mxu0 %v1751_v24 }
  0x65   : > { %1603 = vmatprep.subr.bf16.mxu1 %v1752_v25 }
  0x67   : > { %1540 = vmatpush3.bf16.msra.mxu0 %v1753_v26 }
  0x68   : > { %1604 = vmatpush3.bf16.msra.mxu1 %v1754_v27  ;;  %1541 = vmatprep.subr.bf16.mxu0 %v1755_v28 }
  0x69   : > { %1605 = vmatprep.subr.bf16.mxu1 %v1756_v29 }
  0x6b   : > { %1542 = vmatpush3.bf16.msra.mxu0 %v1757_v30 }
  0x6c   : > { %1606 = vmatpush3.bf16.msra.mxu1 %v1758_v31 }
  0x6e   : > { %1018 = vmatmul.mubr.bf16.vlgmr.msra.gmra.mrb[0].mxu0 %v1759_v32 }
  0x6f   : > { %1115 = vmatmul.mubr.bf16.vlgmr.msra.gmra.mrb[0].mxu1 %v1762_v34  ;;  %1025 = vmatprep.mubr.bf16.mxu0 %v1765_v36 }
  0x70   : > { %1122 = vmatprep.mubr.bf16.mxu1 %v1767_v37 }
  0x76   : > { %1026 = vmatmul.mubr.bf16.gmra.mrb[4].mxu0 %v1769_v38 }
  0x77   : > { %1123 = vmatmul.mubr.bf16.gmra.mrb[4].mxu1 %v1770_v39  ;;  %1033 = vmatprep.mubr.bf16.mxu0 %v1771_v40 }
  0x78   : > { %1130 = vmatprep.mubr.bf16.mxu1 %v1773_v41 }
  0x7e   : > { %1034 = vmatmul.mubr.bf16.gmra.mrb[8].mxu0 %v1775_v42 }
  0x7f   : > { %1131 = vmatmul.mubr.bf16.gmra.mrb[8].mxu1 %v1776_v43  ;;  %1041 = vmatprep.mubr.bf16.mxu0 %v1777_v44 }
  0x80   : > { %1138 = vmatprep.mubr.bf16.mxu1 %v1779_v45 }
  0x86   : > { %1042 = vmatmul.mubr.bf16.gmra.mrb[12].mxu0 %v1781_v46 }
  0x87   : > { %1139 = vmatmul.mubr.bf16.gmra.mrb[12].mxu1 %v1782_v47  ;;  %1049 = vmatprep.mubr.bf16.mxu0 %v1783_v48 }
  0x88   : > { %1146 = vmatprep.mubr.bf16.mxu1 %v1785_v49 }
  0x8e   : > { %1050 = vmatmul.mubr.bf16.gmra.mrb[16].mxu0 %v1787_v50 }
  0x8f   : > { %1147 = vmatmul.mubr.bf16.gmra.mrb[16].mxu1 %v1788_v51  ;;  %1057 = vmatprep.mubr.bf16.mxu0 %v1789_v52 }
  0x90   : > { %1154 = vmatprep.mubr.bf16.mxu1 %v1791_v53 }
  0x96   : > { %1058 = vmatmul.mubr.bf16.gmra.mrb[20].mxu0 %v1793_v54 }
  0x97   : > { %1155 = vmatmul.mubr.bf16.gmra.mrb[20].mxu1 %v1794_v55  ;;  %1065 = vmatprep.mubr.bf16.mxu0 %v1795_v56 }
  0x98   : > { %1162 = vmatprep.mubr.bf16.mxu1 %v1797_v57 }
  0x9e   : > { %1066 = vmatmul.mubr.bf16.gmra.mrb[24].mxu0 %v1799_v58 }
  0x9f   : > { %1163 = vmatmul.mubr.bf16.gmra.mrb[24].mxu1 %v1800_v59  ;;  %1073 = vmatprep.mubr.bf16.mxu0 %v1801_v60 }
  0xa0   : > { %1170 = vmatprep.mubr.bf16.mxu1 %v1803_v61 }
  0xa6   : > { %1074 = vmatmul.mubr.bf16.gmra.mrb[28].mxu0 %v1805_v62 }
  0xa7   : > { %1171 = vmatmul.mubr.bf16.gmra.mrb[28].mxu1 %v1806_v63 }
 0x141   : > { %v1543_v0 = vpop.f32.mrb[0].mxu0 }
 0x142   : > { %v1607_v1 = vpop.f32.mrb[0].mxu1  ;;  %v1544_v2 = vpop.f32.mrb[1].mxu0 }
 0x143   : > { %v1545_v3 = vadd.f32 %v1544_v2, %v1543_v0  ;;  %v1608_v4 = vpop.f32.mrb[1].mxu1  ;;  %v1546_v5 = vpop.f32.mrb[2].mxu0 }
 0x144   : > { %v1609_v6 = vadd.f32 %v1608_v4, %v1607_v1  ;;  %v1610_v7 = vpop.f32.mrb[2].mxu1  ;;  %v1547_v8 = vpop.f32.mrb[3].mxu0 }
 0x145   : > { %v1548_v9 = vadd.f32 %v1547_v8, %v1546_v5  ;;  %v1611_v10 = vpop.f32.mrb[3].mxu1 }
 0x146   : > { %v1117_v11 = vadd.f32 %v1609_v6, %v1545_v3  ;;  %v1612_v12 = vadd.f32 %v1611_v10, %v1610_v7 }
 0x148   : > { %1230 = vst [vmem:[%s2182_s3] sm:$0xff] %v1117_v11  ;;  %v1120_v13 = vadd.f32 %v1612_v12, %v1548_v9 }
 0x149   : > { %v1549_v14 = vpop.f32.mrb[4].mxu0 }
 0x14a   : > { %1231 = vst [vmem:[%s2182_s3 + $0x8] sm:$0xff] %v1120_v13  ;;  %v1613_v15 = vpop.f32.mrb[4].mxu1  ;;  %v1550_v16 = vpop.f32.mrb[5].mxu0 }
 0x14b   : > { %v1551_v17 = vadd.f32 %v1550_v16, %v1549_v14  ;;  %v1614_v18 = vpop.f32.mrb[5].mxu1  ;;  %v1552_v19 = vpop.f32.mrb[6].mxu0 }
 0x14c   : > { %v1615_v20 = vadd.f32 %v1614_v18, %v1613_v15  ;;  %v1616_v21 = vpop.f32.mrb[6].mxu1  ;;  %v1553_v22 = vpop.f32.mrb[7].mxu0 }
 0x14d   : > { %v1554_v23 = vadd.f32 %v1553_v22, %v1552_v19  ;;  %v1617_v24 = vpop.f32.mrb[7].mxu1 }
 0x14e   : > { %v1125_v25 = vadd.f32 %v1615_v20, %v1551_v17  ;;  %v1618_v26 = vadd.f32 %v1617_v24, %v1616_v21 }
 0x150   : > { %1232 = vst [vmem:[%s2182_s3 + $0x10] sm:$0xff] %v1125_v25  ;;  %v1128_v27 = vadd.f32 %v1618_v26, %v1554_v23 }
 0x151   : > { %v1555_v28 = vpop.f32.mrb[8].mxu0 }
 0x152   : > { %1233 = vst [vmem:[%s2182_s3 + $0x18] sm:$0xff] %v1128_v27  ;;  %v1619_v29 = vpop.f32.mrb[8].mxu1  ;;  %v1556_v30 = vpop.f32.mrb[9].mxu0 }
 0x153   : > { %v1557_v31 = vadd.f32 %v1556_v30, %v1555_v28  ;;  %v1620_v32 = vpop.f32.mrb[9].mxu1  ;;  %v1558_v33 = vpop.f32.mrb[10].mxu0 }
 0x154   : > { %v1621_v34 = vadd.f32 %v1620_v32, %v1619_v29  ;;  %v1622_v35 = vpop.f32.mrb[10].mxu1  ;;  %v1559_v36 = vpop.f32.mrb[11].mxu0 }
 0x155   : > { %v1560_v37 = vadd.f32 %v1559_v36, %v1558_v33  ;;  %v1623_v38 = vpop.f32.mrb[11].mxu1 }
 0x156   : > { %v1133_v39 = vadd.f32 %v1621_v34, %v1557_v31  ;;  %v1624_v40 = vadd.f32 %v1623_v38, %v1622_v35 }
 0x158   : > { %1234 = vst [vmem:[%s2182_s3 + $0x20] sm:$0xff] %v1133_v39  ;;  %v1136_v41 = vadd.f32 %v1624_v40, %v1560_v37 }
 0x159   : > { %v1561_v42 = vpop.f32.mrb[12].mxu0 }
 0x15a   : > { %1235 = vst [vmem:[%s2182_s3 + $0x28] sm:$0xff] %v1136_v41  ;;  %v1625_v43 = vpop.f32.mrb[12].mxu1  ;;  %v1562_v44 = vpop.f32.mrb[13].mxu0 }
 0x15b   : > { %v1563_v45 = vadd.f32 %v1562_v44, %v1561_v42  ;;  %v1626_v46 = vpop.f32.mrb[13].mxu1  ;;  %v1564_v47 = vpop.f32.mrb[14].mxu0 }
 0x15c   : > { %v1627_v48 = vadd.f32 %v1626_v46, %v1625_v43  ;;  %v1628_v49 = vpop.f32.mrb[14].mxu1  ;;  %v1565_v50 = vpop.f32.mrb[15].mxu0 }
 0x15d   : > { %v1566_v51 = vadd.f32 %v1565_v50, %v1564_v47  ;;  %v1629_v52 = vpop.f32.mrb[15].mxu1  ;;  %v1319_v50 = vld [vmem:[%s2182_s3 + $0x10] sm:$0xff] (%p1961_p9) }
 0x15e   : > { %v1141_v53 = vadd.f32 %v1627_v48, %v1563_v45  ;;  %v1630_v54 = vadd.f32 %v1629_v52, %v1628_v49  ;;  %v1315_v48 = vld [vmem:[%s2182_s3] sm:$0xff] (%p1961_p9)  ;;  %v1317_v49 = vld [vmem:[%s2182_s3 + $0x8] sm:$0xff] (%p1961_p9)  ;;  %1320 = vst [vmem:[%s1257_s7 + $0x20] sm:$0xff] (%p1961_p9), %v1319_v50 }
 0x15f   : > { %v1323_v52 = vld [vmem:[%s2182_s3 + $0x20] sm:$0xff] (%p1961_p9)  ;;  %1316 = vst [vmem:[%s1257_s7] sm:$0xff] (%p1961_p9), %v1315_v48  ;;  %1318 = vst [vmem:[%s1257_s7 + $0x10] sm:$0xff] (%p1961_p9), %v1317_v49 }
 0x160   : > { %1236 = vst [vmem:[%s2182_s3 + $0x30] sm:$0xff] %v1141_v53  ;;  %v1144_v55 = vadd.f32 %v1630_v54, %v1566_v51  ;;  %v1321_v51 = vld [vmem:[%s2182_s3 + $0x18] sm:$0xff] (%p1961_p9)  ;;  %1324 = vst [vmem:[%s1257_s7 + $0x40] sm:$0xff] (%p1961_p9), %v1323_v52 }
 0x161   : > { %v1567_v56 = vpop.f32.mrb[16].mxu0  ;;  %v1325_v53 = vld [vmem:[%s2182_s3 + $0x28] sm:$0xff] (%p1961_p9)  ;;  %1322 = vst [vmem:[%s1257_s7 + $0x30] sm:$0xff] (%p1961_p9), %v1321_v51 }
 0x162   : > { %1237 = vst [vmem:[%s2182_s3 + $0x38] sm:$0xff] %v1144_v55  ;;  %v1631_v57 = vpop.f32.mrb[16].mxu1  ;;  %v1568_v58 = vpop.f32.mrb[17].mxu0  ;;  %1326 = vst [vmem:[%s1257_s7 + $0x50] sm:$0xff] (%p1961_p9), %v1325_v53 }
 0x163   : > { %v1569_v59 = vadd.f32 %v1568_v58, %v1567_v56  ;;  %v1632_v60 = vpop.f32.mrb[17].mxu1  ;;  %v1570_v61 = vpop.f32.mrb[18].mxu0 }
 0x164   : > { %v1633_v62 = vadd.f32 %v1632_v60, %v1631_v57  ;;  %v1634_v63 = vpop.f32.mrb[18].mxu1  ;;  %v1571_v0 = vpop.f32.mrb[19].mxu0 }
 0x165   : > { %v1572_v1 = vadd.f32 %v1571_v0, %v1570_v61  ;;  %v1635_v2 = vpop.f32.mrb[19].mxu1 }
 0x166   : > { %v1149_v3 = vadd.f32 %v1633_v62, %v1569_v59  ;;  %v1636_v4 = vadd.f32 %v1635_v2, %v1634_v63 }
 0x167   : > { %v1327_v54 = vld [vmem:[%s2182_s3 + $0x30] sm:$0xff] (%p1961_p9) }
 0x168   : > { %1238 = vst [vmem:[%s2182_s3 + $0x40] sm:$0xff] %v1149_v3  ;;  %v1152_v5 = vadd.f32 %v1636_v4, %v1572_v1  ;;  %1328 = vst [vmem:[%s1257_s7 + $0x60] sm:$0xff] (%p1961_p9), %v1327_v54 }
 0x169   : > { %v1573_v6 = vpop.f32.mrb[20].mxu0  ;;  %v1329_v55 = vld [vmem:[%s2182_s3 + $0x38] sm:$0xff] (%p1961_p9) }
 0x16a   : > { %1239 = vst [vmem:[%s2182_s3 + $0x48] sm:$0xff] %v1152_v5  ;;  %v1637_v7 = vpop.f32.mrb[20].mxu1  ;;  %v1574_v8 = vpop.f32.mrb[21].mxu0  ;;  %1330 = vst [vmem:[%s1257_s7 + $0x70] sm:$0xff] (%p1961_p9), %v1329_v55 }
 0x16b   : > { %v1575_v9 = vadd.f32 %v1574_v8, %v1573_v6  ;;  %v1638_v10 = vpop.f32.mrb[21].mxu1  ;;  %v1576_v11 = vpop.f32.mrb[22].mxu0 }
 0x16c   : > { %v1639_v12 = vadd.f32 %v1638_v10, %v1637_v7  ;;  %v1640_v13 = vpop.f32.mrb[22].mxu1  ;;  %v1577_v14 = vpop.f32.mrb[23].mxu0 }
 0x16d   : > { %v1578_v15 = vadd.f32 %v1577_v14, %v1576_v11  ;;  %v1641_v16 = vpop.f32.mrb[23].mxu1 }
 0x16e   : > { %v1157_v17 = vadd.f32 %v1639_v12, %v1575_v9  ;;  %v1642_v18 = vadd.f32 %v1641_v16, %v1640_v13 }
 0x16f   : > { %v1331_v56 = vld [vmem:[%s2182_s3 + $0x40] sm:$0xff] (%p1961_p9) }
 0x170   : > { %1240 = vst [vmem:[%s2182_s3 + $0x50] sm:$0xff] %v1157_v17  ;;  %v1160_v19 = vadd.f32 %v1642_v18, %v1578_v15  ;;  %1332 = vst [vmem:[%s1257_s7 + $0x80] sm:$0xff] (%p1961_p9), %v1331_v56 }
 0x171   : > { %v1579_v20 = vpop.f32.mrb[24].mxu0  ;;  %v1333_v57 = vld [vmem:[%s2182_s3 + $0x48] sm:$0xff] (%p1961_p9) }
 0x172   : > { %1241 = vst [vmem:[%s2182_s3 + $0x58] sm:$0xff] %v1160_v19  ;;  %v1643_v21 = vpop.f32.mrb[24].mxu1  ;;  %v1580_v22 = vpop.f32.mrb[25].mxu0  ;;  %1334 = vst [vmem:[%s1257_s7 + $0x90] sm:$0xff] (%p1961_p9), %v1333_v57 }
 0x173   : > { %v1581_v23 = vadd.f32 %v1580_v22, %v1579_v20  ;;  %v1644_v24 = vpop.f32.mrb[25].mxu1  ;;  %v1582_v25 = vpop.f32.mrb[26].mxu0 }
 0x174   : > { %v1645_v26 = vadd.f32 %v1644_v24, %v1643_v21  ;;  %v1646_v27 = vpop.f32.mrb[26].mxu1  ;;  %v1583_v28 = vpop.f32.mrb[27].mxu0 }
 0x175   : > { %v1584_v29 = vadd.f32 %v1583_v28, %v1582_v25  ;;  %v1647_v30 = vpop.f32.mrb[27].mxu1 }
 0x176   : > { %v1165_v31 = vadd.f32 %v1645_v26, %v1581_v23  ;;  %v1648_v32 = vadd.f32 %v1647_v30, %v1646_v27 }
 0x177   : > { %v1335_v58 = vld [vmem:[%s2182_s3 + $0x50] sm:$0xff] (%p1961_p9) }
 0x178   : > { %1242 = vst [vmem:[%s2182_s3 + $0x60] sm:$0xff] %v1165_v31  ;;  %v1168_v33 = vadd.f32 %v1648_v32, %v1584_v29  ;;  %1336 = vst [vmem:[%s1257_s7 + $0xa0] sm:$0xff] (%p1961_p9), %v1335_v58 }
 0x179   : > { %v1585_v34 = vpop.f32.mrb[28].mxu0  ;;  %v1337_v59 = vld [vmem:[%s2182_s3 + $0x58] sm:$0xff] (%p1961_p9) }
 0x17a   : > { %1243 = vst [vmem:[%s2182_s3 + $0x68] sm:$0xff] %v1168_v33  ;;  %v1649_v35 = vpop.f32.mrb[28].mxu1  ;;  %v1586_v36 = vpop.f32.mrb[29].mxu0  ;;  %1338 = vst [vmem:[%s1257_s7 + $0xb0] sm:$0xff] (%p1961_p9), %v1337_v59 }
 0x17b   : > { %v1587_v37 = vadd.f32 %v1586_v36, %v1585_v34  ;;  %v1650_v38 = vpop.f32.mrb[29].mxu1  ;;  %v1588_v39 = vpop.f32.mrb[30].mxu0 }
 0x17c   : > { %v1651_v40 = vadd.f32 %v1650_v38, %v1649_v35  ;;  %v1652_v41 = vpop.f32.mrb[30].mxu1  ;;  %v1589_v42 = vpop.f32.mrb[31].mxu0  ;;  %1252 = sbr.rel (!%p1961_p9) target bundleno = 395 (0x18b), region = 81 }
 0x17d   : > { %v1590_v43 = vadd.f32 %v1589_v42, %v1588_v39  ;;  %v1653_v44 = vpop.f32.mrb[31].mxu1 }
 0x17e   : > { %v1173_v45 = vadd.f32 %v1651_v40, %v1587_v37  ;;  %v1654_v46 = vadd.f32 %v1653_v44, %v1652_v41 }
 0x17f   : > { %v1339_v60 = vld [vmem:[%s2182_s3 + $0x60] sm:$0xff] (%p1961_p9) }
 0x180   : > { %1244 = vst [vmem:[%s2182_s3 + $0x70] sm:$0xff] %v1173_v45  ;;  %v1176_v47 = vadd.f32 %v1654_v46, %v1590_v43  ;;  %1340 = vst [vmem:[%s1257_s7 + $0xc0] sm:$0xff] (%p1961_p9), %v1339_v60 }
 0x181   : > { %v1341_v61 = vld [vmem:[%s2182_s3 + $0x68] sm:$0xff] (%p1961_p9) }
 0x182   : > { %1245 = vst [vmem:[%s2182_s3 + $0x78] sm:$0xff] %v1176_v47  ;;  %1342 = vst [vmem:[%s1257_s7 + $0xd0] sm:$0xff] (%p1961_p9), %v1341_v61 }
 0x187   : > { %v1343_v62 = vld [vmem:[%s2182_s3 + $0x70] sm:$0xff] }
 0x188   : > { %1344 = vst [vmem:[%s1257_s7 + $0xe0] sm:$0xff] %v1343_v62 }
 0x189   : > { %v1345_v63 = vld [vmem:[%s2182_s3 + $0x78] sm:$0xff] }
 0x18a   : > { %1346 = vst [vmem:[%s1257_s7 + $0xf0] sm:$0xff] %v1345_v63 }
 0x18b PF: > { %s12_s17 = sadd.s32 1, %s1877_s17   ;;  %s2254_s9 = smov %s1849_s10 }
 0x18c   : > { %p9_p1 = scmp.ge.s32.totalorder %s12_s17, 6   ;;  %s2255_s10 = smov %s1966_s28 }
 0x18d   : > { %s2256_s11 = smov %s1857_s12  ;;  %s2257_s12 = smov %s1955_s24 }
 0x18e   : > { %s2258_s13 = smov %s1869_s15  ;;  %s2259_s14 = smov %s1873_s16 }
 0x18f   : > { %s2260_s15 = smov %s2263_s19  ;;  %s2261_s16 = smov %s2267_s20 }
 0x190   :  { %11 = sbr.rel (!%p9_p1) target bundleno = 5 (0x5), region = 153 }

// kernel: dcgan_generator_forward.12
= control target key start
LH: loop header
LB: loop body
LE: loop exit
PB: predicated region body
PF: predicated region fallthrough
CT: control target
= control target key end

     0   :  { %vm78_vm0 = vcmask 523264   ;;  %s2262_s0 = inlined_call_operand.vmem [shape: f32[512,64], index: 0, kind: input, shape index: {}]   ;;  %s2263_s1 = inlined_call_operand.vmem [shape: f32[1,64], index: 1, kind: input, shape index: {}]   ;;  %s2264_s2 = inlined_call_operand.vmem [shape: f32[1,64], index: 2, kind: input, shape index: {}]   ;;  %s2265_s3 = inlined_call_operand.vmem [shape: f32[512,64], index: 3, kind: output, shape index: {}]  }
   0x1   :  { %v843_v0 = vld [vmem:[%s2262_s0] sm:$0xff]  ;;  %v848_v1 = vld [vmem:[%s2262_s0 + $0x8] sm:$0xff]  ;;  %v853_v2 = vld [vmem:[%s2262_s0 + $0x10] sm:$0xff] }
   0x2   :  { %v858_v3 = vld [vmem:[%s2262_s0 + $0x18] sm:$0xff]  ;;  %v79_v4 = vsel %vm78_vm0, %v843_v0, 0.0  ;;  %v80_v5 = vsel %vm78_vm0, %v848_v1, 0.0  ;;  %v82_v6 = vsel %vm78_vm0, %v853_v2, 0.0  ;;  %v869_v7 = vld [vmem:[%s2262_s0 + $0x20] sm:$0xff]  ;;  %v876_v10 = vld [vmem:[%s2262_s0 + $0x28] sm:$0xff] }
   0x3   :  { %v81_v8 = vadd.f32 %v80_v5, %v79_v4  ;;  %v84_v9 = vsel %vm78_vm0, %v858_v3, 0.0  ;;  %v86_v12 = vsel %vm78_vm0, %v869_v7, 0.0  ;;  %v883_v13 = vld [vmem:[%s2262_s0 + $0x30] sm:$0xff]  ;;  %v88_v15 = vsel %vm78_vm0, %v876_v10, 0.0  ;;  %v890_v16 = vld [vmem:[%s2262_s0 + $0x38] sm:$0xff]  ;;  %v897_v19 = vld [vmem:[%s2262_s0 + $0x40] sm:$0xff] }
   0x4   :  { %v90_v18 = vsel %vm78_vm0, %v883_v13, 0.0  ;;  %v92_v21 = vsel %vm78_vm0, %v890_v16, 0.0  ;;  %v904_v22 = vld [vmem:[%s2262_s0 + $0x48] sm:$0xff]  ;;  %v94_v24 = vsel %vm78_vm0, %v897_v19, 0.0  ;;  %v911_v25 = vld [vmem:[%s2262_s0 + $0x50] sm:$0xff]  ;;  %v918_v28 = vld [vmem:[%s2262_s0 + $0x58] sm:$0xff] }
   0x5   :  { %v83_v11 = vadd.f32 %v82_v6, %v81_v8  ;;  %v96_v27 = vsel %vm78_vm0, %v904_v22, 0.0  ;;  %v98_v30 = vsel %vm78_vm0, %v911_v25, 0.0  ;;  %v925_v31 = vld [vmem:[%s2262_s0 + $0x60] sm:$0xff]  ;;  %v100_v33 = vsel %vm78_vm0, %v918_v28, 0.0  ;;  %v932_v34 = vld [vmem:[%s2262_s0 + $0x68] sm:$0xff]  ;;  %v939_v37 = vld [vmem:[%s2262_s0 + $0x70] sm:$0xff] }
   0x6   :  { %v102_v36 = vsel %vm78_vm0, %v925_v31, 0.0  ;;  %v104_v39 = vsel %vm78_vm0, %v932_v34, 0.0  ;;  %v946_v40 = vld [vmem:[%s2262_s0 + $0x78] sm:$0xff]  ;;  %v106_v42 = vsel %vm78_vm0, %v939_v37, 0.0  ;;  %v953_v43 = vld [vmem:[%s2262_s0 + $0x80] sm:$0xff]  ;;  %v960_v46 = vld [vmem:[%s2262_s0 + $0x88] sm:$0xff] }
   0x7   :  { %v85_v14 = vadd.f32 %v84_v9, %v83_v11  ;;  %v108_v45 = vsel %vm78_vm0, %v946_v40, 0.0  ;;  %v110_v48 = vsel %vm78_vm0, %v953_v43, 0.0  ;;  %v967_v49 = vld [vmem:[%s2262_s0 + $0x90] sm:$0xff]  ;;  %v112_v51 = vsel %vm78_vm0, %v960_v46, 0.0  ;;  %v974_v52 = vld [vmem:[%s2262_s0 + $0x98] sm:$0xff]  ;;  %v981_v55 = vld [vmem:[%s2262_s0 + $0xa0] sm:$0xff] }
   0x8   :  { %v114_v54 = vsel %vm78_vm0, %v967_v49, 0.0  ;;  %v116_v57 = vsel %vm78_vm0, %v974_v52, 0.0  ;;  %v988_v58 = vld [vmem:[%s2262_s0 + $0xa8] sm:$0xff]  ;;  %v118_v60 = vsel %vm78_vm0, %v981_v55, 0.0  ;;  %v995_v61 = vld [vmem:[%s2262_s0 + $0xb0] sm:$0xff]  ;;  %v1002_v4 = vld [vmem:[%s2262_s0 + $0xb8] sm:$0xff] }
   0x9   :  { %v87_v17 = vadd.f32 %v86_v12, %v85_v14  ;;  %v120_v63 = vsel %vm78_vm0, %v988_v58, 0.0  ;;  %v122_v6 = vsel %vm78_vm0, %v995_v61, 0.0  ;;  %v1009_v8 = vld [vmem:[%s2262_s0 + $0xc0] sm:$0xff]  ;;  %v124_v11 = vsel %vm78_vm0, %v1002_v4, 0.0  ;;  %v1016_v12 = vld [vmem:[%s2262_s0 + $0xc8] sm:$0xff] }
   0xb   :  { %v89_v20 = vadd.f32 %v88_v15, %v87_v17  ;;  %v126_v15 = vsel %vm78_vm0, %v1009_v8, 0.0  ;;  %v1023_v17 = vld [vmem:[%s2262_s0 + $0xd0] sm:$0xff] }
   0xd   :  { %v91_v23 = vadd.f32 %v90_v18, %v89_v20  ;;  %v128_v20 = vsel %vm78_vm0, %v1016_v12, 0.0 }
   0xf   :  { %v93_v26 = vadd.f32 %v92_v21, %v91_v23  ;;  %v1030_v21 = vld [vmem:[%s2262_s0 + $0xd8] sm:$0xff] }
  0x11   :  { %v95_v29 = vadd.f32 %v94_v24, %v93_v26  ;;  %v130_v24 = vsel %vm78_vm0, %v1023_v17, 0.0  ;;  %v1037_v26 = vld [vmem:[%s2262_s0 + $0xe0] sm:$0xff] }
  0x13   :  { %v97_v32 = vadd.f32 %v96_v27, %v95_v29  ;;  %v132_v29 = vsel %vm78_vm0, %v1030_v21, 0.0 }
  0x15   :  { %v99_v35 = vadd.f32 %v98_v30, %v97_v32  ;;  %v1044_v30 = vld [vmem:[%s2262_s0 + $0xe8] sm:$0xff] }
  0x17   :  { %v101_v38 = vadd.f32 %v100_v33, %v99_v35  ;;  %v134_v33 = vsel %vm78_vm0, %v1037_v26, 0.0  ;;  %v1051_v35 = vld [vmem:[%s2262_s0 + $0xf0] sm:$0xff] }
  0x19   :  { %v103_v41 = vadd.f32 %v102_v36, %v101_v38  ;;  %v136_v38 = vsel %vm78_vm0, %v1044_v30, 0.0 }
  0x1b   :  { %v105_v44 = vadd.f32 %v104_v39, %v103_v41  ;;  %v1058_v39 = vld [vmem:[%s2262_s0 + $0xf8] sm:$0xff] }
  0x1d   :  { %v107_v47 = vadd.f32 %v106_v42, %v105_v44  ;;  %v138_v42 = vsel %vm78_vm0, %v1051_v35, 0.0  ;;  %v1065_v44 = vld [vmem:[%s2262_s0 + $0x100] sm:$0xff] }
  0x1f   :  { %v109_v50 = vadd.f32 %v108_v45, %v107_v47  ;;  %v140_v47 = vsel %vm78_vm0, %v1058_v39, 0.0 }
  0x21   :  { %v111_v53 = vadd.f32 %v110_v48, %v109_v50  ;;  %v1072_v48 = vld [vmem:[%s2262_s0 + $0x108] sm:$0xff] }
  0x23   :  { %v113_v56 = vadd.f32 %v112_v51, %v111_v53  ;;  %v142_v51 = vsel %vm78_vm0, %v1065_v44, 0.0  ;;  %v1079_v53 = vld [vmem:[%s2262_s0 + $0x110] sm:$0xff] }
  0x25   :  { %v115_v59 = vadd.f32 %v114_v54, %v113_v56  ;;  %v144_v56 = vsel %vm78_vm0, %v1072_v48, 0.0 }
  0x27   :  { %v117_v62 = vadd.f32 %v116_v57, %v115_v59  ;;  %v1086_v57 = vld [vmem:[%s2262_s0 + $0x118] sm:$0xff] }
  0x29   :  { %v119_v5 = vadd.f32 %v118_v60, %v117_v62  ;;  %v146_v60 = vsel %vm78_vm0, %v1079_v53, 0.0  ;;  %v1093_v62 = vld [vmem:[%s2262_s0 + $0x120] sm:$0xff] }
  0x2b   :  { %v121_v9 = vadd.f32 %v120_v63, %v119_v5  ;;  %v148_v5 = vsel %vm78_vm0, %v1086_v57, 0.0 }
  0x2d   :  { %v123_v14 = vadd.f32 %v122_v6, %v121_v9  ;;  %v1100_v6 = vld [vmem:[%s2262_s0 + $0x128] sm:$0xff] }
  0x2f   :  { %v125_v18 = vadd.f32 %v124_v11, %v123_v14  ;;  %v150_v11 = vsel %vm78_vm0, %v1093_v62, 0.0  ;;  %v1107_v14 = vld [vmem:[%s2262_s0 + $0x130] sm:$0xff] }
  0x31   :  { %v127_v23 = vadd.f32 %v126_v15, %v125_v18  ;;  %v152_v18 = vsel %vm78_vm0, %v1100_v6, 0.0 }
  0x33   :  { %v129_v27 = vadd.f32 %v128_v20, %v127_v23  ;;  %v1114_v20 = vld [vmem:[%s2262_s0 + $0x138] sm:$0xff] }
  0x35   :  { %v131_v32 = vadd.f32 %v130_v24, %v129_v27  ;;  %v154_v24 = vsel %vm78_vm0, %v1107_v14, 0.0  ;;  %v1121_v27 = vld [vmem:[%s2262_s0 + $0x140] sm:$0xff] }
  0x37   :  { %v133_v36 = vadd.f32 %v132_v29, %v131_v32  ;;  %v156_v32 = vsel %vm78_vm0, %v1114_v20, 0.0 }
  0x39   :  { %v135_v41 = vadd.f32 %v134_v33, %v133_v36  ;;  %v1128_v33 = vld [vmem:[%s2262_s0 + $0x148] sm:$0xff] }
  0x3b   :  { %v137_v45 = vadd.f32 %v136_v38, %v135_v41  ;;  %v158_v38 = vsel %vm78_vm0, %v1121_v27, 0.0  ;;  %v1135_v41 = vld [vmem:[%s2262_s0 + $0x150] sm:$0xff] }
  0x3d   :  { %v139_v50 = vadd.f32 %v138_v42, %v137_v45  ;;  %v160_v45 = vsel %vm78_vm0, %v1128_v33, 0.0 }
  0x3f   :  { %v141_v54 = vadd.f32 %v140_v47, %v139_v50  ;;  %v1142_v47 = vld [vmem:[%s2262_s0 + $0x158] sm:$0xff] }
  0x41   :  { %v143_v59 = vadd.f32 %v142_v51, %v141_v54  ;;  %v162_v51 = vsel %vm78_vm0, %v1135_v41, 0.0  ;;  %v1149_v54 = vld [vmem:[%s2262_s0 + $0x160] sm:$0xff] }
  0x43   :  { %v145_v63 = vadd.f32 %v144_v56, %v143_v59  ;;  %v164_v59 = vsel %vm78_vm0, %v1142_v47, 0.0 }
  0x45   :  { %v147_v9 = vadd.f32 %v146_v60, %v145_v63  ;;  %v1156_v60 = vld [vmem:[%s2262_s0 + $0x168] sm:$0xff] }
  0x47   :  { %v149_v15 = vadd.f32 %v148_v5, %v147_v9  ;;  %v166_v5 = vsel %vm78_vm0, %v1149_v54, 0.0  ;;  %v1163_v9 = vld [vmem:[%s2262_s0 + $0x170] sm:$0xff] }
  0x49   :  { %v151_v23 = vadd.f32 %v150_v11, %v149_v15  ;;  %v168_v15 = vsel %vm78_vm0, %v1156_v60, 0.0 }
  0x4b   :  { %v153_v29 = vadd.f32 %v152_v18, %v151_v23  ;;  %v1170_v18 = vld [vmem:[%s2262_s0 + $0x178] sm:$0xff] }
  0x4d   :  { %v155_v36 = vadd.f32 %v154_v24, %v153_v29  ;;  %v170_v24 = vsel %vm78_vm0, %v1163_v9, 0.0  ;;  %v1177_v29 = vld [vmem:[%s2262_s0 + $0x180] sm:$0xff] }
  0x4f   :  { %v157_v42 = vadd.f32 %v156_v32, %v155_v36  ;;  %v172_v36 = vsel %vm78_vm0, %v1170_v18, 0.0 }
  0x51   :  { %v159_v50 = vadd.f32 %v158_v38, %v157_v42  ;;  %v1184_v38 = vld [vmem:[%s2262_s0 + $0x188] sm:$0xff] }
  0x52   :  { %2301 = vst [vmem:[#allocation2_spill] sm:$0xff] %v1184_v38 }
  0x53   :  { %v161_v56 = vadd.f32 %v160_v45, %v159_v50  ;;  %v174_v45 = vsel %vm78_vm0, %v1177_v29, 0.0  ;;  %v1191_v50 = vld [vmem:[%s2262_s0 + $0x190] sm:$0xff] }
  0x54   :  { %2302 = vst [vmem:[#allocation3_spill] sm:$0xff] %v1191_v50 }
  0x55   :  { %v163_v63 = vadd.f32 %v162_v51, %v161_v56  ;;  %v176_v56 = vsel %vm78_vm0, %v1184_v38, 0.0 }
  0x57   :  { %v165_v11 = vadd.f32 %v164_v59, %v163_v63  ;;  %v1198_v59 = vld [vmem:[%s2262_s0 + $0x198] sm:$0xff] }
  0x58   :  { %2303 = vst [vmem:[#allocation4_spill] sm:$0xff] %v1198_v59 }
  0x59   :  { %v167_v23 = vadd.f32 %v166_v5, %v165_v11  ;;  %v178_v5 = vsel %vm78_vm0, %v1191_v50, 0.0  ;;  %v1205_v11 = vld [vmem:[%s2262_s0 + $0x1a0] sm:$0xff] }
  0x5a   :  { %2304 = vst [vmem:[#allocation5_spill] sm:$0xff] %v1205_v11 }
  0x5b   :  { %v169_v32 = vadd.f32 %v168_v15, %v167_v23  ;;  %v180_v23 = vsel %vm78_vm0, %v1198_v59, 0.0 }
  0x5d   :  { %v171_v42 = vadd.f32 %v170_v24, %v169_v32  ;;  %v1212_v24 = vld [vmem:[%s2262_s0 + $0x1a8] sm:$0xff] }
  0x5e   :  { %2305 = vst [vmem:[#allocation6_spill] sm:$0xff] %v1212_v24 }
  0x5f   :  { %v173_v51 = vadd.f32 %v172_v36, %v171_v42  ;;  %v182_v36 = vsel %vm78_vm0, %v1205_v11, 0.0  ;;  %v1219_v42 = vld [vmem:[%s2262_s0 + $0x1b0] sm:$0xff] }
  0x60   :  { %2306 = vst [vmem:[#allocation7_spill] sm:$0xff] %v1219_v42 }
  0x61   :  { %v175_v63 = vadd.f32 %v174_v45, %v173_v51  ;;  %v184_v51 = vsel %vm78_vm0, %v1212_v24, 0.0 }
  0x63   :  { %v177_v15 = vadd.f32 %v176_v56, %v175_v63  ;;  %v1226_v56 = vld [vmem:[%s2262_s0 + $0x1b8] sm:$0xff] }
  0x64   :  { %2307 = vst [vmem:[#allocation8_spill] sm:$0xff] %v1226_v56 }
  0x65   :  { %v179_v32 = vadd.f32 %v178_v5, %v177_v15  ;;  %v186_v5 = vsel %vm78_vm0, %v1219_v42, 0.0  ;;  %v1233_v15 = vld [vmem:[%s2262_s0 + $0x1c0] sm:$0xff] }
  0x66   :  { %2308 = vst [vmem:[#allocation9_spill] sm:$0xff] %v1233_v15 }
  0x67   :  { %v181_v45 = vadd.f32 %v180_v23, %v179_v32  ;;  %v188_v23 = vsel %vm78_vm0, %v1226_v56, 0.0  ;;  %v1240_v32 = vld [vmem:[%s2262_s0 + $0x1c8] sm:$0xff] }
  0x68   :  { %2309 = vst [vmem:[#allocation10_spill] sm:$0xff] %v1240_v32 }
  0x69   :  { %v183_v63 = vadd.f32 %v182_v36, %v181_v45  ;;  %v190_v36 = vsel %vm78_vm0, %v1233_v15, 0.0  ;;  %v1247_v45 = vld [vmem:[%s2262_s0 + $0x1d0] sm:$0xff] }
  0x6a   :  { %2310 = vst [vmem:[#allocation11_spill] sm:$0xff] %v1247_v45 }
  0x6b   :  { %v185_v11 = vadd.f32 %v184_v51, %v183_v63  ;;  %v192_v51 = vsel %vm78_vm0, %v1240_v32, 0.0  ;;  %v1254_v63 = vld [vmem:[%s2262_s0 + $0x1d8] sm:$0xff] }
  0x6c   :  { %2311 = vst [vmem:[#allocation12_spill] sm:$0xff] %v1254_v63  ;;  %v196_v15 = vsel %vm78_vm0, %v1254_v63, 0.0 }
  0x6d   :  { %v187_v24 = vadd.f32 %v186_v5, %v185_v11  ;;  %v194_v11 = vsel %vm78_vm0, %v1247_v45, 0.0 }
  0x6f   :  { %v189_v42 = vadd.f32 %v188_v23, %v187_v24  ;;  %v1263_v24 = vld [vmem:[%s2262_s0 + $0x1e0] sm:$0xff] }
  0x70   :  { %2312 = vst [vmem:[#allocation13_spill] sm:$0xff] %v1263_v24  ;;  %v198_v59 = vsel %vm78_vm0, %v1263_v24, 0.0 }
  0x71   :  { %v191_v56 = vadd.f32 %v190_v36, %v189_v42  ;;  %v1270_v42 = vld [vmem:[%s2262_s0 + $0x1e8] sm:$0xff] }
  0x72   :  { %2313 = vst [vmem:[#allocation14_spill] sm:$0xff] %v1270_v42 }
  0x73   :  { %v193_v5 = vadd.f32 %v192_v51, %v191_v56  ;;  %v200_v56 = vsel %vm78_vm0, %v1270_v42, 0.0  ;;  %v1277_v51 = vld [vmem:[%s2262_s0 + $0x1f0] sm:$0xff] }
  0x74   :  { %2314 = vst [vmem:[#allocation15_spill] sm:$0xff] %v1277_v51 }
  0x75   :  { %v195_v23 = vadd.f32 %v194_v11, %v193_v5  ;;  %v1284_v11 = vld [vmem:[%s2262_s0 + $0x1f8] sm:$0xff] }
  0x77   :  { %v197_v32 = vadd.f32 %v196_v15, %v195_v23  ;;  %v202_v15 = vsel %vm78_vm0, %v1277_v51, 0.0 }
  0x79   :  { %v199_v36 = vadd.f32 %v198_v59, %v197_v32  ;;  %v204_v59 = vsel %vm78_vm0, %v1284_v11, 0.0 }
  0x7b   :  { %v201_v63 = vadd.f32 %v200_v56, %v199_v36 }
  0x7d   :  { %v203_v5 = vadd.f32 %v202_v15, %v201_v63 }
  0x7f   :  { %v205_v32 = vadd.f32 %v204_v59, %v203_v5 }
  0x81   :  { %v206_v23 = vrot.slane %v205_v32, 4 }
  0x83   :  { %v207_v42 = vadd.f32 %v206_v23, %v205_v32 }
  0x85   :  { %v208_v24 = vrot.slane %v207_v42, 2 }
  0x87   :  { %v209_v45 = vadd.f32 %v208_v24, %v207_v42 }
  0x89   :  { %v210_v50 = vrot.slane %v209_v45, 1 }
  0x8b   :  { %v211_v38 = vadd.f32 %v210_v50, %v209_v45 }
  0x8d   :  { %v1288_v36 = vmul.f32 0.001953125, %v211_v38 }
  0x8f   :  { %v1292_v56 = vsub.f32 %v843_v0, %v1288_v36  ;;  %v1296_v51 = vsub.f32 %v848_v1, %v1288_v36  ;;  %v1300_v63 = vsub.f32 %v853_v2, %v1288_v36  ;;  %v1304_v15 = vsub.f32 %v858_v3, %v1288_v36 }
  0x90   :  { %v1308_v38 = vsub.f32 %v869_v7, %v1288_v36  ;;  %v1318_v2 = vsub.f32 %v876_v10, %v1288_v36  ;;  %v1324_v7 = vsub.f32 %v883_v13, %v1288_v36  ;;  %v1333_v10 = vsub.f32 %v890_v16, %v1288_v36 }
  0x91   :  { %v278_v0 = vmul.f32 %v1292_v56, %v1292_v56  ;;  %v279_v50 = vmul.f32 %v1296_v51, %v1296_v51  ;;  %v280_v1 = vmul.f32 %v1300_v63, %v1300_v63  ;;  %v281_v3 = vmul.f32 %v1304_v15, %v1304_v15 }
  0x92   :  { %2315 = vst [vmem:[#allocation16_spill] sm:$0xff] %v1308_v38  ;;  %v282_v45 = vmul.f32 %v1308_v38, %v1308_v38  ;;  %v283_v32 = vmul.f32 %v1318_v2, %v1318_v2  ;;  %v1340_v38 = vsub.f32 %v897_v19, %v1288_v36  ;;  %v1347_v16 = vsub.f32 %v904_v22, %v1288_v36 }
  0x93   :  { %v342_v24 = vsel %vm78_vm0, %v278_v0, 0.0  ;;  %v343_v42 = vsel %vm78_vm0, %v279_v50, 0.0  ;;  %v345_v5 = vsel %vm78_vm0, %v280_v1, 0.0  ;;  %v347_v13 = vsel %vm78_vm0, %v281_v3, 0.0 }
  0x94   :  { %v344_v59 = vadd.f32 %v343_v42, %v342_v24  ;;  %v284_v0 = vmul.f32 %v1324_v7, %v1324_v7  ;;  %v349_v50 = vsel %vm78_vm0, %v282_v45, 0.0  ;;  %v285_v24 = vmul.f32 %v1333_v10, %v1333_v10 }
  0x95   :  { %v351_v3 = vsel %vm78_vm0, %v283_v32, 0.0  ;;  %v1354_v19 = vsub.f32 %v911_v25, %v1288_v36  ;;  %v1361_v22 = vsub.f32 %v918_v28, %v1288_v36  ;;  %v1368_v25 = vsub.f32 %v925_v31, %v1288_v36 }
  0x96   :  { %v346_v23 = vadd.f32 %v345_v5, %v344_v59  ;;  %v286_v5 = vmul.f32 %v1340_v38, %v1340_v38  ;;  %v353_v45 = vsel %vm78_vm0, %v284_v0, 0.0  ;;  %v355_v32 = vsel %vm78_vm0, %v285_v24, 0.0 }
  0x97   :  { %v1375_v28 = vsub.f32 %v932_v34, %v1288_v36  ;;  %v1382_v31 = vsub.f32 %v939_v37, %v1288_v36  ;;  %v1389_v34 = vsub.f32 %v946_v40, %v1288_v36  ;;  %v1396_v37 = vsub.f32 %v953_v43, %v1288_v36 }
  0x98   :  { %v348_v1 = vadd.f32 %v347_v13, %v346_v23  ;;  %v287_v13 = vmul.f32 %v1347_v16, %v1347_v16  ;;  %v357_v0 = vsel %vm78_vm0, %v286_v5, 0.0  ;;  %v1403_v40 = vsub.f32 %v960_v46, %v1288_v36 }
  0x99   :  { %v1410_v43 = vsub.f32 %v967_v49, %v1288_v36  ;;  %v1417_v46 = vsub.f32 %v974_v52, %v1288_v36  ;;  %v1424_v49 = vsub.f32 %v981_v55, %v1288_v36  ;;  %v1431_v52 = vsub.f32 %v988_v58, %v1288_v36 }
  0x9a   :  { %v350_v42 = vadd.f32 %v349_v50, %v348_v1  ;;  %v288_v50 = vmul.f32 %v1354_v19, %v1354_v19  ;;  %v359_v24 = vsel %vm78_vm0, %v287_v13, 0.0  ;;  %v1438_v55 = vsub.f32 %v995_v61, %v1288_v36 }
  0x9b   :  { %v1445_v58 = vsub.f32 %v1002_v4, %v1288_v36  ;;  %v1452_v61 = vsub.f32 %v1009_v8, %v1288_v36  ;;  %v1459_v4 = vsub.f32 %v1016_v12, %v1288_v36  ;;  %v1466_v8 = vsub.f32 %v1023_v17, %v1288_v36 }
  0x9c   :  { %v352_v59 = vadd.f32 %v351_v3, %v350_v42  ;;  %v289_v3 = vmul.f32 %v1361_v22, %v1361_v22  ;;  %v361_v5 = vsel %vm78_vm0, %v288_v50, 0.0  ;;  %v1473_v12 = vsub.f32 %v1030_v21, %v1288_v36 }
  0x9d   :  { %v1480_v17 = vsub.f32 %v1037_v26, %v1288_v36  ;;  %v1487_v21 = vsub.f32 %v1044_v30, %v1288_v36  ;;  %v1494_v26 = vsub.f32 %v1051_v35, %v1288_v36  ;;  %v1501_v30 = vsub.f32 %v1058_v39, %v1288_v36 }
  0x9e   :  { %v354_v23 = vadd.f32 %v353_v45, %v352_v59  ;;  %v290_v45 = vmul.f32 %v1368_v25, %v1368_v25  ;;  %v363_v13 = vsel %vm78_vm0, %v289_v3, 0.0  ;;  %v1508_v35 = vsub.f32 %v1065_v44, %v1288_v36 }
  0x9f   :  { %v1515_v39 = vsub.f32 %v1072_v48, %v1288_v36  ;;  %v1522_v44 = vsub.f32 %v1079_v53, %v1288_v36  ;;  %v1529_v48 = vsub.f32 %v1086_v57, %v1288_v36  ;;  %v1536_v53 = vsub.f32 %v1093_v62, %v1288_v36 }
  0xa0   :  { %v356_v1 = vadd.f32 %v355_v32, %v354_v23  ;;  %v291_v32 = vmul.f32 %v1375_v28, %v1375_v28  ;;  %v365_v50 = vsel %vm78_vm0, %v290_v45, 0.0  ;;  %v1543_v57 = vsub.f32 %v1100_v6, %v1288_v36 }
  0xa1   :  { %v1550_v62 = vsub.f32 %v1107_v14, %v1288_v36  ;;  %v1557_v6 = vsub.f32 %v1114_v20, %v1288_v36  ;;  %v1564_v14 = vsub.f32 %v1121_v27, %v1288_v36  ;;  %v1571_v20 = vsub.f32 %v1128_v33, %v1288_v36 }
  0xa2   :  { %v358_v42 = vadd.f32 %v357_v0, %v356_v1  ;;  %v292_v0 = vmul.f32 %v1382_v31, %v1382_v31  ;;  %v367_v3 = vsel %vm78_vm0, %v291_v32, 0.0  ;;  %v1578_v27 = vsub.f32 %v1135_v41, %v1288_v36 }
  0xa3   :  { %v1585_v33 = vsub.f32 %v1142_v47, %v1288_v36  ;;  %v1592_v41 = vsub.f32 %v1149_v54, %v1288_v36  ;;  %v1599_v47 = vsub.f32 %v1156_v60, %v1288_v36  ;;  %v1606_v54 = vsub.f32 %v1163_v9, %v1288_v36 }
  0xa4   :  { %v360_v59 = vadd.f32 %v359_v24, %v358_v42  ;;  %v293_v24 = vmul.f32 %v1389_v34, %v1389_v34  ;;  %v369_v45 = vsel %vm78_vm0, %v292_v0, 0.0  ;;  %v1613_v60 = vsub.f32 %v1170_v18, %v1288_v36 }
  0xa5   :  { %2316 = vst [vmem:[#allocation17_spill] sm:$0xff] %v1592_v41  ;;  %2317 = vst [vmem:[#allocation18_spill] sm:$0xff] %v1599_v47  ;;  %v1620_v9 = vsub.f32 %v1177_v29, %v1288_v36 }
  0xa6   :  { %v362_v23 = vadd.f32 %v361_v5, %v360_v59  ;;  %v294_v5 = vmul.f32 %v1396_v37, %v1396_v37  ;;  %v371_v32 = vsel %vm78_vm0, %v293_v24, 0.0  ;;  %2318 = vst [vmem:[#allocation19_spill] sm:$0xff] %v1606_v54  ;;  %2319 = vst [vmem:[#allocation20_spill] sm:$0xff] %v1613_v60 }
  0xa7   :  { %2320 = vst [vmem:[#allocation21_spill] sm:$0xff] %v1620_v9 }
  0xa8   :  { %v364_v1 = vadd.f32 %v363_v13, %v362_v23  ;;  %v295_v13 = vmul.f32 %v1403_v40, %v1403_v40  ;;  %v373_v0 = vsel %vm78_vm0, %v294_v5, 0.0 }
  0xaa   :  { %v366_v42 = vadd.f32 %v365_v50, %v364_v1  ;;  %v296_v50 = vmul.f32 %v1410_v43, %v1410_v43  ;;  %v375_v24 = vsel %vm78_vm0, %v295_v13, 0.0 }
  0xac   :  { %v368_v59 = vadd.f32 %v367_v3, %v366_v42  ;;  %v297_v3 = vmul.f32 %v1417_v46, %v1417_v46  ;;  %v377_v5 = vsel %vm78_vm0, %v296_v50, 0.0 }
  0xae   :  { %v370_v23 = vadd.f32 %v369_v45, %v368_v59  ;;  %v298_v45 = vmul.f32 %v1424_v49, %v1424_v49  ;;  %v379_v13 = vsel %vm78_vm0, %v297_v3, 0.0 }
  0xb0   :  { %v372_v1 = vadd.f32 %v371_v32, %v370_v23  ;;  %v299_v32 = vmul.f32 %v1431_v52, %v1431_v52  ;;  %v381_v50 = vsel %vm78_vm0, %v298_v45, 0.0 }
  0xb2   :  { %v374_v42 = vadd.f32 %v373_v0, %v372_v1  ;;  %v300_v0 = vmul.f32 %v1438_v55, %v1438_v55  ;;  %v383_v3 = vsel %vm78_vm0, %v299_v32, 0.0 }
  0xb4   :  { %v376_v59 = vadd.f32 %v375_v24, %v374_v42  ;;  %v301_v24 = vmul.f32 %v1445_v58, %v1445_v58  ;;  %v385_v45 = vsel %vm78_vm0, %v300_v0, 0.0 }
  0xb6   :  { %v378_v23 = vadd.f32 %v377_v5, %v376_v59  ;;  %v302_v5 = vmul.f32 %v1452_v61, %v1452_v61  ;;  %v387_v32 = vsel %vm78_vm0, %v301_v24, 0.0 }
  0xb8   :  { %v380_v1 = vadd.f32 %v379_v13, %v378_v23  ;;  %v303_v13 = vmul.f32 %v1459_v4, %v1459_v4  ;;  %v389_v0 = vsel %vm78_vm0, %v302_v5, 0.0 }
  0xba   :  { %v382_v42 = vadd.f32 %v381_v50, %v380_v1  ;;  %v304_v50 = vmul.f32 %v1466_v8, %v1466_v8  ;;  %v391_v24 = vsel %vm78_vm0, %v303_v13, 0.0 }
  0xbc   :  { %v384_v59 = vadd.f32 %v383_v3, %v382_v42  ;;  %v305_v3 = vmul.f32 %v1473_v12, %v1473_v12  ;;  %v393_v5 = vsel %vm78_vm0, %v304_v50, 0.0 }
  0xbe   :  { %v386_v23 = vadd.f32 %v385_v45, %v384_v59  ;;  %v306_v45 = vmul.f32 %v1480_v17, %v1480_v17  ;;  %v395_v13 = vsel %vm78_vm0, %v305_v3, 0.0 }
  0xc0   :  { %v388_v1 = vadd.f32 %v387_v32, %v386_v23  ;;  %v307_v32 = vmul.f32 %v1487_v21, %v1487_v21  ;;  %v397_v50 = vsel %vm78_vm0, %v306_v45, 0.0 }
  0xc2   :  { %v390_v42 = vadd.f32 %v389_v0, %v388_v1  ;;  %v308_v0 = vmul.f32 %v1494_v26, %v1494_v26  ;;  %v399_v3 = vsel %vm78_vm0, %v307_v32, 0.0 }
  0xc4   :  { %v392_v59 = vadd.f32 %v391_v24, %v390_v42  ;;  %v309_v24 = vmul.f32 %v1501_v30, %v1501_v30  ;;  %v401_v45 = vsel %vm78_vm0, %v308_v0, 0.0 }
  0xc6   :  { %v394_v23 = vadd.f32 %v393_v5, %v392_v59  ;;  %v310_v5 = vmul.f32 %v1508_v35, %v1508_v35  ;;  %v403_v32 = vsel %vm78_vm0, %v309_v24, 0.0 }
  0xc8   :  { %v396_v1 = vadd.f32 %v395_v13, %v394_v23  ;;  %v311_v13 = vmul.f32 %v1515_v39, %v1515_v39  ;;  %v405_v0 = vsel %vm78_vm0, %v310_v5, 0.0 }
  0xca   :  { %v398_v42 = vadd.f32 %v397_v50, %v396_v1  ;;  %v312_v50 = vmul.f32 %v1522_v44, %v1522_v44  ;;  %v407_v24 = vsel %vm78_vm0, %v311_v13, 0.0 }
  0xcc   :  { %v400_v59 = vadd.f32 %v399_v3, %v398_v42  ;;  %v313_v3 = vmul.f32 %v1529_v48, %v1529_v48  ;;  %v409_v5 = vsel %vm78_vm0, %v312_v50, 0.0 }
  0xce   :  { %v402_v23 = vadd.f32 %v401_v45, %v400_v59  ;;  %v314_v45 = vmul.f32 %v1536_v53, %v1536_v53  ;;  %v411_v13 = vsel %vm78_vm0, %v313_v3, 0.0 }
  0xd0   :  { %v404_v1 = vadd.f32 %v403_v32, %v402_v23  ;;  %v315_v32 = vmul.f32 %v1543_v57, %v1543_v57  ;;  %v413_v50 = vsel %vm78_vm0, %v314_v45, 0.0 }
  0xd2   :  { %v406_v42 = vadd.f32 %v405_v0, %v404_v1  ;;  %v316_v0 = vmul.f32 %v1550_v62, %v1550_v62  ;;  %v415_v3 = vsel %vm78_vm0, %v315_v32, 0.0 }
  0xd4   :  { %v408_v59 = vadd.f32 %v407_v24, %v406_v42  ;;  %v317_v24 = vmul.f32 %v1557_v6, %v1557_v6  ;;  %v417_v45 = vsel %vm78_vm0, %v316_v0, 0.0 }
  0xd6   :  { %v410_v23 = vadd.f32 %v409_v5, %v408_v59  ;;  %v318_v5 = vmul.f32 %v1564_v14, %v1564_v14  ;;  %v419_v32 = vsel %vm78_vm0, %v317_v24, 0.0 }
  0xd8   :  { %v412_v1 = vadd.f32 %v411_v13, %v410_v23  ;;  %v319_v13 = vmul.f32 %v1571_v20, %v1571_v20  ;;  %v421_v0 = vsel %vm78_vm0, %v318_v5, 0.0 }
  0xda   :  { %v414_v42 = vadd.f32 %v413_v50, %v412_v1  ;;  %v320_v50 = vmul.f32 %v1578_v27, %v1578_v27  ;;  %v423_v24 = vsel %vm78_vm0, %v319_v13, 0.0 }
  0xdc   :  { %v416_v59 = vadd.f32 %v415_v3, %v414_v42  ;;  %v321_v3 = vmul.f32 %v1585_v33, %v1585_v33  ;;  %v425_v5 = vsel %vm78_vm0, %v320_v50, 0.0 }
  0xde   :  { %v418_v23 = vadd.f32 %v417_v45, %v416_v59  ;;  %v322_v45 = vmul.f32 %v1592_v41, %v1592_v41  ;;  %v427_v13 = vsel %vm78_vm0, %v321_v3, 0.0 }
  0xe0   :  { %v420_v1 = vadd.f32 %v419_v32, %v418_v23  ;;  %v323_v32 = vmul.f32 %v1599_v47, %v1599_v47  ;;  %v429_v50 = vsel %vm78_vm0, %v322_v45, 0.0 }
  0xe2   :  { %v422_v42 = vadd.f32 %v421_v0, %v420_v1  ;;  %v324_v0 = vmul.f32 %v1606_v54, %v1606_v54  ;;  %v431_v3 = vsel %vm78_vm0, %v323_v32, 0.0  ;;  %v326_v54 = vmul.f32 %v1620_v9, %v1620_v9 }
  0xe4   :  { %v424_v59 = vadd.f32 %v423_v24, %v422_v42  ;;  %v2321_v24 = vld [vmem:[#allocation2_spill] sm:$0xff]  ;;  %v325_v42 = vmul.f32 %v1613_v60, %v1613_v60  ;;  %v433_v45 = vsel %vm78_vm0, %v324_v0, 0.0  ;;  %v437_v0 = vsel %vm78_vm0, %v326_v54, 0.0 }
  0xe5   :  { %v1627_v18 = vsub.f32 %v2321_v24, %v1288_v36 }
  0xe6   :  { %v426_v23 = vadd.f32 %v425_v5, %v424_v59  ;;  %v2323_v59 = vld [vmem:[#allocation3_spill] sm:$0xff]  ;;  %v435_v32 = vsel %vm78_vm0, %v325_v42, 0.0 }
  0xe7   :  { %2322 = vst [vmem:[#allocation2_spill] sm:$0xff] %v1627_v18  ;;  %v1634_v29 = vsub.f32 %v2323_v59, %v1288_v36  ;;  %v327_v60 = vmul.f32 %v1627_v18, %v1627_v18 }
  0xe8   :  { %v428_v1 = vadd.f32 %v427_v13, %v426_v23  ;;  %v2325_v23 = vld [vmem:[#allocation4_spill] sm:$0xff] }
  0xe9   :  { %2324 = vst [vmem:[#allocation3_spill] sm:$0xff] %v1634_v29  ;;  %v1641_v24 = vsub.f32 %v2325_v23, %v1288_v36  ;;  %v328_v9 = vmul.f32 %v1634_v29, %v1634_v29  ;;  %v439_v42 = vsel %vm78_vm0, %v327_v60, 0.0 }
  0xea   :  { %v430_v5 = vadd.f32 %v429_v50, %v428_v1  ;;  %v2327_v1 = vld [vmem:[#allocation5_spill] sm:$0xff] }
  0xeb   :  { %2326 = vst [vmem:[#allocation4_spill] sm:$0xff] %v1641_v24  ;;  %v1648_v59 = vsub.f32 %v2327_v1, %v1288_v36  ;;  %v329_v18 = vmul.f32 %v1641_v24, %v1641_v24  ;;  %v441_v54 = vsel %vm78_vm0, %v328_v9, 0.0 }
  0xec   :  { %v432_v13 = vadd.f32 %v431_v3, %v430_v5  ;;  %v2329_v5 = vld [vmem:[#allocation6_spill] sm:$0xff] }
  0xed   :  { %2328 = vst [vmem:[#allocation5_spill] sm:$0xff] %v1648_v59  ;;  %v1655_v23 = vsub.f32 %v2329_v5, %v1288_v36  ;;  %v330_v29 = vmul.f32 %v1648_v59, %v1648_v59  ;;  %v443_v60 = vsel %vm78_vm0, %v329_v18, 0.0 }
  0xee   :  { %v434_v50 = vadd.f32 %v433_v45, %v432_v13  ;;  %v2331_v13 = vld [vmem:[#allocation7_spill] sm:$0xff] }
  0xef   :  { %2330 = vst [vmem:[#allocation6_spill] sm:$0xff] %v1655_v23  ;;  %v1662_v1 = vsub.f32 %v2331_v13, %v1288_v36  ;;  %v331_v24 = vmul.f32 %v1655_v23, %v1655_v23  ;;  %v445_v9 = vsel %vm78_vm0, %v330_v29, 0.0 }
  0xf0   :  { %v436_v3 = vadd.f32 %v435_v32, %v434_v50  ;;  %v2333_v50 = vld [vmem:[#allocation8_spill] sm:$0xff] }
  0xf1   :  { %2332 = vst [vmem:[#allocation7_spill] sm:$0xff] %v1662_v1  ;;  %v1669_v5 = vsub.f32 %v2333_v50, %v1288_v36  ;;  %v332_v59 = vmul.f32 %v1662_v1, %v1662_v1  ;;  %v447_v18 = vsel %vm78_vm0, %v331_v24, 0.0 }
  0xf2   :  { %v438_v45 = vadd.f32 %v437_v0, %v436_v3  ;;  %v2335_v3 = vld [vmem:[#allocation9_spill] sm:$0xff] }
  0xf3   :  { %2334 = vst [vmem:[#allocation8_spill] sm:$0xff] %v1669_v5  ;;  %v1676_v13 = vsub.f32 %v2335_v3, %v1288_v36  ;;  %v333_v23 = vmul.f32 %v1669_v5, %v1669_v5  ;;  %v449_v29 = vsel %vm78_vm0, %v332_v59, 0.0 }
  0xf4   :  { %v440_v32 = vadd.f32 %v439_v42, %v438_v45  ;;  %v2337_v45 = vld [vmem:[#allocation10_spill] sm:$0xff] }
  0xf5   :  { %2336 = vst [vmem:[#allocation9_spill] sm:$0xff] %v1676_v13  ;;  %v1683_v50 = vsub.f32 %v2337_v45, %v1288_v36  ;;  %v334_v1 = vmul.f32 %v1676_v13, %v1676_v13  ;;  %v451_v24 = vsel %vm78_vm0, %v333_v23, 0.0 }
  0xf6   :  { %v442_v0 = vadd.f32 %v441_v54, %v440_v32  ;;  %v2339_v32 = vld [vmem:[#allocation11_spill] sm:$0xff] }
  0xf7   :  { %2338 = vst [vmem:[#allocation10_spill] sm:$0xff] %v1683_v50  ;;  %v1690_v3 = vsub.f32 %v2339_v32, %v1288_v36  ;;  %v335_v5 = vmul.f32 %v1683_v50, %v1683_v50  ;;  %v453_v59 = vsel %vm78_vm0, %v334_v1, 0.0 }
  0xf8   :  { %v444_v42 = vadd.f32 %v443_v60, %v442_v0  ;;  %v2341_v0 = vld [vmem:[#allocation12_spill] sm:$0xff] }
  0xf9   :  { %2340 = vst [vmem:[#allocation11_spill] sm:$0xff] %v1690_v3  ;;  %v1697_v45 = vsub.f32 %v2341_v0, %v1288_v36  ;;  %v336_v13 = vmul.f32 %v1690_v3, %v1690_v3  ;;  %v455_v23 = vsel %vm78_vm0, %v335_v5, 0.0 }
  0xfa   :  { %v446_v54 = vadd.f32 %v445_v9, %v444_v42  ;;  %v2343_v42 = vld [vmem:[#allocation13_spill] sm:$0xff] }
  0xfb   :  { %2342 = vst [vmem:[#allocation12_spill] sm:$0xff] %v1697_v45  ;;  %v1704_v32 = vsub.f32 %v2343_v42, %v1288_v36  ;;  %v337_v50 = vmul.f32 %v1697_v45, %v1697_v45  ;;  %v457_v1 = vsel %vm78_vm0, %v336_v13, 0.0 }
  0xfc   :  { %v448_v60 = vadd.f32 %v447_v18, %v446_v54  ;;  %v2345_v54 = vld [vmem:[#allocation14_spill] sm:$0xff] }
  0xfd   :  { %2344 = vst [vmem:[#allocation13_spill] sm:$0xff] %v1704_v32  ;;  %v1711_v0 = vsub.f32 %v2345_v54, %v1288_v36  ;;  %v338_v3 = vmul.f32 %v1704_v32, %v1704_v32  ;;  %v459_v5 = vsel %vm78_vm0, %v337_v50, 0.0 }
  0xfe   :  { %v450_v9 = vadd.f32 %v449_v29, %v448_v60  ;;  %v2347_v60 = vld [vmem:[#allocation15_spill] sm:$0xff] }
  0xff   :  { %2346 = vst [vmem:[#allocation14_spill] sm:$0xff] %v1711_v0  ;;  %v1718_v42 = vsub.f32 %v2347_v60, %v1288_v36  ;;  %v339_v54 = vmul.f32 %v1711_v0, %v1711_v0  ;;  %v461_v60 = vsel %vm78_vm0, %v338_v3, 0.0 }
 0x100   :  { %v452_v18 = vadd.f32 %v451_v24, %v450_v9  ;;  %v1725_v9 = vsub.f32 %v1284_v11, %v1288_v36 }
 0x101   :  { %2348 = vst [vmem:[#allocation15_spill] sm:$0xff] %v1718_v42 }
 0x102   :  { %v454_v29 = vadd.f32 %v453_v59, %v452_v18  ;;  %2349 = vst [vmem:[#allocation22_spill] sm:$0xff] %v1725_v9  ;;  %v340_v18 = vmul.f32 %v1718_v42, %v1718_v42  ;;  %v341_v13 = vmul.f32 %v1725_v9, %v1725_v9 }
 0x104   :  { %v456_v24 = vadd.f32 %v455_v23, %v454_v29  ;;  %v463_v23 = vsel %vm78_vm0, %v339_v54, 0.0  ;;  %v465_v11 = vsel %vm78_vm0, %v340_v18, 0.0  ;;  %v467_v0 = vsel %vm78_vm0, %v341_v13, 0.0 }
 0x106   :  { %v458_v59 = vadd.f32 %v457_v1, %v456_v24 }
 0x108   :  { %v460_v45 = vadd.f32 %v459_v5, %v458_v59 }
 0x10a   :  { %v462_v29 = vadd.f32 %v461_v60, %v460_v45  ;;  %v1743_v45 = vld [vmem:[%s2263_s1] ss:$0 sm:$0xff] }
 0x10c   :  { %v464_v36 = vadd.f32 %v463_v23, %v462_v29 }
 0x10e   :  { %v466_v32 = vadd.f32 %v465_v11, %v464_v36 }
 0x110   :  { %v468_v50 = vadd.f32 %v467_v0, %v466_v32  ;;  %v1756_v0 = vld [vmem:[%s2264_s2] ss:$0 sm:$0xff] }
 0x112   :  { %v469_v1 = vrot.slane %v468_v50, 4 }
 0x114   :  { %v470_v24 = vadd.f32 %v469_v1, %v468_v50 }
 0x116   :  { %v471_v47 = vrot.slane %v470_v24, 2 }
 0x118   :  { %v472_v42 = vadd.f32 %v471_v47, %v470_v24 }
 0x11a   :  { %v473_v41 = vrot.slane %v472_v42, 1 }
 0x11c   :  { %v474_v3 = vadd.f32 %v473_v41, %v472_v42  ;;  %v2350_v42 = vld [vmem:[#allocation16_spill] sm:$0xff] }
 0x11e   :  { %v475_v5 = vmul.f32 0.001953125, %v474_v3 }
 0x120   :  { %v476_v59 = vadd.f32 1e-05, %v475_v5 }
 0x122   :  { %818 = vrsqrt.f32 %v476_v59 }
 0x12c   :  { %v1738_v9 = vpop.eup %818 }
 0x12d   :  { %v478_v54 = vmul.f32 %v1738_v9, %v1292_v56  ;;  %v479_v32 = vmul.f32 %v1738_v9, %v1296_v51  ;;  %v480_v47 = vmul.f32 %v1738_v9, %v1300_v63  ;;  %v481_v41 = vmul.f32 %v1738_v9, %v1304_v15 }
 0x12e   :  { %v482_v18 = vmul.f32 %v1738_v9, %v2350_v42  ;;  %v483_v56 = vmul.f32 %v1738_v9, %v1318_v2  ;;  %v484_v51 = vmul.f32 %v1738_v9, %v1324_v7  ;;  %v485_v63 = vmul.f32 %v1738_v9, %v1333_v10 }
 0x12f   :  { %v549_v60 = vmul.f32 %v1743_v45, %v478_v54  ;;  %v550_v15 = vmul.f32 %v1743_v45, %v479_v32  ;;  %v551_v13 = vmul.f32 %v1743_v45, %v480_v47  ;;  %v552_v23 = vmul.f32 %v1743_v45, %v481_v41 }
 0x130   :  { %v553_v29 = vmul.f32 %v1743_v45, %v482_v18  ;;  %v554_v11 = vmul.f32 %v1743_v45, %v483_v56  ;;  %v555_v2 = vmul.f32 %v1743_v45, %v484_v51  ;;  %v556_v36 = vmul.f32 %v1743_v45, %v485_v63 }
 0x131   :  { %v620_v7 = vadd.f32 %v1756_v0, %v549_v60  ;;  %v621_v10 = vadd.f32 %v1756_v0, %v550_v15  ;;  %v622_v50 = vadd.f32 %v1756_v0, %v551_v13  ;;  %v623_v1 = vadd.f32 %v1756_v0, %v552_v23 }
 0x132   :  { %v624_v24 = vadd.f32 %v1756_v0, %v553_v29  ;;  %v625_v3 = vadd.f32 %v1756_v0, %v554_v11  ;;  %v626_v5 = vadd.f32 %v1756_v0, %v555_v2  ;;  %v627_v59 = vadd.f32 %v1756_v0, %v556_v36 }
 0x133   :  { %v684_v54 = vmax.f32 %v620_v7, 0.0  ;;  %v685_v32 = vmax.f32 %v621_v10, 0.0  ;;  %v686_v47 = vmax.f32 %v622_v50, 0.0  ;;  %v687_v41 = vmax.f32 %v623_v1, 0.0 }
 0x134   :  { %v688_v42 = vmax.f32 %v624_v24, 0.0  ;;  %v689_v18 = vmax.f32 %v625_v3, 0.0  ;;  %v690_v56 = vmax.f32 %v626_v5, 0.0  ;;  %v691_v51 = vmax.f32 %v627_v59, 0.0 }
 0x135   :  { %748 = vst.msk [vmem:[%s2265_s3] sm:$0xff] %vm78_vm0, %v684_v54  ;;  %749 = vst.msk [vmem:[%s2265_s3 + $0x8] sm:$0xff] %vm78_vm0, %v685_v32  ;;  %v486_v63 = vmul.f32 %v1738_v9, %v1340_v38  ;;  %v487_v60 = vmul.f32 %v1738_v9, %v1347_v16  ;;  %v488_v15 = vmul.f32 %v1738_v9, %v1354_v19 }
 0x136   :  { %750 = vst.msk [vmem:[%s2265_s3 + $0x10] sm:$0xff] %vm78_vm0, %v686_v47  ;;  %751 = vst.msk [vmem:[%s2265_s3 + $0x18] sm:$0xff] %vm78_vm0, %v687_v41  ;;  %v489_v13 = vmul.f32 %v1738_v9, %v1361_v22  ;;  %v490_v38 = vmul.f32 %v1738_v9, %v1368_v25  ;;  %v491_v16 = vmul.f32 %v1738_v9, %v1375_v28 }
 0x137   :  { %752 = vst.msk [vmem:[%s2265_s3 + $0x20] sm:$0xff] %vm78_vm0, %v688_v42  ;;  %753 = vst.msk [vmem:[%s2265_s3 + $0x28] sm:$0xff] %vm78_vm0, %v689_v18  ;;  %v492_v19 = vmul.f32 %v1738_v9, %v1382_v31  ;;  %v493_v22 = vmul.f32 %v1738_v9, %v1389_v34  ;;  %v557_v23 = vmul.f32 %v1743_v45, %v486_v63 }
 0x138   :  { %754 = vst.msk [vmem:[%s2265_s3 + $0x30] sm:$0xff] %vm78_vm0, %v690_v56  ;;  %755 = vst.msk [vmem:[%s2265_s3 + $0x38] sm:$0xff] %vm78_vm0, %v691_v51  ;;  %v558_v29 = vmul.f32 %v1743_v45, %v487_v60  ;;  %v559_v11 = vmul.f32 %v1743_v45, %v488_v15  ;;  %v560_v2 = vmul.f32 %v1743_v45, %v489_v13 }
 0x139   :  { %v561_v36 = vmul.f32 %v1743_v45, %v490_v38  ;;  %v562_v25 = vmul.f32 %v1743_v45, %v491_v16  ;;  %v563_v28 = vmul.f32 %v1743_v45, %v492_v19  ;;  %v564_v7 = vmul.f32 %v1743_v45, %v493_v22 }
 0x13a   :  { %v628_v31 = vadd.f32 %v1756_v0, %v557_v23  ;;  %v629_v34 = vadd.f32 %v1756_v0, %v558_v29  ;;  %v630_v10 = vadd.f32 %v1756_v0, %v559_v11  ;;  %v631_v50 = vadd.f32 %v1756_v0, %v560_v2 }
 0x13b   :  { %v632_v1 = vadd.f32 %v1756_v0, %v561_v36  ;;  %v633_v24 = vadd.f32 %v1756_v0, %v562_v25  ;;  %v634_v3 = vadd.f32 %v1756_v0, %v563_v28  ;;  %v635_v5 = vadd.f32 %v1756_v0, %v564_v7 }
 0x13c   :  { %v692_v59 = vmax.f32 %v628_v31, 0.0  ;;  %v693_v54 = vmax.f32 %v629_v34, 0.0  ;;  %v694_v32 = vmax.f32 %v630_v10, 0.0  ;;  %v695_v47 = vmax.f32 %v631_v50, 0.0 }
 0x13d   :  { %v696_v41 = vmax.f32 %v632_v1, 0.0  ;;  %v697_v42 = vmax.f32 %v633_v24, 0.0  ;;  %v698_v18 = vmax.f32 %v634_v3, 0.0  ;;  %v699_v56 = vmax.f32 %v635_v5, 0.0 }
 0x13e   :  { %756 = vst.msk [vmem:[%s2265_s3 + $0x40] sm:$0xff] %vm78_vm0, %v692_v59  ;;  %757 = vst.msk [vmem:[%s2265_s3 + $0x48] sm:$0xff] %vm78_vm0, %v693_v54  ;;  %v494_v51 = vmul.f32 %v1738_v9, %v1396_v37  ;;  %v495_v63 = vmul.f32 %v1738_v9, %v1403_v40  ;;  %v496_v60 = vmul.f32 %v1738_v9, %v1410_v43 }
 0x13f   :  { %758 = vst.msk [vmem:[%s2265_s3 + $0x50] sm:$0xff] %vm78_vm0, %v694_v32  ;;  %759 = vst.msk [vmem:[%s2265_s3 + $0x58] sm:$0xff] %vm78_vm0, %v695_v47  ;;  %v497_v15 = vmul.f32 %v1738_v9, %v1417_v46  ;;  %v498_v37 = vmul.f32 %v1738_v9, %v1424_v49  ;;  %v499_v40 = vmul.f32 %v1738_v9, %v1431_v52 }
 0x140   :  { %760 = vst.msk [vmem:[%s2265_s3 + $0x60] sm:$0xff] %vm78_vm0, %v696_v41  ;;  %761 = vst.msk [vmem:[%s2265_s3 + $0x68] sm:$0xff] %vm78_vm0, %v697_v42  ;;  %v500_v43 = vmul.f32 %v1738_v9, %v1438_v55  ;;  %v501_v46 = vmul.f32 %v1738_v9, %v1445_v58  ;;  %v565_v13 = vmul.f32 %v1743_v45, %v494_v51 }
 0x141   :  { %762 = vst.msk [vmem:[%s2265_s3 + $0x70] sm:$0xff] %vm78_vm0, %v698_v18  ;;  %763 = vst.msk [vmem:[%s2265_s3 + $0x78] sm:$0xff] %vm78_vm0, %v699_v56  ;;  %v566_v38 = vmul.f32 %v1743_v45, %v495_v63  ;;  %v567_v16 = vmul.f32 %v1743_v45, %v496_v60  ;;  %v568_v19 = vmul.f32 %v1743_v45, %v497_v15 }
 0x142   :  { %v569_v22 = vmul.f32 %v1743_v45, %v498_v37  ;;  %v570_v49 = vmul.f32 %v1743_v45, %v499_v40  ;;  %v571_v52 = vmul.f32 %v1743_v45, %v500_v43  ;;  %v572_v23 = vmul.f32 %v1743_v45, %v501_v46 }
 0x143   :  { %v636_v55 = vadd.f32 %v1756_v0, %v565_v13  ;;  %v637_v58 = vadd.f32 %v1756_v0, %v566_v38  ;;  %v638_v29 = vadd.f32 %v1756_v0, %v567_v16  ;;  %v639_v11 = vadd.f32 %v1756_v0, %v568_v19 }
 0x144   :  { %v640_v2 = vadd.f32 %v1756_v0, %v569_v22  ;;  %v641_v36 = vadd.f32 %v1756_v0, %v570_v49  ;;  %v642_v25 = vadd.f32 %v1756_v0, %v571_v52  ;;  %v643_v28 = vadd.f32 %v1756_v0, %v572_v23 }
 0x145   :  { %v700_v7 = vmax.f32 %v636_v55, 0.0  ;;  %v701_v31 = vmax.f32 %v637_v58, 0.0  ;;  %v702_v34 = vmax.f32 %v638_v29, 0.0  ;;  %v703_v10 = vmax.f32 %v639_v11, 0.0 }
 0x146   :  { %v704_v50 = vmax.f32 %v640_v2, 0.0  ;;  %v705_v1 = vmax.f32 %v641_v36, 0.0  ;;  %v706_v24 = vmax.f32 %v642_v25, 0.0  ;;  %v707_v3 = vmax.f32 %v643_v28, 0.0 }
 0x147   :  { %764 = vst.msk [vmem:[%s2265_s3 + $0x80] sm:$0xff] %vm78_vm0, %v700_v7  ;;  %765 = vst.msk [vmem:[%s2265_s3 + $0x88] sm:$0xff] %vm78_vm0, %v701_v31  ;;  %v502_v5 = vmul.f32 %v1738_v9, %v1452_v61  ;;  %v503_v59 = vmul.f32 %v1738_v9, %v1459_v4  ;;  %v504_v54 = vmul.f32 %v1738_v9, %v1466_v8 }
 0x148   :  { %766 = vst.msk [vmem:[%s2265_s3 + $0x90] sm:$0xff] %vm78_vm0, %v702_v34  ;;  %767 = vst.msk [vmem:[%s2265_s3 + $0x98] sm:$0xff] %vm78_vm0, %v703_v10  ;;  %v505_v32 = vmul.f32 %v1738_v9, %v1473_v12  ;;  %v506_v61 = vmul.f32 %v1738_v9, %v1480_v17  ;;  %v507_v4 = vmul.f32 %v1738_v9, %v1487_v21 }
 0x149   :  { %768 = vst.msk [vmem:[%s2265_s3 + $0xa0] sm:$0xff] %vm78_vm0, %v704_v50  ;;  %769 = vst.msk [vmem:[%s2265_s3 + $0xa8] sm:$0xff] %vm78_vm0, %v705_v1  ;;  %v508_v8 = vmul.f32 %v1738_v9, %v1494_v26  ;;  %v509_v12 = vmul.f32 %v1738_v9, %v1501_v30  ;;  %v573_v47 = vmul.f32 %v1743_v45, %v502_v5 }
 0x14a   :  { %770 = vst.msk [vmem:[%s2265_s3 + $0xb0] sm:$0xff] %vm78_vm0, %v706_v24  ;;  %771 = vst.msk [vmem:[%s2265_s3 + $0xb8] sm:$0xff] %vm78_vm0, %v707_v3  ;;  %v574_v41 = vmul.f32 %v1743_v45, %v503_v59  ;;  %v575_v42 = vmul.f32 %v1743_v45, %v504_v54  ;;  %v576_v18 = vmul.f32 %v1743_v45, %v505_v32 }
 0x14b   :  { %v577_v56 = vmul.f32 %v1743_v45, %v506_v61  ;;  %v578_v17 = vmul.f32 %v1743_v45, %v507_v4  ;;  %v579_v21 = vmul.f32 %v1743_v45, %v508_v8  ;;  %v580_v51 = vmul.f32 %v1743_v45, %v509_v12 }
 0x14c   :  { %v644_v26 = vadd.f32 %v1756_v0, %v573_v47  ;;  %v645_v30 = vadd.f32 %v1756_v0, %v574_v41  ;;  %v646_v63 = vadd.f32 %v1756_v0, %v575_v42  ;;  %v647_v60 = vadd.f32 %v1756_v0, %v576_v18  ;;  %v2353_v18 = vld [vmem:[#allocation19_spill] sm:$0xff] }
 0x14d   :  { %v648_v15 = vadd.f32 %v1756_v0, %v577_v56  ;;  %v649_v37 = vadd.f32 %v1756_v0, %v578_v17  ;;  %v650_v40 = vadd.f32 %v1756_v0, %v579_v21  ;;  %v651_v43 = vadd.f32 %v1756_v0, %v580_v51  ;;  %v2354_v17 = vld [vmem:[#allocation20_spill] sm:$0xff] }
 0x14e   :  { %v708_v46 = vmax.f32 %v644_v26, 0.0  ;;  %v709_v13 = vmax.f32 %v645_v30, 0.0  ;;  %v710_v38 = vmax.f32 %v646_v63, 0.0  ;;  %v711_v16 = vmax.f32 %v647_v60, 0.0 }
 0x14f   :  { %v712_v19 = vmax.f32 %v648_v15, 0.0  ;;  %v713_v22 = vmax.f32 %v649_v37, 0.0  ;;  %v714_v49 = vmax.f32 %v650_v40, 0.0  ;;  %v715_v52 = vmax.f32 %v651_v43, 0.0 }
 0x150   :  { %772 = vst.msk [vmem:[%s2265_s3 + $0xc0] sm:$0xff] %vm78_vm0, %v708_v46  ;;  %773 = vst.msk [vmem:[%s2265_s3 + $0xc8] sm:$0xff] %vm78_vm0, %v709_v13  ;;  %v510_v23 = vmul.f32 %v1738_v9, %v1508_v35  ;;  %v511_v55 = vmul.f32 %v1738_v9, %v1515_v39  ;;  %v512_v58 = vmul.f32 %v1738_v9, %v1522_v44 }
 0x151   :  { %774 = vst.msk [vmem:[%s2265_s3 + $0xd0] sm:$0xff] %vm78_vm0, %v710_v38  ;;  %775 = vst.msk [vmem:[%s2265_s3 + $0xd8] sm:$0xff] %vm78_vm0, %v711_v16  ;;  %v513_v29 = vmul.f32 %v1738_v9, %v1529_v48  ;;  %v514_v35 = vmul.f32 %v1738_v9, %v1536_v53  ;;  %v515_v39 = vmul.f32 %v1738_v9, %v1543_v57 }
 0x152   :  { %776 = vst.msk [vmem:[%s2265_s3 + $0xe0] sm:$0xff] %vm78_vm0, %v712_v19  ;;  %777 = vst.msk [vmem:[%s2265_s3 + $0xe8] sm:$0xff] %vm78_vm0, %v713_v22  ;;  %v516_v44 = vmul.f32 %v1738_v9, %v1550_v62  ;;  %v517_v48 = vmul.f32 %v1738_v9, %v1557_v6  ;;  %v581_v11 = vmul.f32 %v1743_v45, %v510_v23 }
 0x153   :  { %778 = vst.msk [vmem:[%s2265_s3 + $0xf0] sm:$0xff] %vm78_vm0, %v714_v49  ;;  %779 = vst.msk [vmem:[%s2265_s3 + $0xf8] sm:$0xff] %vm78_vm0, %v715_v52  ;;  %v582_v2 = vmul.f32 %v1743_v45, %v511_v55  ;;  %v583_v36 = vmul.f32 %v1743_v45, %v512_v58  ;;  %v584_v25 = vmul.f32 %v1743_v45, %v513_v29 }
 0x154   :  { %v585_v28 = vmul.f32 %v1743_v45, %v514_v35  ;;  %v586_v53 = vmul.f32 %v1743_v45, %v515_v39  ;;  %v587_v57 = vmul.f32 %v1743_v45, %v516_v44  ;;  %v588_v7 = vmul.f32 %v1743_v45, %v517_v48  ;;  %v2355_v48 = vld [vmem:[#allocation21_spill] sm:$0xff] }
 0x155   :  { %v652_v62 = vadd.f32 %v1756_v0, %v581_v11  ;;  %v653_v6 = vadd.f32 %v1756_v0, %v582_v2  ;;  %v654_v31 = vadd.f32 %v1756_v0, %v583_v36  ;;  %v655_v34 = vadd.f32 %v1756_v0, %v584_v25  ;;  %v2356_v2 = vld [vmem:[#allocation2_spill] sm:$0xff]  ;;  %v2357_v25 = vld [vmem:[#allocation3_spill] sm:$0xff] }
 0x156   :  { %v656_v10 = vadd.f32 %v1756_v0, %v585_v28  ;;  %v657_v50 = vadd.f32 %v1756_v0, %v586_v53  ;;  %v658_v1 = vadd.f32 %v1756_v0, %v587_v57  ;;  %v659_v24 = vadd.f32 %v1756_v0, %v588_v7  ;;  %v2358_v53 = vld [vmem:[#allocation4_spill] sm:$0xff]  ;;  %v2359_v7 = vld [vmem:[#allocation5_spill] sm:$0xff] }
 0x157   :  { %v716_v3 = vmax.f32 %v652_v62, 0.0  ;;  %v717_v5 = vmax.f32 %v653_v6, 0.0  ;;  %v718_v59 = vmax.f32 %v654_v31, 0.0  ;;  %v719_v54 = vmax.f32 %v655_v34, 0.0  ;;  %v2360_v6 = vld [vmem:[#allocation6_spill] sm:$0xff]  ;;  %v2361_v34 = vld [vmem:[#allocation7_spill] sm:$0xff] }
 0x158   :  { %v720_v32 = vmax.f32 %v656_v10, 0.0  ;;  %v721_v61 = vmax.f32 %v657_v50, 0.0  ;;  %v722_v4 = vmax.f32 %v658_v1, 0.0  ;;  %v723_v8 = vmax.f32 %v659_v24, 0.0  ;;  %v2362_v50 = vld [vmem:[#allocation8_spill] sm:$0xff] }
 0x159   :  { %780 = vst.msk [vmem:[%s2265_s3 + $0x100] sm:$0xff] %vm78_vm0, %v716_v3  ;;  %781 = vst.msk [vmem:[%s2265_s3 + $0x108] sm:$0xff] %vm78_vm0, %v717_v5  ;;  %v518_v12 = vmul.f32 %v1738_v9, %v1564_v14  ;;  %v519_v47 = vmul.f32 %v1738_v9, %v1571_v20  ;;  %v520_v41 = vmul.f32 %v1738_v9, %v1578_v27  ;;  %v2351_v14 = vld [vmem:[#allocation17_spill] sm:$0xff]  ;;  %v2352_v27 = vld [vmem:[#allocation18_spill] sm:$0xff] }
 0x15a   :  { %782 = vst.msk [vmem:[%s2265_s3 + $0x110] sm:$0xff] %vm78_vm0, %v718_v59  ;;  %783 = vst.msk [vmem:[%s2265_s3 + $0x118] sm:$0xff] %vm78_vm0, %v719_v54  ;;  %v521_v42 = vmul.f32 %v1738_v9, %v1585_v33  ;;  %v522_v20 = vmul.f32 %v1738_v9, %v2351_v14  ;;  %v523_v33 = vmul.f32 %v1738_v9, %v2352_v27 }
 0x15b   :  { %784 = vst.msk [vmem:[%s2265_s3 + $0x120] sm:$0xff] %vm78_vm0, %v720_v32  ;;  %785 = vst.msk [vmem:[%s2265_s3 + $0x128] sm:$0xff] %vm78_vm0, %v721_v61  ;;  %v524_v56 = vmul.f32 %v1738_v9, %v2353_v18  ;;  %v525_v21 = vmul.f32 %v1738_v9, %v2354_v17  ;;  %v589_v51 = vmul.f32 %v1743_v45, %v518_v12 }
 0x15c   :  { %786 = vst.msk [vmem:[%s2265_s3 + $0x130] sm:$0xff] %vm78_vm0, %v722_v4  ;;  %787 = vst.msk [vmem:[%s2265_s3 + $0x138] sm:$0xff] %vm78_vm0, %v723_v8  ;;  %v590_v26 = vmul.f32 %v1743_v45, %v519_v47  ;;  %v591_v30 = vmul.f32 %v1743_v45, %v520_v41  ;;  %v592_v63 = vmul.f32 %v1743_v45, %v521_v42 }
 0x15d   :  { %v593_v60 = vmul.f32 %v1743_v45, %v522_v20  ;;  %v594_v15 = vmul.f32 %v1743_v45, %v523_v33  ;;  %v595_v37 = vmul.f32 %v1743_v45, %v524_v56  ;;  %v596_v40 = vmul.f32 %v1743_v45, %v525_v21 }
 0x15e   :  { %v660_v43 = vadd.f32 %v1756_v0, %v589_v51  ;;  %v661_v46 = vadd.f32 %v1756_v0, %v590_v26  ;;  %v662_v13 = vadd.f32 %v1756_v0, %v591_v30  ;;  %v663_v38 = vadd.f32 %v1756_v0, %v592_v63  ;;  %v2363_v63 = vld [vmem:[#allocation9_spill] sm:$0xff] }
 0x15f   :  { %v664_v16 = vadd.f32 %v1756_v0, %v593_v60  ;;  %v665_v19 = vadd.f32 %v1756_v0, %v594_v15  ;;  %v666_v22 = vadd.f32 %v1756_v0, %v595_v37  ;;  %v667_v49 = vadd.f32 %v1756_v0, %v596_v40  ;;  %v2364_v15 = vld [vmem:[#allocation10_spill] sm:$0xff]  ;;  %v2365_v40 = vld [vmem:[#allocation11_spill] sm:$0xff] }
 0x160   :  { %v724_v52 = vmax.f32 %v660_v43, 0.0  ;;  %v725_v23 = vmax.f32 %v661_v46, 0.0  ;;  %v726_v55 = vmax.f32 %v662_v13, 0.0  ;;  %v727_v58 = vmax.f32 %v663_v38, 0.0  ;;  %v2366_v46 = vld [vmem:[#allocation12_spill] sm:$0xff]  ;;  %v2367_v38 = vld [vmem:[#allocation13_spill] sm:$0xff] }
 0x161   :  { %v728_v29 = vmax.f32 %v664_v16, 0.0  ;;  %v729_v35 = vmax.f32 %v665_v19, 0.0  ;;  %v730_v39 = vmax.f32 %v666_v22, 0.0  ;;  %v731_v44 = vmax.f32 %v667_v49, 0.0  ;;  %v2368_v19 = vld [vmem:[#allocation14_spill] sm:$0xff]  ;;  %v2369_v49 = vld [vmem:[#allocation15_spill] sm:$0xff] }
 0x162   :  { %788 = vst.msk [vmem:[%s2265_s3 + $0x140] sm:$0xff] %vm78_vm0, %v724_v52  ;;  %789 = vst.msk [vmem:[%s2265_s3 + $0x148] sm:$0xff] %vm78_vm0, %v725_v23  ;;  %v526_v11 = vmul.f32 %v1738_v9, %v2355_v48  ;;  %v527_v36 = vmul.f32 %v1738_v9, %v2356_v2  ;;  %v528_v28 = vmul.f32 %v1738_v9, %v2357_v25  ;;  %v2370_v23 = vld [vmem:[#allocation22_spill] sm:$0xff] }
 0x163   :  { %790 = vst.msk [vmem:[%s2265_s3 + $0x150] sm:$0xff] %vm78_vm0, %v726_v55  ;;  %791 = vst.msk [vmem:[%s2265_s3 + $0x158] sm:$0xff] %vm78_vm0, %v727_v58  ;;  %v529_v57 = vmul.f32 %v1738_v9, %v2358_v53  ;;  %v530_v62 = vmul.f32 %v1738_v9, %v2359_v7  ;;  %v531_v31 = vmul.f32 %v1738_v9, %v2360_v6 }
 0x164   :  { %792 = vst.msk [vmem:[%s2265_s3 + $0x160] sm:$0xff] %vm78_vm0, %v728_v29  ;;  %793 = vst.msk [vmem:[%s2265_s3 + $0x168] sm:$0xff] %vm78_vm0, %v729_v35  ;;  %v532_v10 = vmul.f32 %v1738_v9, %v2361_v34  ;;  %v533_v1 = vmul.f32 %v1738_v9, %v2362_v50  ;;  %v597_v24 = vmul.f32 %v1743_v45, %v526_v11 }
 0x165   :  { %794 = vst.msk [vmem:[%s2265_s3 + $0x170] sm:$0xff] %vm78_vm0, %v730_v39  ;;  %795 = vst.msk [vmem:[%s2265_s3 + $0x178] sm:$0xff] %vm78_vm0, %v731_v44  ;;  %v598_v3 = vmul.f32 %v1743_v45, %v527_v36  ;;  %v599_v5 = vmul.f32 %v1743_v45, %v528_v28  ;;  %v600_v59 = vmul.f32 %v1743_v45, %v529_v57 }
 0x166   :  { %v601_v54 = vmul.f32 %v1743_v45, %v530_v62  ;;  %v602_v32 = vmul.f32 %v1743_v45, %v531_v31  ;;  %v603_v61 = vmul.f32 %v1743_v45, %v532_v10  ;;  %v604_v4 = vmul.f32 %v1743_v45, %v533_v1 }
 0x167   :  { %v668_v8 = vadd.f32 %v1756_v0, %v597_v24  ;;  %v669_v12 = vadd.f32 %v1756_v0, %v598_v3  ;;  %v670_v47 = vadd.f32 %v1756_v0, %v599_v5  ;;  %v671_v41 = vadd.f32 %v1756_v0, %v600_v59 }
 0x168   :  { %v672_v42 = vadd.f32 %v1756_v0, %v601_v54  ;;  %v673_v14 = vadd.f32 %v1756_v0, %v602_v32  ;;  %v674_v20 = vadd.f32 %v1756_v0, %v603_v61  ;;  %v675_v27 = vadd.f32 %v1756_v0, %v604_v4 }
 0x169   :  { %v732_v33 = vmax.f32 %v668_v8, 0.0  ;;  %v733_v18 = vmax.f32 %v669_v12, 0.0  ;;  %v734_v56 = vmax.f32 %v670_v47, 0.0  ;;  %v735_v17 = vmax.f32 %v671_v41, 0.0 }
 0x16a   :  { %v736_v21 = vmax.f32 %v672_v42, 0.0  ;;  %v737_v51 = vmax.f32 %v673_v14, 0.0  ;;  %v738_v26 = vmax.f32 %v674_v20, 0.0  ;;  %v739_v30 = vmax.f32 %v675_v27, 0.0 }
 0x16b   :  { %796 = vst.msk [vmem:[%s2265_s3 + $0x180] sm:$0xff] %vm78_vm0, %v732_v33  ;;  %797 = vst.msk [vmem:[%s2265_s3 + $0x188] sm:$0xff] %vm78_vm0, %v733_v18  ;;  %v534_v60 = vmul.f32 %v1738_v9, %v2363_v63  ;;  %v535_v37 = vmul.f32 %v1738_v9, %v2364_v15  ;;  %v536_v43 = vmul.f32 %v1738_v9, %v2365_v40 }
 0x16c   :  { %798 = vst.msk [vmem:[%s2265_s3 + $0x190] sm:$0xff] %vm78_vm0, %v734_v56  ;;  %799 = vst.msk [vmem:[%s2265_s3 + $0x198] sm:$0xff] %vm78_vm0, %v735_v17  ;;  %v537_v13 = vmul.f32 %v1738_v9, %v2366_v46  ;;  %v538_v16 = vmul.f32 %v1738_v9, %v2367_v38  ;;  %v539_v22 = vmul.f32 %v1738_v9, %v2368_v19 }
 0x16d   :  { %800 = vst.msk [vmem:[%s2265_s3 + $0x1a0] sm:$0xff] %vm78_vm0, %v736_v21  ;;  %801 = vst.msk [vmem:[%s2265_s3 + $0x1a8] sm:$0xff] %vm78_vm0, %v737_v51  ;;  %v540_v52 = vmul.f32 %v1738_v9, %v2369_v49  ;;  %v541_v55 = vmul.f32 %v1738_v9, %v2370_v23  ;;  %v605_v58 = vmul.f32 %v1743_v45, %v534_v60 }
 0x16e   :  { %802 = vst.msk [vmem:[%s2265_s3 + $0x1b0] sm:$0xff] %vm78_vm0, %v738_v26  ;;  %803 = vst.msk [vmem:[%s2265_s3 + $0x1b8] sm:$0xff] %vm78_vm0, %v739_v30  ;;  %v606_v29 = vmul.f32 %v1743_v45, %v535_v37  ;;  %v607_v35 = vmul.f32 %v1743_v45, %v536_v43  ;;  %v608_v39 = vmul.f32 %v1743_v45, %v537_v13 }
 0x16f   :  { %v609_v44 = vmul.f32 %v1743_v45, %v538_v16  ;;  %v610_v48 = vmul.f32 %v1743_v45, %v539_v22  ;;  %v611_v11 = vmul.f32 %v1743_v45, %v540_v52  ;;  %v612_v2 = vmul.f32 %v1743_v45, %v541_v55 }
 0x170   :  { %v676_v36 = vadd.f32 %v1756_v0, %v605_v58  ;;  %v677_v9 = vadd.f32 %v1756_v0, %v606_v29  ;;  %v678_v25 = vadd.f32 %v1756_v0, %v607_v35  ;;  %v679_v28 = vadd.f32 %v1756_v0, %v608_v39 }
 0x171   :  { %v680_v53 = vadd.f32 %v1756_v0, %v609_v44  ;;  %v681_v57 = vadd.f32 %v1756_v0, %v610_v48  ;;  %v682_v7 = vadd.f32 %v1756_v0, %v611_v11  ;;  %v683_v62 = vadd.f32 %v1756_v0, %v612_v2 }
 0x172   :  { %v740_v6 = vmax.f32 %v676_v36, 0.0  ;;  %v741_v31 = vmax.f32 %v677_v9, 0.0  ;;  %v742_v34 = vmax.f32 %v678_v25, 0.0  ;;  %v743_v45 = vmax.f32 %v679_v28, 0.0 }
 0x173   :  { %v744_v10 = vmax.f32 %v680_v53, 0.0  ;;  %v745_v50 = vmax.f32 %v681_v57, 0.0  ;;  %v746_v1 = vmax.f32 %v682_v7, 0.0  ;;  %v747_v24 = vmax.f32 %v683_v62, 0.0 }
 0x174   :  { %804 = vst.msk [vmem:[%s2265_s3 + $0x1c0] sm:$0xff] %vm78_vm0, %v740_v6  ;;  %805 = vst.msk [vmem:[%s2265_s3 + $0x1c8] sm:$0xff] %vm78_vm0, %v741_v31 }
 0x175   :  { %806 = vst.msk [vmem:[%s2265_s3 + $0x1d0] sm:$0xff] %vm78_vm0, %v742_v34  ;;  %807 = vst.msk [vmem:[%s2265_s3 + $0x1d8] sm:$0xff] %vm78_vm0, %v743_v45 }
 0x176   :  { %808 = vst.msk [vmem:[%s2265_s3 + $0x1e0] sm:$0xff] %vm78_vm0, %v744_v10  ;;  %809 = vst.msk [vmem:[%s2265_s3 + $0x1e8] sm:$0xff] %vm78_vm0, %v745_v50 }
 0x177   :  { %810 = vst.msk [vmem:[%s2265_s3 + $0x1f0] sm:$0xff] %vm78_vm0, %v746_v1  ;;  %811 = vst.msk [vmem:[%s2265_s3 + $0x1f8] sm:$0xff] %vm78_vm0, %v747_v24 }

// kernel: dcgan_generator_forward.13
= control target key start
LH: loop header
LB: loop body
LE: loop exit
PB: predicated region body
PF: predicated region fallthrough
CT: control target
= control target key end

     0   :  { %s1030_s9 = smov 0   ;;  %s1032_s10 = smov 0   ;;  %s1154_s0 = inlined_call_operand.vmem [shape: bf16[640,256], index: 0, kind: input, shape index: {}]   ;;  %s1155_s1 = inlined_call_operand.vmem [shape: bf16[256,128], index: 1, kind: input, shape index: {}]   ;;  %s1156_s2 = inlined_call_operand.vmem [shape: f32[640,128], index: 2, kind: output, shape index: {}]  }
   0x1   :  { %s1034_s11 = smov 0  }
   0x2 LB: > { %s31_s12 = sadd.s32 1, %s1009_s10  ;;  %p774_p0 = scmp.ge.s32.totalorder %s1013_s11, 1  ;;  %s1013_s11 = sphi %s1034_s11, %s12_s11   ;;  %s1009_s10 = sphi %s1032_s10, %s1158_s10   ;;  %s1005_s9 = sphi %s1030_s9, %s1157_s9  }
   0x3   : > { %p33_p1 = scmp.ge.s32.totalorder %s31_s12, 5  ;;  %p158_p2 = scmp.lt.s32.totalorder %s1013_s11, 6 }
   0x5   : > { %s1160_s12 = smov (%p33_p1, %s31_s12), 0  ;;  %p159_p3 = pnand %p774_p0, %p158_p2 }
   0x6   : > { %v919_v0 = vld [vmem:[%s1155_s1 + $0x40] sm:$0xff] (!%p159_p3)   ;;  %s775_s15 = sshll.u32 (!%p159_p3), %s1005_s9, 4  ;;  %v921_v2 = vld [vmem:[%s1155_s1 + $0x48] sm:$0xff] (!%p159_p3)   ;;  %v923_v4 = vld [vmem:[%s1155_s1 + $0x50] sm:$0xff] (!%p159_p3)  }
   0x7   : > { %162 = sbr.rel (%p159_p3) target bundleno = 294 (0x126), region = 28  ;;  %v920_v1 = vld [vmem:[%s1155_s1] sm:$0xff] (!%p159_p3)   ;;  %815 = vmatprep.subr.bf16.mxu0 (!%p159_p3), %v919_v0  ;;  %879 = vmatprep.subr.bf16.mxu1 (!%p159_p3), %v919_v0  ;;  %v922_v3 = vld [vmem:[%s1155_s1 + $0x8] sm:$0xff] (!%p159_p3)   ;;  %p198_p4 = scmp.lt.s32.totalorder (!%p159_p3), %s775_s15, 79  ;;  %v924_v5 = vld [vmem:[%s1155_s1 + $0x10] sm:$0xff] (!%p159_p3)  }
   0x8   : > { %816 = vmatpush3.bf16.msra.mxu0 (!%p159_p3), %v920_v1  ;;  %887 = vmatpush3.bf16.msra.mxu1 (!%p159_p3), %v920_v1  ;;  %v925_v6 = vld [vmem:[%s1155_s1 + $0x58] sm:$0xff] (!%p159_p3)   ;;  %v927_v8 = vld [vmem:[%s1155_s1 + $0x60] sm:$0xff] (!%p159_p3)   ;;  %v929_v10 = vld [vmem:[%s1155_s1 + $0x68] sm:$0xff] (!%p159_p3)  }
   0x9   : > { %817 = vmatprep.subr.bf16.mxu0 (!%p159_p3), %v921_v2  ;;  %880 = vmatprep.subr.bf16.mxu1 (!%p159_p3), %v921_v2  ;;  %v926_v7 = vld [vmem:[%s1155_s1 + $0x18] sm:$0xff] (!%p159_p3)   ;;  %v928_v9 = vld [vmem:[%s1155_s1 + $0x20] sm:$0xff] (!%p159_p3)   ;;  %v930_v13 = vld [vmem:[%s1155_s1 + $0x28] sm:$0xff] (!%p159_p3)  }
   0xa   : > { %v931_v14 = vld [vmem:[%s1155_s1 + $0x70] sm:$0xff] (!%p159_p3)   ;;  %v933_v16 = vld [vmem:[%s1155_s1 + $0x78] sm:$0xff] (!%p159_p3)  }
   0xb   : > { %v932_v15 = vld [vmem:[%s1155_s1 + $0x30] sm:$0xff] (!%p159_p3)   ;;  %v934_v17 = vld [vmem:[%s1155_s1 + $0x38] sm:$0xff] (!%p159_p3)  }
   0xc   : > { %818 = vmatpush3.bf16.msra.mxu0 (!%p159_p3), %v922_v3  ;;  %888 = vmatpush3.bf16.msra.mxu1 (!%p159_p3), %v922_v3 }
   0xd   : > { %819 = vmatprep.subr.bf16.mxu0 (!%p159_p3), %v923_v4  ;;  %881 = vmatprep.subr.bf16.mxu1 (!%p159_p3), %v923_v4 }
   0xe   : > { %s1162_s15 = smov (!%p198_p4, %s775_s15), 79 }
   0xf   : > { %s814_s30 = sshll.u32 %s1162_s15, 3 }
  0x10   : > { %820 = vmatpush3.bf16.msra.mxu0 %v924_v5  ;;  %889 = vmatpush3.bf16.msra.mxu1 %v924_v5  ;;  %s1083_s7 = scalar_lea.vmem %s1154_s0, %s814_s30  ;;  %s1127_s28 = scalar_lea.vmem %s1156_s2, %s814_s30 }
  0x11   : > { %821 = vmatprep.subr.bf16.mxu0 %v925_v6  ;;  %882 = vmatprep.subr.bf16.mxu1 %v925_v6  ;;  %v937_v11 = vld [vmem:[%s1083_s7 + $0x4] ss:$8 sps:$4 sm:$0xff]   ;;  %v935_v18 = vld [vmem:[%s1083_s7] ss:$8 sps:$4 sm:$0xff]   ;;  %v941_v20 = vld [vmem:[%s1083_s7 + $0x14] ss:$8 sps:$4 sm:$0xff]  }
  0x12   : > { %v940_v12 = vld [vmem:[%s1083_s7 + $0x44] ss:$8 sps:$4 sm:$0xff]   ;;  %519 = vmatprep.mubr.bf16.mxu0 %v937_v11  ;;  %v938_v19 = vld [vmem:[%s1083_s7 + $0x40] ss:$8 sps:$4 sm:$0xff]   ;;  %v943_v21 = vld [vmem:[%s1083_s7 + $0x54] ss:$8 sps:$4 sm:$0xff]  }
  0x13   : > { %551 = vmatprep.mubr.bf16.mxu1 %v940_v12  ;;  %v945_v22 = vld [vmem:[%s1083_s7 + $0x10] ss:$8 sps:$4 sm:$0xff]   ;;  %v947_v24 = vld [vmem:[%s1083_s7 + $0x24] ss:$8 sps:$4 sm:$0xff]   ;;  %v951_v26 = vld [vmem:[%s1083_s7 + $0x20] ss:$8 sps:$4 sm:$0xff]  }
  0x14   : > { %822 = vmatpush3.bf16.msra.mxu0 %v926_v7  ;;  %890 = vmatpush3.bf16.msra.mxu1 %v926_v7  ;;  %v946_v23 = vld [vmem:[%s1083_s7 + $0x50] ss:$8 sps:$4 sm:$0xff]   ;;  %v949_v25 = vld [vmem:[%s1083_s7 + $0x64] ss:$8 sps:$4 sm:$0xff]   ;;  %v952_v27 = vld [vmem:[%s1083_s7 + $0x60] ss:$8 sps:$4 sm:$0xff]  }
  0x15   : > { %823 = vmatprep.subr.bf16.mxu0 %v927_v8  ;;  %883 = vmatprep.subr.bf16.mxu1 %v927_v8  ;;  %v953_v28 = vld [vmem:[%s1083_s7 + $0x34] ss:$8 sps:$4 sm:$0xff]   ;;  %v957_v30 = vld [vmem:[%s1083_s7 + $0x30] ss:$8 sps:$4 sm:$0xff]  }
  0x16   : > { %v955_v29 = vld [vmem:[%s1083_s7 + $0x74] ss:$8 sps:$4 sm:$0xff]   ;;  %v958_v31 = vld [vmem:[%s1083_s7 + $0x70] ss:$8 sps:$4 sm:$0xff]  }
  0x18   : > { %824 = vmatpush3.bf16.msra.mxu0 %v928_v9  ;;  %891 = vmatpush3.bf16.msra.mxu1 %v928_v9 }
  0x19   : > { %825 = vmatprep.subr.bf16.mxu0 %v929_v10  ;;  %884 = vmatprep.subr.bf16.mxu1 %v929_v10 }
  0x1c   : > { %826 = vmatpush3.bf16.msra.mxu0 %v930_v13  ;;  %892 = vmatpush3.bf16.msra.mxu1 %v930_v13 }
  0x1d   : > { %827 = vmatprep.subr.bf16.mxu0 %v931_v14  ;;  %885 = vmatprep.subr.bf16.mxu1 %v931_v14 }
  0x20   : > { %828 = vmatpush3.bf16.msra.mxu0 %v932_v15  ;;  %893 = vmatpush3.bf16.msra.mxu1 %v932_v15 }
  0x21   : > { %829 = vmatprep.subr.bf16.mxu0 %v933_v16  ;;  %886 = vmatprep.subr.bf16.mxu1 %v933_v16 }
  0x24   : > { %830 = vmatpush3.bf16.msra.mxu0 %v934_v17  ;;  %894 = vmatpush3.bf16.msra.mxu1 %v934_v17 }
  0x27   : > { %520 = vmatmul.mubr.bf16.vlgmr.msra.gmra.mrb[0].mxu0 %v935_v18  ;;  %552 = vmatmul.mubr.bf16.vlgmr.msra.gmra.mrb[0].mxu1 %v938_v19 }
  0x28   : > { %527 = vmatprep.mubr.bf16.mxu0 %v941_v20  ;;  %559 = vmatprep.mubr.bf16.mxu1 %v943_v21 }
  0x2f   : > { %528 = vmatmul.mubr.bf16.gmra.mrb[4].mxu0 %v945_v22  ;;  %560 = vmatmul.mubr.bf16.gmra.mrb[4].mxu1 %v946_v23 }
  0x30   : > { %535 = vmatprep.mubr.bf16.mxu0 %v947_v24  ;;  %567 = vmatprep.mubr.bf16.mxu1 %v949_v25 }
  0x37   : > { %536 = vmatmul.mubr.bf16.gmra.mrb[8].mxu0 %v951_v26  ;;  %568 = vmatmul.mubr.bf16.gmra.mrb[8].mxu1 %v952_v27 }
  0x38   : > { %543 = vmatprep.mubr.bf16.mxu0 %v953_v28  ;;  %575 = vmatprep.mubr.bf16.mxu1 %v955_v29 }
  0x3f   : > { %544 = vmatmul.mubr.bf16.gmra.mrb[12].mxu0 %v957_v30  ;;  %576 = vmatmul.mubr.bf16.gmra.mrb[12].mxu1 %v958_v31 }
  0xfa   : > { %v831_v32 = vpop.f32.mrb[0].mxu0  ;;  %v855_v33 = vpop.f32.mrb[0].mxu1 }
  0xfb   : > { %v832_v34 = vpop.f32.mrb[1].mxu0  ;;  %v856_v35 = vpop.f32.mrb[1].mxu1 }
  0xfc   : > { %v833_v36 = vadd.f32 %v832_v34, %v831_v32  ;;  %v857_v37 = vadd.f32 %v856_v35, %v855_v33  ;;  %v834_v38 = vpop.f32.mrb[2].mxu0  ;;  %v858_v39 = vpop.f32.mrb[2].mxu1 }
  0xfd   : > { %v835_v40 = vpop.f32.mrb[3].mxu0  ;;  %v859_v41 = vpop.f32.mrb[3].mxu1 }
  0xfe   : > { %959 = vtanh.f32 %v833_v36  ;;  %v836_v42 = vadd.f32 %v835_v40, %v834_v38  ;;  %v860_v43 = vadd.f32 %v859_v41, %v858_v39 }
  0xff   : > { %961 = vtanh.f32 %v857_v37 }
 0x100   : > { %963 = vtanh.f32 %v836_v42 }
 0x101   : > { %965 = vtanh.f32 %v860_v43 }
 0x102   : > { %v837_v44 = vpop.f32.mrb[4].mxu0  ;;  %v861_v45 = vpop.f32.mrb[4].mxu1 }
 0x103   : > { %v838_v46 = vpop.f32.mrb[5].mxu0  ;;  %v862_v47 = vpop.f32.mrb[5].mxu1 }
 0x104   : > { %v839_v48 = vadd.f32 %v838_v46, %v837_v44  ;;  %v863_v49 = vadd.f32 %v862_v47, %v861_v45  ;;  %v840_v50 = vpop.f32.mrb[6].mxu0  ;;  %v864_v51 = vpop.f32.mrb[6].mxu1 }
 0x105   : > { %v841_v52 = vpop.f32.mrb[7].mxu0  ;;  %v865_v53 = vpop.f32.mrb[7].mxu1 }
 0x106   : > { %967 = vtanh.f32 %v839_v48  ;;  %v842_v54 = vadd.f32 %v841_v52, %v840_v50  ;;  %v866_v55 = vadd.f32 %v865_v53, %v864_v51 }
 0x107   : > { %969 = vtanh.f32 %v863_v49 }
 0x108   : > { %v960_v56 = vpop.eup %959  ;;  %971 = vtanh.f32 %v842_v54 }
 0x109   : > { %v962_v57 = vpop.eup %961  ;;  %651 = vst [vmem:[%s1127_s28] sm:$0xff] %v960_v56  ;;  %973 = vtanh.f32 %v866_v55 }
 0x10a   : > { %v964_v58 = vpop.eup %963  ;;  %659 = vst [vmem:[%s1127_s28 + $0x40] sm:$0xff] %v962_v57  ;;  %v843_v59 = vpop.f32.mrb[8].mxu0 }
 0x10b   : > { %v867_v60 = vpop.f32.mrb[8].mxu1  ;;  %v966_v61 = vpop.eup %965  ;;  %652 = vst [vmem:[%s1127_s28 + $0x8] sm:$0xff] %v964_v58 }
 0x10c   : > { %v844_v62 = vpop.f32.mrb[9].mxu0  ;;  %v868_v63 = vpop.f32.mrb[9].mxu1  ;;  %660 = vst [vmem:[%s1127_s28 + $0x48] sm:$0xff] %v966_v61 }
 0x10d   : > { %v845_v0 = vadd.f32 %v844_v62, %v843_v59  ;;  %v869_v1 = vadd.f32 %v868_v63, %v867_v60  ;;  %v846_v2 = vpop.f32.mrb[10].mxu0  ;;  %v870_v3 = vpop.f32.mrb[10].mxu1 }
 0x10e   : > { %v847_v4 = vpop.f32.mrb[11].mxu0  ;;  %v871_v5 = vpop.f32.mrb[11].mxu1 }
 0x10f   : > { %975 = vtanh.f32 %v845_v0  ;;  %v848_v6 = vadd.f32 %v847_v4, %v846_v2  ;;  %v872_v7 = vadd.f32 %v871_v5, %v870_v3 }
 0x110   : > { %977 = vtanh.f32 %v869_v1  ;;  %v968_v8 = vpop.eup %967 }
 0x111   : > { %979 = vtanh.f32 %v848_v6  ;;  %v970_v9 = vpop.eup %969  ;;  %653 = vst [vmem:[%s1127_s28 + $0x10] sm:$0xff] %v968_v8 }
 0x112   : > { %981 = vtanh.f32 %v872_v7  ;;  %v972_v10 = vpop.eup %971  ;;  %661 = vst [vmem:[%s1127_s28 + $0x50] sm:$0xff] %v970_v9  ;;  %v849_v11 = vpop.f32.mrb[12].mxu0 }
 0x113   : > { %v873_v12 = vpop.f32.mrb[12].mxu1  ;;  %v974_v13 = vpop.eup %973  ;;  %654 = vst [vmem:[%s1127_s28 + $0x18] sm:$0xff] %v972_v10 }
 0x114   : > { %v850_v14 = vpop.f32.mrb[13].mxu0  ;;  %v874_v15 = vpop.f32.mrb[13].mxu1  ;;  %662 = vst [vmem:[%s1127_s28 + $0x58] sm:$0xff] %v974_v13 }
 0x115   : > { %v851_v16 = vadd.f32 %v850_v14, %v849_v11  ;;  %v875_v17 = vadd.f32 %v874_v15, %v873_v12  ;;  %v852_v18 = vpop.f32.mrb[14].mxu0  ;;  %v876_v19 = vpop.f32.mrb[14].mxu1 }
 0x116   : > { %v853_v20 = vpop.f32.mrb[15].mxu0  ;;  %v877_v21 = vpop.f32.mrb[15].mxu1 }
 0x117   : > { %983 = vtanh.f32 %v851_v16  ;;  %v854_v22 = vadd.f32 %v853_v20, %v852_v18  ;;  %v878_v23 = vadd.f32 %v877_v21, %v876_v19 }
 0x118   : > { %985 = vtanh.f32 %v875_v17 }
 0x119   : > { %v976_v24 = vpop.eup %975  ;;  %987 = vtanh.f32 %v854_v22 }
 0x11a   : > { %v978_v25 = vpop.eup %977  ;;  %655 = vst [vmem:[%s1127_s28 + $0x20] sm:$0xff] %v976_v24  ;;  %989 = vtanh.f32 %v878_v23 }
 0x11b   : > { %v980_v26 = vpop.eup %979  ;;  %663 = vst [vmem:[%s1127_s28 + $0x60] sm:$0xff] %v978_v25 }
 0x11c   : > { %v982_v27 = vpop.eup %981  ;;  %656 = vst [vmem:[%s1127_s28 + $0x28] sm:$0xff] %v980_v26 }
 0x11d   : > { %664 = vst [vmem:[%s1127_s28 + $0x68] sm:$0xff] %v982_v27 }
 0x121   : > { %v984_v28 = vpop.eup %983 }
 0x122   : > { %v986_v29 = vpop.eup %985  ;;  %657 = vst [vmem:[%s1127_s28 + $0x30] sm:$0xff] %v984_v28 }
 0x123   : > { %v988_v30 = vpop.eup %987  ;;  %665 = vst [vmem:[%s1127_s28 + $0x70] sm:$0xff] %v986_v29 }
 0x124   : > { %v990_v31 = vpop.eup %989  ;;  %658 = vst [vmem:[%s1127_s28 + $0x38] sm:$0xff] %v988_v30 }
 0x125   : > { %666 = vst [vmem:[%s1127_s28 + $0x78] sm:$0xff] %v990_v31 }
 0x126 PF: > { %s12_s11 = sadd.s32 1, %s1013_s11   ;;  %s1157_s9 = smov %s1009_s10 }
 0x127   : > { %p9_p5 = scmp.ge.s32.totalorder %s12_s11, 7   ;;  %s1158_s10 = smov %s1160_s12 }
 0x129   :  { %11 = sbr.rel (!%p9_p5) target bundleno = 2 (0x2), region = 69 }

</bundles_post_ra>
